<compile_context>
chip_gen: v7x
topology: tpu7x:2x2x1
jax: 0.10.0
libtpu: 0.0.40
codegen_flags: <defaults>
</compile_context>

<pallas_src>
import functools

import numpy as np
import jax
import jax.numpy as jnp
from jax.experimental import pallas as pl
from jax.experimental.pallas import tpu as pltpu

HI = jax.lax.Precision.HIGHEST
LANE = 128


# ----------------------------------------------------------------- fused per-block kernel
def _flow_block_kernel(z_ref, mask_ref, mix_ref, mixb_ref,
                       start_w_ref, start_b_ref, w_in_ref, b_in_ref,
                       w_rs_ref, b_rs_ref, end_w_ref, end_b_ref,
                       zout_ref, ld_ref,
                       *, half, H, K, n_layers, dilation_rate, Tp):
    f32 = jnp.float32
    bf16 = jnp.bfloat16

    mask = mask_ref[0]                                     # (1, Tp) f32
    z = z_ref[0]                                           # (C, Tp) f32

    # ---- ActNorm folded into InvConvNear (bf16 MXU, f32 accumulate).
    #      z = (mix' @ z + bias') * mask  ==  mask * mix @ (bias + exp(logs) * z)
    z = (jnp.dot(mix_ref[...], z.astype(bf16), preferred_element_type=f32)
         + mixb_ref[...]) * mask

    # ---- CouplingBlock
    x0 = z[:half, :]
    x1 = z[half:, :]
    h = (jnp.dot(start_w_ref[...], x0.astype(bf16), preferred_element_type=f32)
         + start_b_ref[...]) * mask                        # (H, Tp) f32
    out = jnp.zeros_like(h)

    col = jax.lax.broadcasted_iota(jnp.int32, (1, Tp), 1)  # static column indices

    for i in range(n_layers):
        d = dilation_rate ** i
        pad = d * (K - 1) // 2
        acc = None
        for kk in range(K):
            off = kk * d - pad                             # tap[t] = h[t + off] (0 outside)
            if off == 0:
                tap = h
            else:
                tap = pltpu.roll(h, shift=(-off) % Tp, axis=1)       # XLU lane rotate
                valid = jnp.logical_and(col + off >= 0, col + off < Tp)
                tap = jnp.where(valid, tap, 0.0)           # zero the wrapped boundary cols
            y = jnp.dot(w_in_ref[i, kk], tap.astype(bf16),
                        preferred_element_type=f32)        # (2H, Tp), [tanh | sigmoid]
            if acc is None:
                acc = y + b_in_ref[i]                      # init from first tap + bias
            else:
                acc = acc + y
        acts = jnp.tanh(acc[:H, :]) * jax.nn.sigmoid(acc[H:, :])
        # merged [res | skip] 1x1 conv (last layer: res half is zero at pack time)
        rs = (jnp.dot(w_rs_ref[i], acts.astype(bf16), preferred_element_type=f32)
              + b_rs_ref[i])
        if i < n_layers - 1:
            h = (h + rs[:H, :]) * mask
        out = out + rs[H:, :]                              # intentionally unmasked here

    out = out * mask
    # merged end 1x1 conv -> [m | logs], then the affine coupling
    e = (jnp.dot(end_w_ref[...], out.astype(bf16), preferred_element_type=f32)
         + end_b_ref[...])
    m = e[:half, :]
    logs = e[half:, :]
    z1 = (m + jnp.exp(logs) * x1) * mask

    # direct sub-stores (no concatenate copy)
    zout_ref[0, :half, :] = x0
    zout_ref[0, half:, :] = z1
    # in-kernel per-batch logdet contribution: sum(logs * mask) -> lane-broadcast store
    ld = jnp.sum(logs * mask, axis=(0, 1), keepdims=True)  # (1, 1)
    ld_ref[0] = jnp.broadcast_to(ld, (1, LANE))


def _flow_block_call(z, mask, pb, cfg):
    """One fused flow step (ActNorm + InvConvNear + CouplingBlock) for all batches."""
    B, C, Tp = z.shape
    half = C // 2
    H = cfg['hidden_channels']
    K = cfg['kernel_size']
    n_layers = cfg['n_layers']

    kernel = functools.partial(
        _flow_block_kernel, half=half, H=H, K=K, n_layers=n_layers,
        dilation_rate=cfg['dilation_rate'], Tp=Tp)

    def wspec(shape):
        zeros = (0,) * len(shape)
        return pl.BlockSpec(shape, lambda b, _z=zeros: _z)

    return pl.pallas_call(
        kernel,
        grid=(B,),
        in_specs=[
            pl.BlockSpec((1, C, Tp), lambda b: (b, 0, 0)),      # z
            pl.BlockSpec((1, 1, Tp), lambda b: (b, 0, 0)),      # mask
            wspec((C, C)),                                      # mix (ActNorm folded, bf16)
            wspec((C, 1)),                                      # mix bias (f32)
            wspec((H, half)),                                   # start_w (bf16)
            wspec((H, 1)),                                      # start_b (f32)
            wspec((n_layers, K, 2 * H, H)),                     # w_in  [tanh | sigmoid] bf16
            wspec((n_layers, 2 * H, 1)),                        # b_in  (f32)
            wspec((n_layers, 2 * H, H)),                        # w_rs  [res | skip] bf16
            wspec((n_layers, 2 * H, 1)),                        # b_rs  (f32)
            wspec((C, H)),                                      # end_w [m | logs] bf16
            wspec((C, 1)),                                      # end_b (f32)
        ],
        out_specs=(
            pl.BlockSpec((1, C, Tp), lambda b: (b, 0, 0)),      # z out
            pl.BlockSpec((1, 1, LANE), lambda b: (b, 0, 0)),    # per-batch sum(logs*mask)
        ),
        out_shape=(
            jax.ShapeDtypeStruct((B, C, Tp), jnp.float32),
            jax.ShapeDtypeStruct((B, 1, LANE), jnp.float32),
        ),
        compiler_params=pltpu.CompilerParams(
            dimension_semantics=("parallel",),
            vmem_limit_bytes=48 * 1024 * 1024),
    )(z, mask, pb['mix'], pb['mix_bias'],
      pb['start_w'], pb['start_b'], pb['w_in'], pb['b_in'],
      pb['w_rs'], pb['b_rs'], pb['end_w'], pb['end_b'])


# ------------------------------------------------------------------ params
def init_params(key, cfg):
    """Raw (torch-like, channels-first) f32 parameters."""
    Cin = cfg['in_channels']
    C = Cin * cfg['n_sqz']
    half = C // 2
    H = cfg['hidden_channels']
    K = cfg['kernel_size']
    ns = cfg['n_split']
    n_layers = cfg['n_layers']
    blocks = []
    for _ in range(cfg['n_blocks']):
        key, k1, k2, k3, k4, k5, k6 = jax.random.split(key, 7)
        blk = {
            'an_logs': 0.1 * jax.random.normal(k1, (C, 1), jnp.float32),
            'an_bias': 0.1 * jax.random.normal(k2, (C, 1), jnp.float32),
        }
        # InvConvNear: orthogonal ns x ns with det > 0 (QR of a Gaussian, as in torch)
        q, _ = jnp.linalg.qr(jax.random.normal(k3, (ns, ns), jnp.float32))
        q = jnp.where(jnp.linalg.det(q) < 0, q.at[:, 0].multiply(-1.0), q)
        blk['inv_w'] = q
        # Coupling "start" 1x1 conv: half -> H  (weight_norm folded in)
        blk['start_w'] = jax.random.normal(k4, (H, half), jnp.float32) / np.sqrt(half)
        blk['start_b'] = 0.01 * jax.random.normal(k5, (H, 1), jnp.float32)
        wn = []
        for i in range(n_layers):
            key, kk1, kk2, kk3, kk4 = jax.random.split(key, 5)
            last = (i == n_layers - 1)
            rs_out = H if last else 2 * H
            wn.append({
                'w_in': jax.random.normal(kk1, (K, 2 * H, H), jnp.float32) / np.sqrt(K * H),
                'b_in': 0.01 * jax.random.normal(kk2, (2 * H, 1), jnp.float32),
                'w_rs': jax.random.normal(kk3, (rs_out, H), jnp.float32) / np.sqrt(H),
                'b_rs': 0.01 * jax.random.normal(kk4, (rs_out, 1), jnp.float32),
            })
        blk['wn'] = wn
        # "end" 1x1 conv (H -> C). PyTorch zero-inits it; small random values are used so
        # the affine-coupling path is exercised (deterministic from PRNGKey(0)).
        blk['end_w'] = 0.02 * jax.random.normal(k6, (C, H), jnp.float32)
        blk['end_b'] = jnp.zeros((C, 1), jnp.float32)
        blocks.append(blk)
    return {'blocks': blocks}


def pack_params(params, cfg):
    """Kernel-ready params: ActNorm folded into the expanded InvConvNear matrix, stacked
    bf16 matmul weights, f32 biases, per-block logdet scale precomputed once."""
    C = cfg['in_channels'] * cfg['n_sqz']
    H = cfg['hidden_channels']
    ns = cfg['n_split']
    ns2 = ns // 2
    g = C // ns
    n_layers = cfg['n_layers']
    bf16 = jnp.bfloat16

    # Static channel-shuffle indices mapping the torch view/permute/view InvConvNear onto a
    # dense C x C mixing matrix:  c = a*(g*ns2) + j*ns2 + m  ->  split index k = a*ns2 + m.
    c = np.arange(C)
    a = c // (g * ns2)
    j = (c // ns2) % g
    m = c % ns2
    k = a * ns2 + m
    same_group = (j[:, None] == j[None, :]).astype(np.float32)

    packed = []
    for blk in params['blocks']:
        W = blk['inv_w']
        mix = W[k[:, None], k[None, :]] * same_group               # (C_out, C_in), f32
        # Fold ActNorm: mix' = mix @ diag(exp(an_logs)); bias' = mix @ an_bias (f32 fold)
        mix_scaled = mix * jnp.exp(blk['an_logs'][:, 0])[None, :]
        mix_bias = jnp.dot(mix, blk['an_bias'], precision=HI)      # (C, 1) f32

        w_in = jnp.stack([lyr['w_in'] for lyr in blk['wn']])       # (L, K, 2H, H)
        b_in = jnp.stack([lyr['b_in'] for lyr in blk['wn']])       # (L, 2H, 1)
        w_rs, b_rs = [], []
        for i, lyr in enumerate(blk['wn']):
            if i < n_layers - 1:
                w_rs.append(lyr['w_rs'])
                b_rs.append(lyr['b_rs'])
            else:  # last layer is all-skip: zero-pad the res half (accepted MXU waste)
                w_rs.append(jnp.concatenate(
                    [jnp.zeros((H, H), jnp.float32), lyr['w_rs']], axis=0))
                b_rs.append(jnp.concatenate(
                    [jnp.zeros((H, 1), jnp.float32), lyr['b_rs']], axis=0))
        packed.append({
            'mix': mix_scaled.astype(bf16),
            'mix_bias': mix_bias.astype(jnp.float32),
            'start_w': blk['start_w'].astype(bf16),
            'start_b': blk['start_b'],
            'w_in': w_in.astype(bf16), 'b_in': b_in,
            'w_rs': jnp.stack(w_rs).astype(bf16), 'b_rs': jnp.stack(b_rs),
            'end_w': blk['end_w'].astype(bf16), 'end_b': blk['end_b'],
            # (sum(an_logs) + logabsdet(W) * C/ns); multiplied by x_len per batch
            'logdet_scale': (jnp.sum(blk['an_logs'])
                             + jnp.linalg.slogdet(W)[1] * (C / ns)),
        })
    return packed


# ------------------------------------------------------------------ forward (Pallas path)
def flow_decoder_forward(packed, cfg, x, x_mask):
    """x: (B, Cin, T) channels-first (torch NCT); x_mask: (B, 1, T). -> (z, logdet_tot)."""
    B, Cin, T = x.shape
    n_sqz = cfg['n_sqz']
    C = Cin * n_sqz

    # ---- commons.squeeze ----
    Tq = (T // n_sqz) * n_sqz
    Tp = Tq // n_sqz
    xs = x[:, :, :Tq].reshape(B, Cin, Tp, n_sqz)
    z = jnp.transpose(xs, (0, 3, 1, 2)).reshape(B, C, Tp)
    mask = x_mask[:, :, n_sqz - 1::n_sqz]                     # (B, 1, Tp)
    z = z * mask

    x_len = jnp.sum(mask, axis=(1, 2))                        # (B,)
    logdet_tot = jnp.zeros((B,), jnp.float32)

    # Pad the time axis to a lane multiple: lane-dense stores, wrap-safe rolls.  Padded
    # columns have mask == 0, so every block's output there is exactly zero.
    Tpad = ((Tp + LANE - 1) // LANE) * LANE
    zp = jnp.pad(z, ((0, 0), (0, 0), (0, Tpad - Tp)))
    maskp = jnp.pad(mask, ((0, 0), (0, 0), (0, Tpad - Tp)))

    for pb in packed:
        zp, ld = _flow_block_call(zp, maskp, pb, cfg)
        logdet_tot = logdet_tot + pb['logdet_scale'] * x_len + ld[:, 0, 0]

    z = zp[:, :, :Tp]

    # ---- commons.unsqueeze ----
    zu = z.reshape(B, n_sqz, Cin, Tp)
    zu = jnp.transpose(zu, (0, 2, 3, 1)).reshape(B, Cin, Tq)
    mask_un = jnp.repeat(mask[:, :, :, None], n_sqz, axis=3).reshape(B, 1, Tq)
    return zu * mask_un, logdet_tot


# ------------------------------------------------------------------ pure-JAX reference
def flow_decoder_reference(params, cfg, x, x_mask):
    B, Cin, T = x.shape
    n_sqz = cfg['n_sqz']
    C = Cin * n_sqz
    half = C // 2
    H = cfg['hidden_channels']
    K = cfg['kernel_size']
    ns = cfg['n_split']
    ns2 = ns // 2
    g = C // ns
    n_layers = cfg['n_layers']
    dr = cfg['dilation_rate']

    Tq = (T // n_sqz) * n_sqz
    Tp = Tq // n_sqz
    xs = x[:, :, :Tq].reshape(B, Cin, Tp, n_sqz)
    z = jnp.transpose(xs, (0, 3, 1, 2)).reshape(B, C, Tp)
    mask = x_mask[:, :, n_sqz - 1::n_sqz]
    z = z * mask
    x_len = jnp.sum(mask, axis=(1, 2))
    logdet = jnp.zeros((B,), jnp.float32)

    for blk in params['blocks']:
        # ActNorm
        z = (blk['an_bias'] + jnp.exp(blk['an_logs']) * z) * mask
        logdet = logdet + jnp.sum(blk['an_logs']) * x_len
        # InvConvNear (torch view/permute/conv2d path)
        W = blk['inv_w']
        xr = z.reshape(B, 2, g, ns2, Tp)
        xr = jnp.transpose(xr, (0, 1, 3, 2, 4)).reshape(B, ns, g, Tp)
        zr = jnp.einsum('ik,bkgt->bigt', W, xr, precision=HI)
        zr = zr.reshape(B, 2, ns2, g, Tp)
        z = jnp.transpose(zr, (0, 1, 3, 2, 4)).reshape(B, C, Tp) * mask
        logdet = logdet + jnp.linalg.slogdet(W)[1] * (C / ns) * x_len
        # CouplingBlock
        x0, x1 = z[:, :half], z[:, half:]
        h = (jnp.einsum('oc,bct->bot', blk['start_w'], x0, precision=HI)
             + blk['start_b']) * mask
        out = jnp.zeros_like(h)
        for i, lyr in enumerate(blk['wn']):
            d = dr ** i
            pad = d * (K - 1) // 2
            hp = jnp.pad(h, ((0, 0), (0, 0), (pad, pad)))
            xin = lyr['b_in'] + jnp.zeros((B, 2 * H, Tp), jnp.float32)
            for kk in range(K):
                xin = xin + jnp.einsum('oc,bct->bot', lyr['w_in'][kk],
                                       hp[:, :, kk * d: kk * d + Tp], precision=HI)
            acts = jnp.tanh(xin[:, :H]) * jax.nn.sigmoid(xin[:, H:])
            rs = jnp.einsum('oc,bct->bot', lyr['w_rs'], acts, precision=HI) + lyr['b_rs']
            if i < n_layers - 1:
                h = (h + rs[:, :H]) * mask
                out = out + rs[:, H:]
            else:
                out = out + rs
        out = out * mask
        e = jnp.einsum('oc,bct->bot', blk['end_w'], out, precision=HI) + blk['end_b']
        m_, logs = e[:, :half], e[:, half:]
        z1 = (m_ + jnp.exp(logs) * x1) * mask
        logdet = logdet + jnp.sum(logs * mask, axis=(1, 2))
        z = jnp.concatenate([x0, z1], axis=1)

    zu = z.reshape(B, n_sqz, Cin, Tp)
    zu = jnp.transpose(zu, (0, 2, 3, 1)).reshape(B, Cin, Tq)
    mask_un = jnp.repeat(mask[:, :, :, None], n_sqz, axis=3).reshape(B, 1, Tq)
    return zu * mask_un, logdet


# ------------------------------------------------------------------ main
if __name__ == "__main__":
    cfg = dict(in_channels=4, hidden_channels=32, kernel_size=3, dilation_rate=1,
               n_blocks=2, n_layers=3, n_split=4, n_sqz=2)

    key = jax.random.PRNGKey(0)
    kp, kx = jax.random.split(key)
    params = init_params(kp, cfg)
    packed = pack_params(params, cfg)     # done once, outside the jitted forward

    B, T = 2, 16
    x = jax.random.normal(kx, (B, cfg['in_channels'], T), jnp.float32)
    lengths = jnp.array([16, 12], jnp.int32)
    x_mask = (jnp.arange(T)[None, None, :] < lengths[:, None, None]).astype(jnp.float32)

    run = jax.jit(functools.partial(flow_decoder_forward, packed, cfg))
    z_pl, ld_pl = run(x, x_mask)
    jax.block_until_ready((z_pl, ld_pl))

    # Validate against the plain-JAX f32 (HIGHEST precision) reference.  The kernel
    # intentionally uses bf16 MXU inputs with f32 accumulation, so tolerances reflect
    # bf16 rounding accumulated across the n_blocks * n_layers matmul chain.
    z_ref, ld_ref = flow_decoder_reference(params, cfg, x, x_mask)
    err_z = float(jnp.max(jnp.abs(z_pl - z_ref)))
    err_l = float(jnp.max(jnp.abs(ld_pl - ld_ref)))
    tol_z = 2e-2 + 4e-2 * float(jnp.max(jnp.abs(z_ref)))
    tol_l = 2e-1 + 5e-2 * float(jnp.max(jnp.abs(ld_ref)))
    assert z_pl.shape == (B, cfg['in_channels'], T) and ld_pl.shape == (B,)
    assert np.isfinite(err_z) and np.isfinite(err_l)
    assert err_z <= tol_z, f"z mismatch: {err_z} > {tol_z}"
    assert err_l <= tol_l, f"logdet mismatch: {err_l} > {tol_l}"

    print("KERNEL_OK")
</pallas_src>

<mosaic_0001>
module attributes {stable_mosaic.version = 11 : i64} {
  func.func @_flow_block_kernel(%arg0: i32, %arg1: memref<1x8x128xf32, #tpu.memory_space<vmem>>, %arg2: memref<1x1x128xf32, #tpu.memory_space<vmem>>, %arg3: memref<8x8xbf16, #tpu.memory_space<vmem>>, %arg4: memref<8x1xf32, #tpu.memory_space<vmem>>, %arg5: memref<32x4xbf16, #tpu.memory_space<vmem>>, %arg6: memref<32x1xf32, #tpu.memory_space<vmem>>, %arg7: memref<3x3x64x32xbf16, #tpu.memory_space<vmem>>, %arg8: memref<3x64x1xf32, #tpu.memory_space<vmem>>, %arg9: memref<3x64x32xbf16, #tpu.memory_space<vmem>>, %arg10: memref<3x64x1xf32, #tpu.memory_space<vmem>>, %arg11: memref<8x32xbf16, #tpu.memory_space<vmem>>, %arg12: memref<8x1xf32, #tpu.memory_space<vmem>>, %arg13: memref<1x8x128xf32, #tpu.memory_space<vmem>>, %arg14: memref<1x1x128xf32, #tpu.memory_space<vmem>>) attributes {dimension_semantics = [#tpu.dimension_semantics<parallel>], iteration_bounds = array<i64: 2>, scalar_prefetch = 0 : i64, scratch_operands = 0 : i64, tpu.core_type = #tpu.core_type<tc>, window_params = [{transform_indices = @transform_0, window_bounds = array<i64: 1, 8, 128>}, {transform_indices = @transform_1, window_bounds = array<i64: 1, 1, 128>}, {pipeline_mode = #tpu.pipeline_mode<synchronous>, transform_indices = @transform_2, window_bounds = array<i64: 8, 8>}, {pipeline_mode = #tpu.pipeline_mode<synchronous>, transform_indices = @transform_3, window_bounds = array<i64: 8, 1>}, {pipeline_mode = #tpu.pipeline_mode<synchronous>, transform_indices = @transform_4, window_bounds = array<i64: 32, 4>}, {pipeline_mode = #tpu.pipeline_mode<synchronous>, transform_indices = @transform_5, window_bounds = array<i64: 32, 1>}, {pipeline_mode = #tpu.pipeline_mode<synchronous>, transform_indices = @transform_6, window_bounds = array<i64: 3, 3, 64, 32>}, {pipeline_mode = #tpu.pipeline_mode<synchronous>, transform_indices = @transform_7, window_bounds = array<i64: 3, 64, 1>}, {pipeline_mode = #tpu.pipeline_mode<synchronous>, transform_indices = @transform_8, window_bounds = array<i64: 3, 64, 32>}, {pipeline_mode = #tpu.pipeline_mode<synchronous>, transform_indices = @transform_9, window_bounds = array<i64: 3, 64, 1>}, {pipeline_mode = #tpu.pipeline_mode<synchronous>, transform_indices = @transform_10, window_bounds = array<i64: 8, 32>}, {pipeline_mode = #tpu.pipeline_mode<synchronous>, transform_indices = @transform_11, window_bounds = array<i64: 8, 1>}, {transform_indices = @transform_12, window_bounds = array<i64: 1, 8, 128>}, {transform_indices = @transform_13, window_bounds = array<i64: 1, 1, 128>}]} {
    %c0 = arith.constant 0 : index
    %c0_0 = arith.constant 0 : index
    %c0_1 = arith.constant 0 : index
    %0 = vector.load %arg2[%c0, %c0_0, %c0_1] : memref<1x1x128xf32, #tpu.memory_space<vmem>>, vector<1x1x128xf32>
    %1 = vector.shape_cast %0 : vector<1x1x128xf32> to vector<1x128xf32>
    %c0_2 = arith.constant 0 : index
    %c0_3 = arith.constant 0 : index
    %c0_4 = arith.constant 0 : index
    %2 = vector.load %arg1[%c0_2, %c0_3, %c0_4] : memref<1x8x128xf32, #tpu.memory_space<vmem>>, vector<1x8x128xf32>
    %3 = vector.shape_cast %2 : vector<1x8x128xf32> to vector<8x128xf32>
    %c0_5 = arith.constant 0 : index
    %c0_6 = arith.constant 0 : index
    %4 = vector.load %arg3[%c0_5, %c0_6] : memref<8x8xbf16, #tpu.memory_space<vmem>>, vector<8x8xbf16>
    %5 = arith.truncf %3 : vector<8x128xf32> to vector<8x128xbf16>
    %cst = arith.constant dense<0.000000e+00> : vector<8x128xf32>
    %6 = tpu.matmul %4, %5, %cst {dimension_numbers = #tpu.dot_dimension_numbers<[1], [0], [0], [1], [0, 0, 1, 1], [], []>} : vector<8x8xbf16>, vector<8x128xbf16>, vector<8x128xf32> -> vector<8x128xf32>
    %c0_7 = arith.constant 0 : index
    %c0_8 = arith.constant 0 : index
    %7 = vector.load %arg4[%c0_7, %c0_8] : memref<8x1xf32, #tpu.memory_space<vmem>>, vector<8x1xf32>
    %8 = vector.broadcast %7 : vector<8x1xf32> to vector<8x128xf32>
    %9 = arith.addf %6, %8 : vector<8x128xf32>
    %10 = vector.broadcast %1 : vector<1x128xf32> to vector<8x128xf32>
    %11 = arith.mulf %9, %10 : vector<8x128xf32>
    %12 = vector.extract_strided_slice %11 {offsets = [0, 0], sizes = [4, 128], strides = [1, 1]} : vector<8x128xf32> to vector<4x128xf32>
    %13 = vector.extract_strided_slice %11 {offsets = [4, 0], sizes = [4, 128], strides = [1, 1]} : vector<8x128xf32> to vector<4x128xf32>
    %c0_9 = arith.constant 0 : index
    %c0_10 = arith.constant 0 : index
    %14 = vector.load %arg5[%c0_9, %c0_10] : memref<32x4xbf16, #tpu.memory_space<vmem>>, vector<32x4xbf16>
    %15 = arith.truncf %12 : vector<4x128xf32> to vector<4x128xbf16>
    %cst_11 = arith.constant dense<0.000000e+00> : vector<32x128xf32>
    %16 = tpu.matmul %14, %15, %cst_11 {dimension_numbers = #tpu.dot_dimension_numbers<[1], [0], [0], [1], [0, 0, 1, 1], [], []>} : vector<32x4xbf16>, vector<4x128xbf16>, vector<32x128xf32> -> vector<32x128xf32>
    %c0_12 = arith.constant 0 : index
    %c0_13 = arith.constant 0 : index
    %17 = vector.load %arg6[%c0_12, %c0_13] : memref<32x1xf32, #tpu.memory_space<vmem>>, vector<32x1xf32>
    %18 = vector.broadcast %17 : vector<32x1xf32> to vector<32x128xf32>
    %19 = arith.addf %16, %18 : vector<32x128xf32>
    %20 = vector.broadcast %1 : vector<1x128xf32> to vector<32x128xf32>
    %21 = arith.mulf %19, %20 : vector<32x128xf32>
    %cst_14 = arith.constant 0.000000e+00 : f32
    %22 = vector.broadcast %cst_14 : f32 to vector<32x128xf32>
    %23 = tpu.iota {dimensions = array<i32: 1>} : vector<1x128xi32>
    %c1_i32 = arith.constant 1 : i32
    %24 = tpu.dynamic_rotate %21 by %c1_i32 dim 1 : vector<32x128xf32>, i32 -> vector<32x128xf32>
    %c-1_i32 = arith.constant -1 : i32
    %25 = vector.broadcast %c-1_i32 : i32 to vector<1x128xi32>
    %26 = arith.addi %23, %25 : vector<1x128xi32>
    %c0_i32 = arith.constant 0 : i32
    %27 = vector.broadcast %c0_i32 : i32 to vector<1x128xi32>
    %28 = arith.cmpi sge, %26, %27 : vector<1x128xi32>
    %c-1_i32_15 = arith.constant -1 : i32
    %29 = vector.broadcast %c-1_i32_15 : i32 to vector<1x128xi32>
    %30 = arith.addi %23, %29 : vector<1x128xi32>
    %c128_i32 = arith.constant 128 : i32
    %31 = vector.broadcast %c128_i32 : i32 to vector<1x128xi32>
    %32 = arith.cmpi slt, %30, %31 : vector<1x128xi32>
    %33 = arith.andi %28, %32 : vector<1x128xi1>
    %cst_16 = arith.constant 0.000000e+00 : f32
    %34 = vector.shape_cast %33 : vector<1x128xi1> to vector<1x128xi1>
    %35 = vector.broadcast %34 : vector<1x128xi1> to vector<32x128xi1>
    %36 = vector.broadcast %cst_16 : f32 to vector<32x128xf32>
    %37 = arith.select %35, %24, %36 : vector<32x128xi1>, vector<32x128xf32>
    %c0_17 = arith.constant 0 : index
    %c0_18 = arith.constant 0 : index
    %c0_19 = arith.constant 0 : index
    %c0_20 = arith.constant 0 : index
    %38 = vector.load %arg7[%c0_17, %c0_18, %c0_19, %c0_20] : memref<3x3x64x32xbf16, #tpu.memory_space<vmem>>, vector<1x1x64x32xbf16>
    %39 = vector.shape_cast %38 : vector<1x1x64x32xbf16> to vector<64x32xbf16>
    %40 = arith.truncf %37 : vector<32x128xf32> to vector<32x128xbf16>
    %cst_21 = arith.constant dense<0.000000e+00> : vector<64x128xf32>
    %41 = tpu.matmul %39, %40, %cst_21 {dimension_numbers = #tpu.dot_dimension_numbers<[1], [0], [0], [1], [0, 0, 1, 1], [], []>} : vector<64x32xbf16>, vector<32x128xbf16>, vector<64x128xf32> -> vector<64x128xf32>
    %c0_22 = arith.constant 0 : index
    %c0_23 = arith.constant 0 : index
    %c0_24 = arith.constant 0 : index
    %42 = vector.load %arg8[%c0_22, %c0_23, %c0_24] : memref<3x64x1xf32, #tpu.memory_space<vmem>>, vector<1x64x1xf32>
    %43 = vector.shape_cast %42 : vector<1x64x1xf32> to vector<64x1xf32>
    %44 = vector.broadcast %43 : vector<64x1xf32> to vector<64x128xf32>
    %45 = arith.addf %41, %44 : vector<64x128xf32>
    %c0_25 = arith.constant 0 : index
    %c1 = arith.constant 1 : index
    %c0_26 = arith.constant 0 : index
    %c0_27 = arith.constant 0 : index
    %46 = vector.load %arg7[%c0_25, %c1, %c0_26, %c0_27] : memref<3x3x64x32xbf16, #tpu.memory_space<vmem>>, vector<1x1x64x32xbf16>
    %47 = vector.shape_cast %46 : vector<1x1x64x32xbf16> to vector<64x32xbf16>
    %48 = arith.truncf %21 : vector<32x128xf32> to vector<32x128xbf16>
    %cst_28 = arith.constant dense<0.000000e+00> : vector<64x128xf32>
    %49 = tpu.matmul %47, %48, %cst_28 {dimension_numbers = #tpu.dot_dimension_numbers<[1], [0], [0], [1], [0, 0, 1, 1], [], []>} : vector<64x32xbf16>, vector<32x128xbf16>, vector<64x128xf32> -> vector<64x128xf32>
    %50 = arith.addf %45, %49 : vector<64x128xf32>
    %c127_i32 = arith.constant 127 : i32
    %51 = tpu.dynamic_rotate %21 by %c127_i32 dim 1 : vector<32x128xf32>, i32 -> vector<32x128xf32>
    %c1_i32_29 = arith.constant 1 : i32
    %52 = vector.broadcast %c1_i32_29 : i32 to vector<1x128xi32>
    %53 = arith.addi %23, %52 : vector<1x128xi32>
    %c0_i32_30 = arith.constant 0 : i32
    %54 = vector.broadcast %c0_i32_30 : i32 to vector<1x128xi32>
    %55 = arith.cmpi sge, %53, %54 : vector<1x128xi32>
    %c1_i32_31 = arith.constant 1 : i32
    %56 = vector.broadcast %c1_i32_31 : i32 to vector<1x128xi32>
    %57 = arith.addi %23, %56 : vector<1x128xi32>
    %c128_i32_32 = arith.constant 128 : i32
    %58 = vector.broadcast %c128_i32_32 : i32 to vector<1x128xi32>
    %59 = arith.cmpi slt, %57, %58 : vector<1x128xi32>
    %60 = arith.andi %55, %59 : vector<1x128xi1>
    %cst_33 = arith.constant 0.000000e+00 : f32
    %61 = vector.shape_cast %60 : vector<1x128xi1> to vector<1x128xi1>
    %62 = vector.broadcast %61 : vector<1x128xi1> to vector<32x128xi1>
    %63 = vector.broadcast %cst_33 : f32 to vector<32x128xf32>
    %64 = arith.select %62, %51, %63 : vector<32x128xi1>, vector<32x128xf32>
    %c0_34 = arith.constant 0 : index
    %c2 = arith.constant 2 : index
    %c0_35 = arith.constant 0 : index
    %c0_36 = arith.constant 0 : index
    %65 = vector.load %arg7[%c0_34, %c2, %c0_35, %c0_36] : memref<3x3x64x32xbf16, #tpu.memory_space<vmem>>, vector<1x1x64x32xbf16>
    %66 = vector.shape_cast %65 : vector<1x1x64x32xbf16> to vector<64x32xbf16>
    %67 = arith.truncf %64 : vector<32x128xf32> to vector<32x128xbf16>
    %cst_37 = arith.constant dense<0.000000e+00> : vector<64x128xf32>
    %68 = tpu.matmul %66, %67, %cst_37 {dimension_numbers = #tpu.dot_dimension_numbers<[1], [0], [0], [1], [0, 0, 1, 1], [], []>} : vector<64x32xbf16>, vector<32x128xbf16>, vector<64x128xf32> -> vector<64x128xf32>
    %69 = arith.addf %50, %68 : vector<64x128xf32>
    %70 = vector.extract_strided_slice %69 {offsets = [0, 0], sizes = [32, 128], strides = [1, 1]} : vector<64x128xf32> to vector<32x128xf32>
    %71 = math.tanh %70 : vector<32x128xf32>
    %72 = vector.extract_strided_slice %69 {offsets = [32, 0], sizes = [32, 128], strides = [1, 1]} : vector<64x128xf32> to vector<32x128xf32>
    %73 = arith.negf %72 : vector<32x128xf32>
    %74 = math.exp %73 : vector<32x128xf32>
    %cst_38 = arith.constant 1.000000e+00 : f32
    %75 = vector.broadcast %cst_38 : f32 to vector<32x128xf32>
    %76 = arith.addf %75, %74 : vector<32x128xf32>
    %77 = arith.divf %75, %76 : vector<32x128xf32>
    %78 = arith.mulf %71, %77 : vector<32x128xf32>
    %c0_39 = arith.constant 0 : index
    %c0_40 = arith.constant 0 : index
    %c0_41 = arith.constant 0 : index
    %79 = vector.load %arg9[%c0_39, %c0_40, %c0_41] : memref<3x64x32xbf16, #tpu.memory_space<vmem>>, vector<1x64x32xbf16>
    %80 = vector.shape_cast %79 : vector<1x64x32xbf16> to vector<64x32xbf16>
    %81 = arith.truncf %78 : vector<32x128xf32> to vector<32x128xbf16>
    %cst_42 = arith.constant dense<0.000000e+00> : vector<64x128xf32>
    %82 = tpu.matmul %80, %81, %cst_42 {dimension_numbers = #tpu.dot_dimension_numbers<[1], [0], [0], [1], [0, 0, 1, 1], [], []>} : vector<64x32xbf16>, vector<32x128xbf16>, vector<64x128xf32> -> vector<64x128xf32>
    %c0_43 = arith.constant 0 : index
    %c0_44 = arith.constant 0 : index
    %c0_45 = arith.constant 0 : index
    %83 = vector.load %arg10[%c0_43, %c0_44, %c0_45] : memref<3x64x1xf32, #tpu.memory_space<vmem>>, vector<1x64x1xf32>
    %84 = vector.shape_cast %83 : vector<1x64x1xf32> to vector<64x1xf32>
    %85 = vector.broadcast %84 : vector<64x1xf32> to vector<64x128xf32>
    %86 = arith.addf %82, %85 : vector<64x128xf32>
    %87 = vector.extract_strided_slice %86 {offsets = [0, 0], sizes = [32, 128], strides = [1, 1]} : vector<64x128xf32> to vector<32x128xf32>
    %88 = arith.addf %21, %87 : vector<32x128xf32>
    %89 = vector.broadcast %1 : vector<1x128xf32> to vector<32x128xf32>
    %90 = arith.mulf %88, %89 : vector<32x128xf32>
    %91 = vector.extract_strided_slice %86 {offsets = [32, 0], sizes = [32, 128], strides = [1, 1]} : vector<64x128xf32> to vector<32x128xf32>
    %92 = arith.addf %22, %91 : vector<32x128xf32>
    %c1_i32_46 = arith.constant 1 : i32
    %93 = tpu.dynamic_rotate %90 by %c1_i32_46 dim 1 : vector<32x128xf32>, i32 -> vector<32x128xf32>
    %c-1_i32_47 = arith.constant -1 : i32
    %94 = vector.broadcast %c-1_i32_47 : i32 to vector<1x128xi32>
    %95 = arith.addi %23, %94 : vector<1x128xi32>
    %c0_i32_48 = arith.constant 0 : i32
    %96 = vector.broadcast %c0_i32_48 : i32 to vector<1x128xi32>
    %97 = arith.cmpi sge, %95, %96 : vector<1x128xi32>
    %c-1_i32_49 = arith.constant -1 : i32
    %98 = vector.broadcast %c-1_i32_49 : i32 to vector<1x128xi32>
    %99 = arith.addi %23, %98 : vector<1x128xi32>
    %c128_i32_50 = arith.constant 128 : i32
    %100 = vector.broadcast %c128_i32_50 : i32 to vector<1x128xi32>
    %101 = arith.cmpi slt, %99, %100 : vector<1x128xi32>
    %102 = arith.andi %97, %101 : vector<1x128xi1>
    %cst_51 = arith.constant 0.000000e+00 : f32
    %103 = vector.shape_cast %102 : vector<1x128xi1> to vector<1x128xi1>
    %104 = vector.broadcast %103 : vector<1x128xi1> to vector<32x128xi1>
    %105 = vector.broadcast %cst_51 : f32 to vector<32x128xf32>
    %106 = arith.select %104, %93, %105 : vector<32x128xi1>, vector<32x128xf32>
    %c1_52 = arith.constant 1 : index
    %c0_53 = arith.constant 0 : index
    %c0_54 = arith.constant 0 : index
    %c0_55 = arith.constant 0 : index
    %107 = vector.load %arg7[%c1_52, %c0_53, %c0_54, %c0_55] : memref<3x3x64x32xbf16, #tpu.memory_space<vmem>>, vector<1x1x64x32xbf16>
    %108 = vector.shape_cast %107 : vector<1x1x64x32xbf16> to vector<64x32xbf16>
    %109 = arith.truncf %106 : vector<32x128xf32> to vector<32x128xbf16>
    %cst_56 = arith.constant dense<0.000000e+00> : vector<64x128xf32>
    %110 = tpu.matmul %108, %109, %cst_56 {dimension_numbers = #tpu.dot_dimension_numbers<[1], [0], [0], [1], [0, 0, 1, 1], [], []>} : vector<64x32xbf16>, vector<32x128xbf16>, vector<64x128xf32> -> vector<64x128xf32>
    %c1_57 = arith.constant 1 : index
    %c0_58 = arith.constant 0 : index
    %c0_59 = arith.constant 0 : index
    %111 = vector.load %arg8[%c1_57, %c0_58, %c0_59] : memref<3x64x1xf32, #tpu.memory_space<vmem>>, vector<1x64x1xf32>
    %112 = vector.shape_cast %111 : vector<1x64x1xf32> to vector<64x1xf32>
    %113 = vector.broadcast %112 : vector<64x1xf32> to vector<64x128xf32>
    %114 = arith.addf %110, %113 : vector<64x128xf32>
    %c1_60 = arith.constant 1 : index
    %c1_61 = arith.constant 1 : index
    %c0_62 = arith.constant 0 : index
    %c0_63 = arith.constant 0 : index
    %115 = vector.load %arg7[%c1_60, %c1_61, %c0_62, %c0_63] : memref<3x3x64x32xbf16, #tpu.memory_space<vmem>>, vector<1x1x64x32xbf16>
    %116 = vector.shape_cast %115 : vector<1x1x64x32xbf16> to vector<64x32xbf16>
    %117 = arith.truncf %90 : vector<32x128xf32> to vector<32x128xbf16>
    %cst_64 = arith.constant dense<0.000000e+00> : vector<64x128xf32>
    %118 = tpu.matmul %116, %117, %cst_64 {dimension_numbers = #tpu.dot_dimension_numbers<[1], [0], [0], [1], [0, 0, 1, 1], [], []>} : vector<64x32xbf16>, vector<32x128xbf16>, vector<64x128xf32> -> vector<64x128xf32>
    %119 = arith.addf %114, %118 : vector<64x128xf32>
    %c127_i32_65 = arith.constant 127 : i32
    %120 = tpu.dynamic_rotate %90 by %c127_i32_65 dim 1 : vector<32x128xf32>, i32 -> vector<32x128xf32>
    %c1_i32_66 = arith.constant 1 : i32
    %121 = vector.broadcast %c1_i32_66 : i32 to vector<1x128xi32>
    %122 = arith.addi %23, %121 : vector<1x128xi32>
    %c0_i32_67 = arith.constant 0 : i32
    %123 = vector.broadcast %c0_i32_67 : i32 to vector<1x128xi32>
    %124 = arith.cmpi sge, %122, %123 : vector<1x128xi32>
    %c1_i32_68 = arith.constant 1 : i32
    %125 = vector.broadcast %c1_i32_68 : i32 to vector<1x128xi32>
    %126 = arith.addi %23, %125 : vector<1x128xi32>
    %c128_i32_69 = arith.constant 128 : i32
    %127 = vector.broadcast %c128_i32_69 : i32 to vector<1x128xi32>
    %128 = arith.cmpi slt, %126, %127 : vector<1x128xi32>
    %129 = arith.andi %124, %128 : vector<1x128xi1>
    %cst_70 = arith.constant 0.000000e+00 : f32
    %130 = vector.shape_cast %129 : vector<1x128xi1> to vector<1x128xi1>
    %131 = vector.broadcast %130 : vector<1x128xi1> to vector<32x128xi1>
    %132 = vector.broadcast %cst_70 : f32 to vector<32x128xf32>
    %133 = arith.select %131, %120, %132 : vector<32x128xi1>, vector<32x128xf32>
    %c1_71 = arith.constant 1 : index
    %c2_72 = arith.constant 2 : index
    %c0_73 = arith.constant 0 : index
    %c0_74 = arith.constant 0 : index
    %134 = vector.load %arg7[%c1_71, %c2_72, %c0_73, %c0_74] : memref<3x3x64x32xbf16, #tpu.memory_space<vmem>>, vector<1x1x64x32xbf16>
    %135 = vector.shape_cast %134 : vector<1x1x64x32xbf16> to vector<64x32xbf16>
    %136 = arith.truncf %133 : vector<32x128xf32> to vector<32x128xbf16>
    %cst_75 = arith.constant dense<0.000000e+00> : vector<64x128xf32>
    %137 = tpu.matmul %135, %136, %cst_75 {dimension_numbers = #tpu.dot_dimension_numbers<[1], [0], [0], [1], [0, 0, 1, 1], [], []>} : vector<64x32xbf16>, vector<32x128xbf16>, vector<64x128xf32> -> vector<64x128xf32>
    %138 = arith.addf %119, %137 : vector<64x128xf32>
    %139 = vector.extract_strided_slice %138 {offsets = [0, 0], sizes = [32, 128], strides = [1, 1]} : vector<64x128xf32> to vector<32x128xf32>
    %140 = math.tanh %139 : vector<32x128xf32>
    %141 = vector.extract_strided_slice %138 {offsets = [32, 0], sizes = [32, 128], strides = [1, 1]} : vector<64x128xf32> to vector<32x128xf32>
    %142 = arith.negf %141 : vector<32x128xf32>
    %143 = math.exp %142 : vector<32x128xf32>
    %cst_76 = arith.constant 1.000000e+00 : f32
    %144 = vector.broadcast %cst_76 : f32 to vector<32x128xf32>
    %145 = arith.addf %144, %143 : vector<32x128xf32>
    %146 = arith.divf %144, %145 : vector<32x128xf32>
    %147 = arith.mulf %140, %146 : vector<32x128xf32>
    %c1_77 = arith.constant 1 : index
    %c0_78 = arith.constant 0 : index
    %c0_79 = arith.constant 0 : index
    %148 = vector.load %arg9[%c1_77, %c0_78, %c0_79] : memref<3x64x32xbf16, #tpu.memory_space<vmem>>, vector<1x64x32xbf16>
    %149 = vector.shape_cast %148 : vector<1x64x32xbf16> to vector<64x32xbf16>
    %150 = arith.truncf %147 : vector<32x128xf32> to vector<32x128xbf16>
    %cst_80 = arith.constant dense<0.000000e+00> : vector<64x128xf32>
    %151 = tpu.matmul %149, %150, %cst_80 {dimension_numbers = #tpu.dot_dimension_numbers<[1], [0], [0], [1], [0, 0, 1, 1], [], []>} : vector<64x32xbf16>, vector<32x128xbf16>, vector<64x128xf32> -> vector<64x128xf32>
    %c1_81 = arith.constant 1 : index
    %c0_82 = arith.constant 0 : index
    %c0_83 = arith.constant 0 : index
    %152 = vector.load %arg10[%c1_81, %c0_82, %c0_83] : memref<3x64x1xf32, #tpu.memory_space<vmem>>, vector<1x64x1xf32>
    %153 = vector.shape_cast %152 : vector<1x64x1xf32> to vector<64x1xf32>
    %154 = vector.broadcast %153 : vector<64x1xf32> to vector<64x128xf32>
    %155 = arith.addf %151, %154 : vector<64x128xf32>
    %156 = vector.extract_strided_slice %155 {offsets = [0, 0], sizes = [32, 128], strides = [1, 1]} : vector<64x128xf32> to vector<32x128xf32>
    %157 = arith.addf %90, %156 : vector<32x128xf32>
    %158 = vector.broadcast %1 : vector<1x128xf32> to vector<32x128xf32>
    %159 = arith.mulf %157, %158 : vector<32x128xf32>
    %160 = vector.extract_strided_slice %155 {offsets = [32, 0], sizes = [32, 128], strides = [1, 1]} : vector<64x128xf32> to vector<32x128xf32>
    %161 = arith.addf %92, %160 : vector<32x128xf32>
    %c1_i32_84 = arith.constant 1 : i32
    %162 = tpu.dynamic_rotate %159 by %c1_i32_84 dim 1 : vector<32x128xf32>, i32 -> vector<32x128xf32>
    %c-1_i32_85 = arith.constant -1 : i32
    %163 = vector.broadcast %c-1_i32_85 : i32 to vector<1x128xi32>
    %164 = arith.addi %23, %163 : vector<1x128xi32>
    %c0_i32_86 = arith.constant 0 : i32
    %165 = vector.broadcast %c0_i32_86 : i32 to vector<1x128xi32>
    %166 = arith.cmpi sge, %164, %165 : vector<1x128xi32>
    %c-1_i32_87 = arith.constant -1 : i32
    %167 = vector.broadcast %c-1_i32_87 : i32 to vector<1x128xi32>
    %168 = arith.addi %23, %167 : vector<1x128xi32>
    %c128_i32_88 = arith.constant 128 : i32
    %169 = vector.broadcast %c128_i32_88 : i32 to vector<1x128xi32>
    %170 = arith.cmpi slt, %168, %169 : vector<1x128xi32>
    %171 = arith.andi %166, %170 : vector<1x128xi1>
    %cst_89 = arith.constant 0.000000e+00 : f32
    %172 = vector.shape_cast %171 : vector<1x128xi1> to vector<1x128xi1>
    %173 = vector.broadcast %172 : vector<1x128xi1> to vector<32x128xi1>
    %174 = vector.broadcast %cst_89 : f32 to vector<32x128xf32>
    %175 = arith.select %173, %162, %174 : vector<32x128xi1>, vector<32x128xf32>
    %c2_90 = arith.constant 2 : index
    %c0_91 = arith.constant 0 : index
    %c0_92 = arith.constant 0 : index
    %c0_93 = arith.constant 0 : index
    %176 = vector.load %arg7[%c2_90, %c0_91, %c0_92, %c0_93] : memref<3x3x64x32xbf16, #tpu.memory_space<vmem>>, vector<1x1x64x32xbf16>
    %177 = vector.shape_cast %176 : vector<1x1x64x32xbf16> to vector<64x32xbf16>
    %178 = arith.truncf %175 : vector<32x128xf32> to vector<32x128xbf16>
    %cst_94 = arith.constant dense<0.000000e+00> : vector<64x128xf32>
    %179 = tpu.matmul %177, %178, %cst_94 {dimension_numbers = #tpu.dot_dimension_numbers<[1], [0], [0], [1], [0, 0, 1, 1], [], []>} : vector<64x32xbf16>, vector<32x128xbf16>, vector<64x128xf32> -> vector<64x128xf32>
    %c2_95 = arith.constant 2 : index
    %c0_96 = arith.constant 0 : index
    %c0_97 = arith.constant 0 : index
    %180 = vector.load %arg8[%c2_95, %c0_96, %c0_97] : memref<3x64x1xf32, #tpu.memory_space<vmem>>, vector<1x64x1xf32>
    %181 = vector.shape_cast %180 : vector<1x64x1xf32> to vector<64x1xf32>
    %182 = vector.broadcast %181 : vector<64x1xf32> to vector<64x128xf32>
    %183 = arith.addf %179, %182 : vector<64x128xf32>
    %c2_98 = arith.constant 2 : index
    %c1_99 = arith.constant 1 : index
    %c0_100 = arith.constant 0 : index
    %c0_101 = arith.constant 0 : index
    %184 = vector.load %arg7[%c2_98, %c1_99, %c0_100, %c0_101] : memref<3x3x64x32xbf16, #tpu.memory_space<vmem>>, vector<1x1x64x32xbf16>
    %185 = vector.shape_cast %184 : vector<1x1x64x32xbf16> to vector<64x32xbf16>
    %186 = arith.truncf %159 : vector<32x128xf32> to vector<32x128xbf16>
    %cst_102 = arith.constant dense<0.000000e+00> : vector<64x128xf32>
    %187 = tpu.matmul %185, %186, %cst_102 {dimension_numbers = #tpu.dot_dimension_numbers<[1], [0], [0], [1], [0, 0, 1, 1], [], []>} : vector<64x32xbf16>, vector<32x128xbf16>, vector<64x128xf32> -> vector<64x128xf32>
    %188 = arith.addf %183, %187 : vector<64x128xf32>
    %c127_i32_103 = arith.constant 127 : i32
    %189 = tpu.dynamic_rotate %159 by %c127_i32_103 dim 1 : vector<32x128xf32>, i32 -> vector<32x128xf32>
    %c1_i32_104 = arith.constant 1 : i32
    %190 = vector.broadcast %c1_i32_104 : i32 to vector<1x128xi32>
    %191 = arith.addi %23, %190 : vector<1x128xi32>
    %c0_i32_105 = arith.constant 0 : i32
    %192 = vector.broadcast %c0_i32_105 : i32 to vector<1x128xi32>
    %193 = arith.cmpi sge, %191, %192 : vector<1x128xi32>
    %c1_i32_106 = arith.constant 1 : i32
    %194 = vector.broadcast %c1_i32_106 : i32 to vector<1x128xi32>
    %195 = arith.addi %23, %194 : vector<1x128xi32>
    %c128_i32_107 = arith.constant 128 : i32
    %196 = vector.broadcast %c128_i32_107 : i32 to vector<1x128xi32>
    %197 = arith.cmpi slt, %195, %196 : vector<1x128xi32>
    %198 = arith.andi %193, %197 : vector<1x128xi1>
    %cst_108 = arith.constant 0.000000e+00 : f32
    %199 = vector.shape_cast %198 : vector<1x128xi1> to vector<1x128xi1>
    %200 = vector.broadcast %199 : vector<1x128xi1> to vector<32x128xi1>
    %201 = vector.broadcast %cst_108 : f32 to vector<32x128xf32>
    %202 = arith.select %200, %189, %201 : vector<32x128xi1>, vector<32x128xf32>
    %c2_109 = arith.constant 2 : index
    %c2_110 = arith.constant 2 : index
    %c0_111 = arith.constant 0 : index
    %c0_112 = arith.constant 0 : index
    %203 = vector.load %arg7[%c2_109, %c2_110, %c0_111, %c0_112] : memref<3x3x64x32xbf16, #tpu.memory_space<vmem>>, vector<1x1x64x32xbf16>
    %204 = vector.shape_cast %203 : vector<1x1x64x32xbf16> to vector<64x32xbf16>
    %205 = arith.truncf %202 : vector<32x128xf32> to vector<32x128xbf16>
    %cst_113 = arith.constant dense<0.000000e+00> : vector<64x128xf32>
    %206 = tpu.matmul %204, %205, %cst_113 {dimension_numbers = #tpu.dot_dimension_numbers<[1], [0], [0], [1], [0, 0, 1, 1], [], []>} : vector<64x32xbf16>, vector<32x128xbf16>, vector<64x128xf32> -> vector<64x128xf32>
    %207 = arith.addf %188, %206 : vector<64x128xf32>
    %208 = vector.extract_strided_slice %207 {offsets = [0, 0], sizes = [32, 128], strides = [1, 1]} : vector<64x128xf32> to vector<32x128xf32>
    %209 = math.tanh %208 : vector<32x128xf32>
    %210 = vector.extract_strided_slice %207 {offsets = [32, 0], sizes = [32, 128], strides = [1, 1]} : vector<64x128xf32> to vector<32x128xf32>
    %211 = arith.negf %210 : vector<32x128xf32>
    %212 = math.exp %211 : vector<32x128xf32>
    %cst_114 = arith.constant 1.000000e+00 : f32
    %213 = vector.broadcast %cst_114 : f32 to vector<32x128xf32>
    %214 = arith.addf %213, %212 : vector<32x128xf32>
    %215 = arith.divf %213, %214 : vector<32x128xf32>
    %216 = arith.mulf %209, %215 : vector<32x128xf32>
    %c2_115 = arith.constant 2 : index
    %c0_116 = arith.constant 0 : index
    %c0_117 = arith.constant 0 : index
    %217 = vector.load %arg9[%c2_115, %c0_116, %c0_117] : memref<3x64x32xbf16, #tpu.memory_space<vmem>>, vector<1x64x32xbf16>
    %218 = vector.shape_cast %217 : vector<1x64x32xbf16> to vector<64x32xbf16>
    %219 = arith.truncf %216 : vector<32x128xf32> to vector<32x128xbf16>
    %cst_118 = arith.constant dense<0.000000e+00> : vector<64x128xf32>
    %220 = tpu.matmul %218, %219, %cst_118 {dimension_numbers = #tpu.dot_dimension_numbers<[1], [0], [0], [1], [0, 0, 1, 1], [], []>} : vector<64x32xbf16>, vector<32x128xbf16>, vector<64x128xf32> -> vector<64x128xf32>
    %c2_119 = arith.constant 2 : index
    %c0_120 = arith.constant 0 : index
    %c0_121 = arith.constant 0 : index
    %221 = vector.load %arg10[%c2_119, %c0_120, %c0_121] : memref<3x64x1xf32, #tpu.memory_space<vmem>>, vector<1x64x1xf32>
    %222 = vector.shape_cast %221 : vector<1x64x1xf32> to vector<64x1xf32>
    %223 = vector.broadcast %222 : vector<64x1xf32> to vector<64x128xf32>
    %224 = arith.addf %220, %223 : vector<64x128xf32>
    %225 = vector.extract_strided_slice %224 {offsets = [32, 0], sizes = [32, 128], strides = [1, 1]} : vector<64x128xf32> to vector<32x128xf32>
    %226 = arith.addf %161, %225 : vector<32x128xf32>
    %227 = vector.broadcast %1 : vector<1x128xf32> to vector<32x128xf32>
    %228 = arith.mulf %226, %227 : vector<32x128xf32>
    %c0_122 = arith.constant 0 : index
    %c0_123 = arith.constant 0 : index
    %229 = vector.load %arg11[%c0_122, %c0_123] : memref<8x32xbf16, #tpu.memory_space<vmem>>, vector<8x32xbf16>
    %230 = arith.truncf %228 : vector<32x128xf32> to vector<32x128xbf16>
    %cst_124 = arith.constant dense<0.000000e+00> : vector<8x128xf32>
    %231 = tpu.matmul %229, %230, %cst_124 {dimension_numbers = #tpu.dot_dimension_numbers<[1], [0], [0], [1], [0, 0, 1, 1], [], []>} : vector<8x32xbf16>, vector<32x128xbf16>, vector<8x128xf32> -> vector<8x128xf32>
    %c0_125 = arith.constant 0 : index
    %c0_126 = arith.constant 0 : index
    %232 = vector.load %arg12[%c0_125, %c0_126] : memref<8x1xf32, #tpu.memory_space<vmem>>, vector<8x1xf32>
    %233 = vector.broadcast %232 : vector<8x1xf32> to vector<8x128xf32>
    %234 = arith.addf %231, %233 : vector<8x128xf32>
    %235 = vector.extract_strided_slice %234 {offsets = [0, 0], sizes = [4, 128], strides = [1, 1]} : vector<8x128xf32> to vector<4x128xf32>
    %236 = vector.extract_strided_slice %234 {offsets = [4, 0], sizes = [4, 128], strides = [1, 1]} : vector<8x128xf32> to vector<4x128xf32>
    %237 = math.exp %236 : vector<4x128xf32>
    %238 = arith.mulf %237, %13 : vector<4x128xf32>
    %239 = arith.addf %235, %238 : vector<4x128xf32>
    %240 = vector.broadcast %1 : vector<1x128xf32> to vector<4x128xf32>
    %241 = arith.mulf %239, %240 : vector<4x128xf32>
    %c0_127 = arith.constant 0 : index
    %c0_128 = arith.constant 0 : index
    %c0_129 = arith.constant 0 : index
    %242 = vector.load %arg13[%c0_127, %c0_128, %c0_129] : memref<1x8x128xf32, #tpu.memory_space<vmem>>, vector<1x4x128xf32>
    %243 = vector.shape_cast %242 : vector<1x4x128xf32> to vector<4x128xf32>
    %244 = vector.shape_cast %12 : vector<4x128xf32> to vector<1x4x128xf32>
    tpu.vector_store %arg13[%c0_127, %c0_128, %c0_129], %244 {strides = array<i32>} : memref<1x8x128xf32, #tpu.memory_space<vmem>>, vector<1x4x128xf32>,
    %c0_130 = arith.constant 0 : index
    %c4 = arith.constant 4 : index
    %c0_131 = arith.constant 0 : index
    %245 = vector.load %arg13[%c0_130, %c4, %c0_131] : memref<1x8x128xf32, #tpu.memory_space<vmem>>, vector<1x4x128xf32>
    %246 = vector.shape_cast %245 : vector<1x4x128xf32> to vector<4x128xf32>
    %247 = vector.shape_cast %241 : vector<4x128xf32> to vector<1x4x128xf32>
    tpu.vector_store %arg13[%c0_130, %c4, %c0_131], %247 {strides = array<i32>} : memref<1x8x128xf32, #tpu.memory_space<vmem>>, vector<1x4x128xf32>,
    %248 = vector.broadcast %1 : vector<1x128xf32> to vector<4x128xf32>
    %249 = arith.mulf %236, %248 : vector<4x128xf32>
    %250 = vector.shape_cast %249 : vector<4x128xf32> to vector<1x4x128xf32>
    %cst_132 = arith.constant dense<0.000000e+00> : vector<1xf32>
    %251 = vector.multi_reduction <add>, %250, %cst_132 [1, 2] : vector<1x4x128xf32> to vector<1xf32>
    %252 = vector.shape_cast %251 : vector<1xf32> to vector<1x1x1xf32>
    %253 = vector.extract %252[0, 0, 0] : f32 from vector<1x1x1xf32>
    %254 = vector.broadcast %253 : f32 to vector<1x1xf32>
    %255 = vector.shape_cast %254 : vector<1x1xf32> to vector<1x1xf32>
    %256 = vector.broadcast %255 : vector<1x1xf32> to vector<1x128xf32>
    %c0_133 = arith.constant 0 : index
    %c0_134 = arith.constant 0 : index
    %c0_135 = arith.constant 0 : index
    %257 = vector.load %arg14[%c0_133, %c0_134, %c0_135] : memref<1x1x128xf32, #tpu.memory_space<vmem>>, vector<1x1x128xf32>
    %258 = vector.shape_cast %257 : vector<1x1x128xf32> to vector<1x128xf32>
    %259 = vector.shape_cast %256 : vector<1x128xf32> to vector<1x1x128xf32>
    tpu.vector_store %arg14[%c0_133, %c0_134, %c0_135], %259 {strides = array<i32>} : memref<1x1x128xf32, #tpu.memory_space<vmem>>, vector<1x1x128xf32>,
    return
  }
  func.func @transform_0(%arg0: i32) -> (i32, i32, i32) {
    %c0_i32 = arith.constant 0 : i32
    %c0_i32_0 = arith.constant 0 : i32
    %c0_i32_1 = arith.constant 0 : i32
    return %arg0, %c0_i32, %c0_i32_0 : i32, i32, i32
  }
  func.func @transform_1(%arg0: i32) -> (i32, i32, i32) {
    %c0_i32 = arith.constant 0 : i32
    %c0_i32_0 = arith.constant 0 : i32
    %c0_i32_1 = arith.constant 0 : i32
    return %arg0, %c0_i32, %c0_i32_0 : i32, i32, i32
  }
  func.func @transform_2(%arg0: i32) -> (i32, i32) {
    %c0_i32 = arith.constant 0 : i32
    %c0_i32_0 = arith.constant 0 : i32
    %c0_i32_1 = arith.constant 0 : i32
    return %c0_i32, %c0_i32_0 : i32, i32
  }
  func.func @transform_3(%arg0: i32) -> (i32, i32) {
    %c0_i32 = arith.constant 0 : i32
    %c0_i32_0 = arith.constant 0 : i32
    %c0_i32_1 = arith.constant 0 : i32
    return %c0_i32, %c0_i32_0 : i32, i32
  }
  func.func @transform_4(%arg0: i32) -> (i32, i32) {
    %c0_i32 = arith.constant 0 : i32
    %c0_i32_0 = arith.constant 0 : i32
    %c0_i32_1 = arith.constant 0 : i32
    return %c0_i32, %c0_i32_0 : i32, i32
  }
  func.func @transform_5(%arg0: i32) -> (i32, i32) {
    %c0_i32 = arith.constant 0 : i32
    %c0_i32_0 = arith.constant 0 : i32
    %c0_i32_1 = arith.constant 0 : i32
    return %c0_i32, %c0_i32_0 : i32, i32
  }
  func.func @transform_6(%arg0: i32) -> (i32, i32, i32, i32) {
    %c0_i32 = arith.constant 0 : i32
    %c0_i32_0 = arith.constant 0 : i32
    %c0_i32_1 = arith.constant 0 : i32
    %c0_i32_2 = arith.constant 0 : i32
    %c0_i32_3 = arith.constant 0 : i32
    return %c0_i32, %c0_i32_0, %c0_i32_1, %c0_i32_2 : i32, i32, i32, i32
  }
  func.func @transform_7(%arg0: i32) -> (i32, i32, i32) {
    %c0_i32 = arith.constant 0 : i32
    %c0_i32_0 = arith.constant 0 : i32
    %c0_i32_1 = arith.constant 0 : i32
    %c0_i32_2 = arith.constant 0 : i32
    return %c0_i32, %c0_i32_0, %c0_i32_1 : i32, i32, i32
  }
  func.func @transform_8(%arg0: i32) -> (i32, i32, i32) {
    %c0_i32 = arith.constant 0 : i32
    %c0_i32_0 = arith.constant 0 : i32
    %c0_i32_1 = arith.constant 0 : i32
    %c0_i32_2 = arith.constant 0 : i32
    return %c0_i32, %c0_i32_0, %c0_i32_1 : i32, i32, i32
  }
  func.func @transform_9(%arg0: i32) -> (i32, i32, i32) {
    %c0_i32 = arith.constant 0 : i32
    %c0_i32_0 = arith.constant 0 : i32
    %c0_i32_1 = arith.constant 0 : i32
    %c0_i32_2 = arith.constant 0 : i32
    return %c0_i32, %c0_i32_0, %c0_i32_1 : i32, i32, i32
  }
  func.func @transform_10(%arg0: i32) -> (i32, i32) {
    %c0_i32 = arith.constant 0 : i32
    %c0_i32_0 = arith.constant 0 : i32
    %c0_i32_1 = arith.constant 0 : i32
    return %c0_i32, %c0_i32_0 : i32, i32
  }
  func.func @transform_11(%arg0: i32) -> (i32, i32) {
    %c0_i32 = arith.constant 0 : i32
    %c0_i32_0 = arith.constant 0 : i32
    %c0_i32_1 = arith.constant 0 : i32
    return %c0_i32, %c0_i32_0 : i32, i32
  }
  func.func @transform_12(%arg0: i32) -> (i32, i32, i32) {
    %c0_i32 = arith.constant 0 : i32
    %c0_i32_0 = arith.constant 0 : i32
    %c0_i32_1 = arith.constant 0 : i32
    return %arg0, %c0_i32, %c0_i32_0 : i32, i32, i32
  }
  func.func @transform_13(%arg0: i32) -> (i32, i32, i32) {
    %c0_i32 = arith.constant 0 : i32
    %c0_i32_0 = arith.constant 0 : i32
    %c0_i32_1 = arith.constant 0 : i32
    return %arg0, %c0_i32, %c0_i32_0 : i32, i32, i32
  }
}

module attributes {stable_mosaic.version = 11 : i64} {
  func.func @_flow_block_kernel(%arg0: i32, %arg1: memref<1x8x128xf32, #tpu.memory_space<vmem>>, %arg2: memref<1x1x128xf32, #tpu.memory_space<vmem>>, %arg3: memref<8x8xbf16, #tpu.memory_space<vmem>>, %arg4: memref<8x1xf32, #tpu.memory_space<vmem>>, %arg5: memref<32x4xbf16, #tpu.memory_space<vmem>>, %arg6: memref<32x1xf32, #tpu.memory_space<vmem>>, %arg7: memref<3x3x64x32xbf16, #tpu.memory_space<vmem>>, %arg8: memref<3x64x1xf32, #tpu.memory_space<vmem>>, %arg9: memref<3x64x32xbf16, #tpu.memory_space<vmem>>, %arg10: memref<3x64x1xf32, #tpu.memory_space<vmem>>, %arg11: memref<8x32xbf16, #tpu.memory_space<vmem>>, %arg12: memref<8x1xf32, #tpu.memory_space<vmem>>, %arg13: memref<1x8x128xf32, #tpu.memory_space<vmem>>, %arg14: memref<1x1x128xf32, #tpu.memory_space<vmem>>) attributes {dimension_semantics = [#tpu.dimension_semantics<parallel>], iteration_bounds = array<i64: 2>, scalar_prefetch = 0 : i64, scratch_operands = 0 : i64, tpu.core_type = #tpu.core_type<tc>, window_params = [{transform_indices = @transform_0, window_bounds = array<i64: 1, 8, 128>}, {transform_indices = @transform_1, window_bounds = array<i64: 1, 1, 128>}, {pipeline_mode = #tpu.pipeline_mode<synchronous>, transform_indices = @transform_2, window_bounds = array<i64: 8, 8>}, {pipeline_mode = #tpu.pipeline_mode<synchronous>, transform_indices = @transform_3, window_bounds = array<i64: 8, 1>}, {pipeline_mode = #tpu.pipeline_mode<synchronous>, transform_indices = @transform_4, window_bounds = array<i64: 32, 4>}, {pipeline_mode = #tpu.pipeline_mode<synchronous>, transform_indices = @transform_5, window_bounds = array<i64: 32, 1>}, {pipeline_mode = #tpu.pipeline_mode<synchronous>, transform_indices = @transform_6, window_bounds = array<i64: 3, 3, 64, 32>}, {pipeline_mode = #tpu.pipeline_mode<synchronous>, transform_indices = @transform_7, window_bounds = array<i64: 3, 64, 1>}, {pipeline_mode = #tpu.pipeline_mode<synchronous>, transform_indices = @transform_8, window_bounds = array<i64: 3, 64, 32>}, {pipeline_mode = #tpu.pipeline_mode<synchronous>, transform_indices = @transform_9, window_bounds = array<i64: 3, 64, 1>}, {pipeline_mode = #tpu.pipeline_mode<synchronous>, transform_indices = @transform_10, window_bounds = array<i64: 8, 32>}, {pipeline_mode = #tpu.pipeline_mode<synchronous>, transform_indices = @transform_11, window_bounds = array<i64: 8, 1>}, {transform_indices = @transform_12, window_bounds = array<i64: 1, 8, 128>}, {transform_indices = @transform_13, window_bounds = array<i64: 1, 1, 128>}]} {
    %c0 = arith.constant 0 : index
    %c0_0 = arith.constant 0 : index
    %c0_1 = arith.constant 0 : index
    %0 = vector.load %arg2[%c0, %c0_0, %c0_1] : memref<1x1x128xf32, #tpu.memory_space<vmem>>, vector<1x1x128xf32>
    %1 = vector.shape_cast %0 : vector<1x1x128xf32> to vector<1x128xf32>
    %c0_2 = arith.constant 0 : index
    %c0_3 = arith.constant 0 : index
    %c0_4 = arith.constant 0 : index
    %2 = vector.load %arg1[%c0_2, %c0_3, %c0_4] : memref<1x8x128xf32, #tpu.memory_space<vmem>>, vector<1x8x128xf32>
    %3 = vector.shape_cast %2 : vector<1x8x128xf32> to vector<8x128xf32>
    %c0_5 = arith.constant 0 : index
    %c0_6 = arith.constant 0 : index
    %4 = vector.load %arg3[%c0_5, %c0_6] : memref<8x8xbf16, #tpu.memory_space<vmem>>, vector<8x8xbf16>
    %5 = arith.truncf %3 : vector<8x128xf32> to vector<8x128xbf16>
    %cst = arith.constant dense<0.000000e+00> : vector<8x128xf32>
    %6 = tpu.matmul %4, %5, %cst {dimension_numbers = #tpu.dot_dimension_numbers<[1], [0], [0], [1], [0, 0, 1, 1], [], []>} : vector<8x8xbf16>, vector<8x128xbf16>, vector<8x128xf32> -> vector<8x128xf32>
    %c0_7 = arith.constant 0 : index
    %c0_8 = arith.constant 0 : index
    %7 = vector.load %arg4[%c0_7, %c0_8] : memref<8x1xf32, #tpu.memory_space<vmem>>, vector<8x1xf32>
    %8 = vector.broadcast %7 : vector<8x1xf32> to vector<8x128xf32>
    %9 = arith.addf %6, %8 : vector<8x128xf32>
    %10 = vector.broadcast %1 : vector<1x128xf32> to vector<8x128xf32>
    %11 = arith.mulf %9, %10 : vector<8x128xf32>
    %12 = vector.extract_strided_slice %11 {offsets = [0, 0], sizes = [4, 128], strides = [1, 1]} : vector<8x128xf32> to vector<4x128xf32>
    %13 = vector.extract_strided_slice %11 {offsets = [4, 0], sizes = [4, 128], strides = [1, 1]} : vector<8x128xf32> to vector<4x128xf32>
    %c0_9 = arith.constant 0 : index
    %c0_10 = arith.constant 0 : index
    %14 = vector.load %arg5[%c0_9, %c0_10] : memref<32x4xbf16, #tpu.memory_space<vmem>>, vector<32x4xbf16>
    %15 = arith.truncf %12 : vector<4x128xf32> to vector<4x128xbf16>
    %cst_11 = arith.constant dense<0.000000e+00> : vector<32x128xf32>
    %16 = tpu.matmul %14, %15, %cst_11 {dimension_numbers = #tpu.dot_dimension_numbers<[1], [0], [0], [1], [0, 0, 1, 1], [], []>} : vector<32x4xbf16>, vector<4x128xbf16>, vector<32x128xf32> -> vector<32x128xf32>
    %c0_12 = arith.constant 0 : index
    %c0_13 = arith.constant 0 : index
    %17 = vector.load %arg6[%c0_12, %c0_13] : memref<32x1xf32, #tpu.memory_space<vmem>>, vector<32x1xf32>
    %18 = vector.broadcast %17 : vector<32x1xf32> to vector<32x128xf32>
    %19 = arith.addf %16, %18 : vector<32x128xf32>
    %20 = vector.broadcast %1 : vector<1x128xf32> to vector<32x128xf32>
    %21 = arith.mulf %19, %20 : vector<32x128xf32>
    %cst_14 = arith.constant 0.000000e+00 : f32
    %22 = vector.broadcast %cst_14 : f32 to vector<32x128xf32>
    %23 = tpu.iota {dimensions = array<i32: 1>} : vector<1x128xi32>
    %c1_i32 = arith.constant 1 : i32
    %24 = tpu.dynamic_rotate %21 by %c1_i32 dim 1 : vector<32x128xf32>, i32 -> vector<32x128xf32>
    %c-1_i32 = arith.constant -1 : i32
    %25 = vector.broadcast %c-1_i32 : i32 to vector<1x128xi32>
    %26 = arith.addi %23, %25 : vector<1x128xi32>
    %c0_i32 = arith.constant 0 : i32
    %27 = vector.broadcast %c0_i32 : i32 to vector<1x128xi32>
    %28 = arith.cmpi sge, %26, %27 : vector<1x128xi32>
    %c-1_i32_15 = arith.constant -1 : i32
    %29 = vector.broadcast %c-1_i32_15 : i32 to vector<1x128xi32>
    %30 = arith.addi %23, %29 : vector<1x128xi32>
    %c128_i32 = arith.constant 128 : i32
    %31 = vector.broadcast %c128_i32 : i32 to vector<1x128xi32>
    %32 = arith.cmpi slt, %30, %31 : vector<1x128xi32>
    %33 = arith.andi %28, %32 : vector<1x128xi1>
    %cst_16 = arith.constant 0.000000e+00 : f32
    %34 = vector.shape_cast %33 : vector<1x128xi1> to vector<1x128xi1>
    %35 = vector.broadcast %34 : vector<1x128xi1> to vector<32x128xi1>
    %36 = vector.broadcast %cst_16 : f32 to vector<32x128xf32>
    %37 = arith.select %35, %24, %36 : vector<32x128xi1>, vector<32x128xf32>
    %c0_17 = arith.constant 0 : index
    %c0_18 = arith.constant 0 : index
    %c0_19 = arith.constant 0 : index
    %c0_20 = arith.constant 0 : index
    %38 = vector.load %arg7[%c0_17, %c0_18, %c0_19, %c0_20] : memref<3x3x64x32xbf16, #tpu.memory_space<vmem>>, vector<1x1x64x32xbf16>
    %39 = vector.shape_cast %38 : vector<1x1x64x32xbf16> to vector<64x32xbf16>
    %40 = arith.truncf %37 : vector<32x128xf32> to vector<32x128xbf16>
    %cst_21 = arith.constant dense<0.000000e+00> : vector<64x128xf32>
    %41 = tpu.matmul %39, %40, %cst_21 {dimension_numbers = #tpu.dot_dimension_numbers<[1], [0], [0], [1], [0, 0, 1, 1], [], []>} : vector<64x32xbf16>, vector<32x128xbf16>, vector<64x128xf32> -> vector<64x128xf32>
    %c0_22 = arith.constant 0 : index
    %c0_23 = arith.constant 0 : index
    %c0_24 = arith.constant 0 : index
    %42 = vector.load %arg8[%c0_22, %c0_23, %c0_24] : memref<3x64x1xf32, #tpu.memory_space<vmem>>, vector<1x64x1xf32>
    %43 = vector.shape_cast %42 : vector<1x64x1xf32> to vector<64x1xf32>
    %44 = vector.broadcast %43 : vector<64x1xf32> to vector<64x128xf32>
    %45 = arith.addf %41, %44 : vector<64x128xf32>
    %c0_25 = arith.constant 0 : index
    %c1 = arith.constant 1 : index
    %c0_26 = arith.constant 0 : index
    %c0_27 = arith.constant 0 : index
    %46 = vector.load %arg7[%c0_25, %c1, %c0_26, %c0_27] : memref<3x3x64x32xbf16, #tpu.memory_space<vmem>>, vector<1x1x64x32xbf16>
    %47 = vector.shape_cast %46 : vector<1x1x64x32xbf16> to vector<64x32xbf16>
    %48 = arith.truncf %21 : vector<32x128xf32> to vector<32x128xbf16>
    %cst_28 = arith.constant dense<0.000000e+00> : vector<64x128xf32>
    %49 = tpu.matmul %47, %48, %cst_28 {dimension_numbers = #tpu.dot_dimension_numbers<[1], [0], [0], [1], [0, 0, 1, 1], [], []>} : vector<64x32xbf16>, vector<32x128xbf16>, vector<64x128xf32> -> vector<64x128xf32>
    %50 = arith.addf %45, %49 : vector<64x128xf32>
    %c127_i32 = arith.constant 127 : i32
    %51 = tpu.dynamic_rotate %21 by %c127_i32 dim 1 : vector<32x128xf32>, i32 -> vector<32x128xf32>
    %c1_i32_29 = arith.constant 1 : i32
    %52 = vector.broadcast %c1_i32_29 : i32 to vector<1x128xi32>
    %53 = arith.addi %23, %52 : vector<1x128xi32>
    %c0_i32_30 = arith.constant 0 : i32
    %54 = vector.broadcast %c0_i32_30 : i32 to vector<1x128xi32>
    %55 = arith.cmpi sge, %53, %54 : vector<1x128xi32>
    %c1_i32_31 = arith.constant 1 : i32
    %56 = vector.broadcast %c1_i32_31 : i32 to vector<1x128xi32>
    %57 = arith.addi %23, %56 : vector<1x128xi32>
    %c128_i32_32 = arith.constant 128 : i32
    %58 = vector.broadcast %c128_i32_32 : i32 to vector<1x128xi32>
    %59 = arith.cmpi slt, %57, %58 : vector<1x128xi32>
    %60 = arith.andi %55, %59 : vector<1x128xi1>
    %cst_33 = arith.constant 0.000000e+00 : f32
    %61 = vector.shape_cast %60 : vector<1x128xi1> to vector<1x128xi1>
    %62 = vector.broadcast %61 : vector<1x128xi1> to vector<32x128xi1>
    %63 = vector.broadcast %cst_33 : f32 to vector<32x128xf32>
    %64 = arith.select %62, %51, %63 : vector<32x128xi1>, vector<32x128xf32>
    %c0_34 = arith.constant 0 : index
    %c2 = arith.constant 2 : index
    %c0_35 = arith.constant 0 : index
    %c0_36 = arith.constant 0 : index
    %65 = vector.load %arg7[%c0_34, %c2, %c0_35, %c0_36] : memref<3x3x64x32xbf16, #tpu.memory_space<vmem>>, vector<1x1x64x32xbf16>
    %66 = vector.shape_cast %65 : vector<1x1x64x32xbf16> to vector<64x32xbf16>
    %67 = arith.truncf %64 : vector<32x128xf32> to vector<32x128xbf16>
    %cst_37 = arith.constant dense<0.000000e+00> : vector<64x128xf32>
    %68 = tpu.matmul %66, %67, %cst_37 {dimension_numbers = #tpu.dot_dimension_numbers<[1], [0], [0], [1], [0, 0, 1, 1], [], []>} : vector<64x32xbf16>, vector<32x128xbf16>, vector<64x128xf32> -> vector<64x128xf32>
    %69 = arith.addf %50, %68 : vector<64x128xf32>
    %70 = vector.extract_strided_slice %69 {offsets = [0, 0], sizes = [32, 128], strides = [1, 1]} : vector<64x128xf32> to vector<32x128xf32>
    %71 = math.tanh %70 : vector<32x128xf32>
    %72 = vector.extract_strided_slice %69 {offsets = [32, 0], sizes = [32, 128], strides = [1, 1]} : vector<64x128xf32> to vector<32x128xf32>
    %73 = arith.negf %72 : vector<32x128xf32>
    %74 = math.exp %73 : vector<32x128xf32>
    %cst_38 = arith.constant 1.000000e+00 : f32
    %75 = vector.broadcast %cst_38 : f32 to vector<32x128xf32>
    %76 = arith.addf %75, %74 : vector<32x128xf32>
    %77 = arith.divf %75, %76 : vector<32x128xf32>
    %78 = arith.mulf %71, %77 : vector<32x128xf32>
    %c0_39 = arith.constant 0 : index
    %c0_40 = arith.constant 0 : index
    %c0_41 = arith.constant 0 : index
    %79 = vector.load %arg9[%c0_39, %c0_40, %c0_41] : memref<3x64x32xbf16, #tpu.memory_space<vmem>>, vector<1x64x32xbf16>
    %80 = vector.shape_cast %79 : vector<1x64x32xbf16> to vector<64x32xbf16>
    %81 = arith.truncf %78 : vector<32x128xf32> to vector<32x128xbf16>
    %cst_42 = arith.constant dense<0.000000e+00> : vector<64x128xf32>
    %82 = tpu.matmul %80, %81, %cst_42 {dimension_numbers = #tpu.dot_dimension_numbers<[1], [0], [0], [1], [0, 0, 1, 1], [], []>} : vector<64x32xbf16>, vector<32x128xbf16>, vector<64x128xf32> -> vector<64x128xf32>
    %c0_43 = arith.constant 0 : index
    %c0_44 = arith.constant 0 : index
    %c0_45 = arith.constant 0 : index
    %83 = vector.load %arg10[%c0_43, %c0_44, %c0_45] : memref<3x64x1xf32, #tpu.memory_space<vmem>>, vector<1x64x1xf32>
    %84 = vector.shape_cast %83 : vector<1x64x1xf32> to vector<64x1xf32>
    %85 = vector.broadcast %84 : vector<64x1xf32> to vector<64x128xf32>
    %86 = arith.addf %82, %85 : vector<64x128xf32>
    %87 = vector.extract_strided_slice %86 {offsets = [0, 0], sizes = [32, 128], strides = [1, 1]} : vector<64x128xf32> to vector<32x128xf32>
    %88 = arith.addf %21, %87 : vector<32x128xf32>
    %89 = vector.broadcast %1 : vector<1x128xf32> to vector<32x128xf32>
    %90 = arith.mulf %88, %89 : vector<32x128xf32>
    %91 = vector.extract_strided_slice %86 {offsets = [32, 0], sizes = [32, 128], strides = [1, 1]} : vector<64x128xf32> to vector<32x128xf32>
    %92 = arith.addf %22, %91 : vector<32x128xf32>
    %c1_i32_46 = arith.constant 1 : i32
    %93 = tpu.dynamic_rotate %90 by %c1_i32_46 dim 1 : vector<32x128xf32>, i32 -> vector<32x128xf32>
    %c-1_i32_47 = arith.constant -1 : i32
    %94 = vector.broadcast %c-1_i32_47 : i32 to vector<1x128xi32>
    %95 = arith.addi %23, %94 : vector<1x128xi32>
    %c0_i32_48 = arith.constant 0 : i32
    %96 = vector.broadcast %c0_i32_48 : i32 to vector<1x128xi32>
    %97 = arith.cmpi sge, %95, %96 : vector<1x128xi32>
    %c-1_i32_49 = arith.constant -1 : i32
    %98 = vector.broadcast %c-1_i32_49 : i32 to vector<1x128xi32>
    %99 = arith.addi %23, %98 : vector<1x128xi32>
    %c128_i32_50 = arith.constant 128 : i32
    %100 = vector.broadcast %c128_i32_50 : i32 to vector<1x128xi32>
    %101 = arith.cmpi slt, %99, %100 : vector<1x128xi32>
    %102 = arith.andi %97, %101 : vector<1x128xi1>
    %cst_51 = arith.constant 0.000000e+00 : f32
    %103 = vector.shape_cast %102 : vector<1x128xi1> to vector<1x128xi1>
    %104 = vector.broadcast %103 : vector<1x128xi1> to vector<32x128xi1>
    %105 = vector.broadcast %cst_51 : f32 to vector<32x128xf32>
    %106 = arith.select %104, %93, %105 : vector<32x128xi1>, vector<32x128xf32>
    %c1_52 = arith.constant 1 : index
    %c0_53 = arith.constant 0 : index
    %c0_54 = arith.constant 0 : index
    %c0_55 = arith.constant 0 : index
    %107 = vector.load %arg7[%c1_52, %c0_53, %c0_54, %c0_55] : memref<3x3x64x32xbf16, #tpu.memory_space<vmem>>, vector<1x1x64x32xbf16>
    %108 = vector.shape_cast %107 : vector<1x1x64x32xbf16> to vector<64x32xbf16>
    %109 = arith.truncf %106 : vector<32x128xf32> to vector<32x128xbf16>
    %cst_56 = arith.constant dense<0.000000e+00> : vector<64x128xf32>
    %110 = tpu.matmul %108, %109, %cst_56 {dimension_numbers = #tpu.dot_dimension_numbers<[1], [0], [0], [1], [0, 0, 1, 1], [], []>} : vector<64x32xbf16>, vector<32x128xbf16>, vector<64x128xf32> -> vector<64x128xf32>
    %c1_57 = arith.constant 1 : index
    %c0_58 = arith.constant 0 : index
    %c0_59 = arith.constant 0 : index
    %111 = vector.load %arg8[%c1_57, %c0_58, %c0_59] : memref<3x64x1xf32, #tpu.memory_space<vmem>>, vector<1x64x1xf32>
    %112 = vector.shape_cast %111 : vector<1x64x1xf32> to vector<64x1xf32>
    %113 = vector.broadcast %112 : vector<64x1xf32> to vector<64x128xf32>
    %114 = arith.addf %110, %113 : vector<64x128xf32>
    %c1_60 = arith.constant 1 : index
    %c1_61 = arith.constant 1 : index
    %c0_62 = arith.constant 0 : index
    %c0_63 = arith.constant 0 : index
    %115 = vector.load %arg7[%c1_60, %c1_61, %c0_62, %c0_63] : memref<3x3x64x32xbf16, #tpu.memory_space<vmem>>, vector<1x1x64x32xbf16>
    %116 = vector.shape_cast %115 : vector<1x1x64x32xbf16> to vector<64x32xbf16>
    %117 = arith.truncf %90 : vector<32x128xf32> to vector<32x128xbf16>
    %cst_64 = arith.constant dense<0.000000e+00> : vector<64x128xf32>
    %118 = tpu.matmul %116, %117, %cst_64 {dimension_numbers = #tpu.dot_dimension_numbers<[1], [0], [0], [1], [0, 0, 1, 1], [], []>} : vector<64x32xbf16>, vector<32x128xbf16>, vector<64x128xf32> -> vector<64x128xf32>
    %119 = arith.addf %114, %118 : vector<64x128xf32>
    %c127_i32_65 = arith.constant 127 : i32
    %120 = tpu.dynamic_rotate %90 by %c127_i32_65 dim 1 : vector<32x128xf32>, i32 -> vector<32x128xf32>
    %c1_i32_66 = arith.constant 1 : i32
    %121 = vector.broadcast %c1_i32_66 : i32 to vector<1x128xi32>
    %122 = arith.addi %23, %121 : vector<1x128xi32>
    %c0_i32_67 = arith.constant 0 : i32
    %123 = vector.broadcast %c0_i32_67 : i32 to vector<1x128xi32>
    %124 = arith.cmpi sge, %122, %123 : vector<1x128xi32>
    %c1_i32_68 = arith.constant 1 : i32
    %125 = vector.broadcast %c1_i32_68 : i32 to vector<1x128xi32>
    %126 = arith.addi %23, %125 : vector<1x128xi32>
    %c128_i32_69 = arith.constant 128 : i32
    %127 = vector.broadcast %c128_i32_69 : i32 to vector<1x128xi32>
    %128 = arith.cmpi slt, %126, %127 : vector<1x128xi32>
    %129 = arith.andi %124, %128 : vector<1x128xi1>
    %cst_70 = arith.constant 0.000000e+00 : f32
    %130 = vector.shape_cast %129 : vector<1x128xi1> to vector<1x128xi1>
    %131 = vector.broadcast %130 : vector<1x128xi1> to vector<32x128xi1>
    %132 = vector.broadcast %cst_70 : f32 to vector<32x128xf32>
    %133 = arith.select %131, %120, %132 : vector<32x128xi1>, vector<32x128xf32>
    %c1_71 = arith.constant 1 : index
    %c2_72 = arith.constant 2 : index
    %c0_73 = arith.constant 0 : index
    %c0_74 = arith.constant 0 : index
    %134 = vector.load %arg7[%c1_71, %c2_72, %c0_73, %c0_74] : memref<3x3x64x32xbf16, #tpu.memory_space<vmem>>, vector<1x1x64x32xbf16>
    %135 = vector.shape_cast %134 : vector<1x1x64x32xbf16> to vector<64x32xbf16>
    %136 = arith.truncf %133 : vector<32x128xf32> to vector<32x128xbf16>
    %cst_75 = arith.constant dense<0.000000e+00> : vector<64x128xf32>
    %137 = tpu.matmul %135, %136, %cst_75 {dimension_numbers = #tpu.dot_dimension_numbers<[1], [0], [0], [1], [0, 0, 1, 1], [], []>} : vector<64x32xbf16>, vector<32x128xbf16>, vector<64x128xf32> -> vector<64x128xf32>
    %138 = arith.addf %119, %137 : vector<64x128xf32>
    %139 = vector.extract_strided_slice %138 {offsets = [0, 0], sizes = [32, 128], strides = [1, 1]} : vector<64x128xf32> to vector<32x128xf32>
    %140 = math.tanh %139 : vector<32x128xf32>
    %141 = vector.extract_strided_slice %138 {offsets = [32, 0], sizes = [32, 128], strides = [1, 1]} : vector<64x128xf32> to vector<32x128xf32>
    %142 = arith.negf %141 : vector<32x128xf32>
    %143 = math.exp %142 : vector<32x128xf32>
    %cst_76 = arith.constant 1.000000e+00 : f32
    %144 = vector.broadcast %cst_76 : f32 to vector<32x128xf32>
    %145 = arith.addf %144, %143 : vector<32x128xf32>
    %146 = arith.divf %144, %145 : vector<32x128xf32>
    %147 = arith.mulf %140, %146 : vector<32x128xf32>
    %c1_77 = arith.constant 1 : index
    %c0_78 = arith.constant 0 : index
    %c0_79 = arith.constant 0 : index
    %148 = vector.load %arg9[%c1_77, %c0_78, %c0_79] : memref<3x64x32xbf16, #tpu.memory_space<vmem>>, vector<1x64x32xbf16>
    %149 = vector.shape_cast %148 : vector<1x64x32xbf16> to vector<64x32xbf16>
    %150 = arith.truncf %147 : vector<32x128xf32> to vector<32x128xbf16>
    %cst_80 = arith.constant dense<0.000000e+00> : vector<64x128xf32>
    %151 = tpu.matmul %149, %150, %cst_80 {dimension_numbers = #tpu.dot_dimension_numbers<[1], [0], [0], [1], [0, 0, 1, 1], [], []>} : vector<64x32xbf16>, vector<32x128xbf16>, vector<64x128xf32> -> vector<64x128xf32>
    %c1_81 = arith.constant 1 : index
    %c0_82 = arith.constant 0 : index
    %c0_83 = arith.constant 0 : index
    %152 = vector.load %arg10[%c1_81, %c0_82, %c0_83] : memref<3x64x1xf32, #tpu.memory_space<vmem>>, vector<1x64x1xf32>
    %153 = vector.shape_cast %152 : vector<1x64x1xf32> to vector<64x1xf32>
    %154 = vector.broadcast %153 : vector<64x1xf32> to vector<64x128xf32>
    %155 = arith.addf %151, %154 : vector<64x128xf32>
    %156 = vector.extract_strided_slice %155 {offsets = [0, 0], sizes = [32, 128], strides = [1, 1]} : vector<64x128xf32> to vector<32x128xf32>
    %157 = arith.addf %90, %156 : vector<32x128xf32>
    %158 = vector.broadcast %1 : vector<1x128xf32> to vector<32x128xf32>
    %159 = arith.mulf %157, %158 : vector<32x128xf32>
    %160 = vector.extract_strided_slice %155 {offsets = [32, 0], sizes = [32, 128], strides = [1, 1]} : vector<64x128xf32> to vector<32x128xf32>
    %161 = arith.addf %92, %160 : vector<32x128xf32>
    %c1_i32_84 = arith.constant 1 : i32
    %162 = tpu.dynamic_rotate %159 by %c1_i32_84 dim 1 : vector<32x128xf32>, i32 -> vector<32x128xf32>
    %c-1_i32_85 = arith.constant -1 : i32
    %163 = vector.broadcast %c-1_i32_85 : i32 to vector<1x128xi32>
    %164 = arith.addi %23, %163 : vector<1x128xi32>
    %c0_i32_86 = arith.constant 0 : i32
    %165 = vector.broadcast %c0_i32_86 : i32 to vector<1x128xi32>
    %166 = arith.cmpi sge, %164, %165 : vector<1x128xi32>
    %c-1_i32_87 = arith.constant -1 : i32
    %167 = vector.broadcast %c-1_i32_87 : i32 to vector<1x128xi32>
    %168 = arith.addi %23, %167 : vector<1x128xi32>
    %c128_i32_88 = arith.constant 128 : i32
    %169 = vector.broadcast %c128_i32_88 : i32 to vector<1x128xi32>
    %170 = arith.cmpi slt, %168, %169 : vector<1x128xi32>
    %171 = arith.andi %166, %170 : vector<1x128xi1>
    %cst_89 = arith.constant 0.000000e+00 : f32
    %172 = vector.shape_cast %171 : vector<1x128xi1> to vector<1x128xi1>
    %173 = vector.broadcast %172 : vector<1x128xi1> to vector<32x128xi1>
    %174 = vector.broadcast %cst_89 : f32 to vector<32x128xf32>
    %175 = arith.select %173, %162, %174 : vector<32x128xi1>, vector<32x128xf32>
    %c2_90 = arith.constant 2 : index
    %c0_91 = arith.constant 0 : index
    %c0_92 = arith.constant 0 : index
    %c0_93 = arith.constant 0 : index
    %176 = vector.load %arg7[%c2_90, %c0_91, %c0_92, %c0_93] : memref<3x3x64x32xbf16, #tpu.memory_space<vmem>>, vector<1x1x64x32xbf16>
    %177 = vector.shape_cast %176 : vector<1x1x64x32xbf16> to vector<64x32xbf16>
    %178 = arith.truncf %175 : vector<32x128xf32> to vector<32x128xbf16>
    %cst_94 = arith.constant dense<0.000000e+00> : vector<64x128xf32>
    %179 = tpu.matmul %177, %178, %cst_94 {dimension_numbers = #tpu.dot_dimension_numbers<[1], [0], [0], [1], [0, 0, 1, 1], [], []>} : vector<64x32xbf16>, vector<32x128xbf16>, vector<64x128xf32> -> vector<64x128xf32>
    %c2_95 = arith.constant 2 : index
    %c0_96 = arith.constant 0 : index
    %c0_97 = arith.constant 0 : index
    %180 = vector.load %arg8[%c2_95, %c0_96, %c0_97] : memref<3x64x1xf32, #tpu.memory_space<vmem>>, vector<1x64x1xf32>
    %181 = vector.shape_cast %180 : vector<1x64x1xf32> to vector<64x1xf32>
    %182 = vector.broadcast %181 : vector<64x1xf32> to vector<64x128xf32>
    %183 = arith.addf %179, %182 : vector<64x128xf32>
    %c2_98 = arith.constant 2 : index
    %c1_99 = arith.constant 1 : index
    %c0_100 = arith.constant 0 : index
    %c0_101 = arith.constant 0 : index
    %184 = vector.load %arg7[%c2_98, %c1_99, %c0_100, %c0_101] : memref<3x3x64x32xbf16, #tpu.memory_space<vmem>>, vector<1x1x64x32xbf16>
    %185 = vector.shape_cast %184 : vector<1x1x64x32xbf16> to vector<64x32xbf16>
    %186 = arith.truncf %159 : vector<32x128xf32> to vector<32x128xbf16>
    %cst_102 = arith.constant dense<0.000000e+00> : vector<64x128xf32>
    %187 = tpu.matmul %185, %186, %cst_102 {dimension_numbers = #tpu.dot_dimension_numbers<[1], [0], [0], [1], [0, 0, 1, 1], [], []>} : vector<64x32xbf16>, vector<32x128xbf16>, vector<64x128xf32> -> vector<64x128xf32>
    %188 = arith.addf %183, %187 : vector<64x128xf32>
    %c127_i32_103 = arith.constant 127 : i32
    %189 = tpu.dynamic_rotate %159 by %c127_i32_103 dim 1 : vector<32x128xf32>, i32 -> vector<32x128xf32>
    %c1_i32_104 = arith.constant 1 : i32
    %190 = vector.broadcast %c1_i32_104 : i32 to vector<1x128xi32>
    %191 = arith.addi %23, %190 : vector<1x128xi32>
    %c0_i32_105 = arith.constant 0 : i32
    %192 = vector.broadcast %c0_i32_105 : i32 to vector<1x128xi32>
    %193 = arith.cmpi sge, %191, %192 : vector<1x128xi32>
    %c1_i32_106 = arith.constant 1 : i32
    %194 = vector.broadcast %c1_i32_106 : i32 to vector<1x128xi32>
    %195 = arith.addi %23, %194 : vector<1x128xi32>
    %c128_i32_107 = arith.constant 128 : i32
    %196 = vector.broadcast %c128_i32_107 : i32 to vector<1x128xi32>
    %197 = arith.cmpi slt, %195, %196 : vector<1x128xi32>
    %198 = arith.andi %193, %197 : vector<1x128xi1>
    %cst_108 = arith.constant 0.000000e+00 : f32
    %199 = vector.shape_cast %198 : vector<1x128xi1> to vector<1x128xi1>
    %200 = vector.broadcast %199 : vector<1x128xi1> to vector<32x128xi1>
    %201 = vector.broadcast %cst_108 : f32 to vector<32x128xf32>
    %202 = arith.select %200, %189, %201 : vector<32x128xi1>, vector<32x128xf32>
    %c2_109 = arith.constant 2 : index
    %c2_110 = arith.constant 2 : index
    %c0_111 = arith.constant 0 : index
    %c0_112 = arith.constant 0 : index
    %203 = vector.load %arg7[%c2_109, %c2_110, %c0_111, %c0_112] : memref<3x3x64x32xbf16, #tpu.memory_space<vmem>>, vector<1x1x64x32xbf16>
    %204 = vector.shape_cast %203 : vector<1x1x64x32xbf16> to vector<64x32xbf16>
    %205 = arith.truncf %202 : vector<32x128xf32> to vector<32x128xbf16>
    %cst_113 = arith.constant dense<0.000000e+00> : vector<64x128xf32>
    %206 = tpu.matmul %204, %205, %cst_113 {dimension_numbers = #tpu.dot_dimension_numbers<[1], [0], [0], [1], [0, 0, 1, 1], [], []>} : vector<64x32xbf16>, vector<32x128xbf16>, vector<64x128xf32> -> vector<64x128xf32>
    %207 = arith.addf %188, %206 : vector<64x128xf32>
    %208 = vector.extract_strided_slice %207 {offsets = [0, 0], sizes = [32, 128], strides = [1, 1]} : vector<64x128xf32> to vector<32x128xf32>
    %209 = math.tanh %208 : vector<32x128xf32>
    %210 = vector.extract_strided_slice %207 {offsets = [32, 0], sizes = [32, 128], strides = [1, 1]} : vector<64x128xf32> to vector<32x128xf32>
    %211 = arith.negf %210 : vector<32x128xf32>
    %212 = math.exp %211 : vector<32x128xf32>
    %cst_114 = arith.constant 1.000000e+00 : f32
    %213 = vector.broadcast %cst_114 : f32 to vector<32x128xf32>
    %214 = arith.addf %213, %212 : vector<32x128xf32>
    %215 = arith.divf %213, %214 : vector<32x128xf32>
    %216 = arith.mulf %209, %215 : vector<32x128xf32>
    %c2_115 = arith.constant 2 : index
    %c0_116 = arith.constant 0 : index
    %c0_117 = arith.constant 0 : index
    %217 = vector.load %arg9[%c2_115, %c0_116, %c0_117] : memref<3x64x32xbf16, #tpu.memory_space<vmem>>, vector<1x64x32xbf16>
    %218 = vector.shape_cast %217 : vector<1x64x32xbf16> to vector<64x32xbf16>
    %219 = arith.truncf %216 : vector<32x128xf32> to vector<32x128xbf16>
    %cst_118 = arith.constant dense<0.000000e+00> : vector<64x128xf32>
    %220 = tpu.matmul %218, %219, %cst_118 {dimension_numbers = #tpu.dot_dimension_numbers<[1], [0], [0], [1], [0, 0, 1, 1], [], []>} : vector<64x32xbf16>, vector<32x128xbf16>, vector<64x128xf32> -> vector<64x128xf32>
    %c2_119 = arith.constant 2 : index
    %c0_120 = arith.constant 0 : index
    %c0_121 = arith.constant 0 : index
    %221 = vector.load %arg10[%c2_119, %c0_120, %c0_121] : memref<3x64x1xf32, #tpu.memory_space<vmem>>, vector<1x64x1xf32>
    %222 = vector.shape_cast %221 : vector<1x64x1xf32> to vector<64x1xf32>
    %223 = vector.broadcast %222 : vector<64x1xf32> to vector<64x128xf32>
    %224 = arith.addf %220, %223 : vector<64x128xf32>
    %225 = vector.extract_strided_slice %224 {offsets = [32, 0], sizes = [32, 128], strides = [1, 1]} : vector<64x128xf32> to vector<32x128xf32>
    %226 = arith.addf %161, %225 : vector<32x128xf32>
    %227 = vector.broadcast %1 : vector<1x128xf32> to vector<32x128xf32>
    %228 = arith.mulf %226, %227 : vector<32x128xf32>
    %c0_122 = arith.constant 0 : index
    %c0_123 = arith.constant 0 : index
    %229 = vector.load %arg11[%c0_122, %c0_123] : memref<8x32xbf16, #tpu.memory_space<vmem>>, vector<8x32xbf16>
    %230 = arith.truncf %228 : vector<32x128xf32> to vector<32x128xbf16>
    %cst_124 = arith.constant dense<0.000000e+00> : vector<8x128xf32>
    %231 = tpu.matmul %229, %230, %cst_124 {dimension_numbers = #tpu.dot_dimension_numbers<[1], [0], [0], [1], [0, 0, 1, 1], [], []>} : vector<8x32xbf16>, vector<32x128xbf16>, vector<8x128xf32> -> vector<8x128xf32>
    %c0_125 = arith.constant 0 : index
    %c0_126 = arith.constant 0 : index
    %232 = vector.load %arg12[%c0_125, %c0_126] : memref<8x1xf32, #tpu.memory_space<vmem>>, vector<8x1xf32>
    %233 = vector.broadcast %232 : vector<8x1xf32> to vector<8x128xf32>
    %234 = arith.addf %231, %233 : vector<8x128xf32>
    %235 = vector.extract_strided_slice %234 {offsets = [0, 0], sizes = [4, 128], strides = [1, 1]} : vector<8x128xf32> to vector<4x128xf32>
    %236 = vector.extract_strided_slice %234 {offsets = [4, 0], sizes = [4, 128], strides = [1, 1]} : vector<8x128xf32> to vector<4x128xf32>
    %237 = math.exp %236 : vector<4x128xf32>
    %238 = arith.mulf %237, %13 : vector<4x128xf32>
    %239 = arith.addf %235, %238 : vector<4x128xf32>
    %240 = vector.broadcast %1 : vector<1x128xf32> to vector<4x128xf32>
    %241 = arith.mulf %239, %240 : vector<4x128xf32>
    %c0_127 = arith.constant 0 : index
    %c0_128 = arith.constant 0 : index
    %c0_129 = arith.constant 0 : index
    %242 = vector.load %arg13[%c0_127, %c0_128, %c0_129] : memref<1x8x128xf32, #tpu.memory_space<vmem>>, vector<1x4x128xf32>
    %243 = vector.shape_cast %242 : vector<1x4x128xf32> to vector<4x128xf32>
    %244 = vector.shape_cast %12 : vector<4x128xf32> to vector<1x4x128xf32>
    tpu.vector_store %arg13[%c0_127, %c0_128, %c0_129], %244 {strides = array<i32>} : memref<1x8x128xf32, #tpu.memory_space<vmem>>, vector<1x4x128xf32>,
    %c0_130 = arith.constant 0 : index
    %c4 = arith.constant 4 : index
    %c0_131 = arith.constant 0 : index
    %245 = vector.load %arg13[%c0_130, %c4, %c0_131] : memref<1x8x128xf32, #tpu.memory_space<vmem>>, vector<1x4x128xf32>
    %246 = vector.shape_cast %245 : vector<1x4x128xf32> to vector<4x128xf32>
    %247 = vector.shape_cast %241 : vector<4x128xf32> to vector<1x4x128xf32>
    tpu.vector_store %arg13[%c0_130, %c4, %c0_131], %247 {strides = array<i32>} : memref<1x8x128xf32, #tpu.memory_space<vmem>>, vector<1x4x128xf32>,
    %248 = vector.broadcast %1 : vector<1x128xf32> to vector<4x128xf32>
    %249 = arith.mulf %236, %248 : vector<4x128xf32>
    %250 = vector.shape_cast %249 : vector<4x128xf32> to vector<1x4x128xf32>
    %cst_132 = arith.constant dense<0.000000e+00> : vector<1xf32>
    %251 = vector.multi_reduction <add>, %250, %cst_132 [1, 2] : vector<1x4x128xf32> to vector<1xf32>
    %252 = vector.shape_cast %251 : vector<1xf32> to vector<1x1x1xf32>
    %253 = vector.extract %252[0, 0, 0] : f32 from vector<1x1x1xf32>
    %254 = vector.broadcast %253 : f32 to vector<1x1xf32>
    %255 = vector.shape_cast %254 : vector<1x1xf32> to vector<1x1xf32>
    %256 = vector.broadcast %255 : vector<1x1xf32> to vector<1x128xf32>
    %c0_133 = arith.constant 0 : index
    %c0_134 = arith.constant 0 : index
    %c0_135 = arith.constant 0 : index
    %257 = vector.load %arg14[%c0_133, %c0_134, %c0_135] : memref<1x1x128xf32, #tpu.memory_space<vmem>>, vector<1x1x128xf32>
    %258 = vector.shape_cast %257 : vector<1x1x128xf32> to vector<1x128xf32>
    %259 = vector.shape_cast %256 : vector<1x128xf32> to vector<1x1x128xf32>
    tpu.vector_store %arg14[%c0_133, %c0_134, %c0_135], %259 {strides = array<i32>} : memref<1x1x128xf32, #tpu.memory_space<vmem>>, vector<1x1x128xf32>,
    return
  }
  func.func @transform_0(%arg0: i32) -> (i32, i32, i32) {
    %c0_i32 = arith.constant 0 : i32
    %c0_i32_0 = arith.constant 0 : i32
    %c0_i32_1 = arith.constant 0 : i32
    return %arg0, %c0_i32, %c0_i32_0 : i32, i32, i32
  }
  func.func @transform_1(%arg0: i32) -> (i32, i32, i32) {
    %c0_i32 = arith.constant 0 : i32
    %c0_i32_0 = arith.constant 0 : i32
    %c0_i32_1 = arith.constant 0 : i32
    return %arg0, %c0_i32, %c0_i32_0 : i32, i32, i32
  }
  func.func @transform_2(%arg0: i32) -> (i32, i32) {
    %c0_i32 = arith.constant 0 : i32
    %c0_i32_0 = arith.constant 0 : i32
    %c0_i32_1 = arith.constant 0 : i32
    return %c0_i32, %c0_i32_0 : i32, i32
  }
  func.func @transform_3(%arg0: i32) -> (i32, i32) {
    %c0_i32 = arith.constant 0 : i32
    %c0_i32_0 = arith.constant 0 : i32
    %c0_i32_1 = arith.constant 0 : i32
    return %c0_i32, %c0_i32_0 : i32, i32
  }
  func.func @transform_4(%arg0: i32) -> (i32, i32) {
    %c0_i32 = arith.constant 0 : i32
    %c0_i32_0 = arith.constant 0 : i32
    %c0_i32_1 = arith.constant 0 : i32
    return %c0_i32, %c0_i32_0 : i32, i32
  }
  func.func @transform_5(%arg0: i32) -> (i32, i32) {
    %c0_i32 = arith.constant 0 : i32
    %c0_i32_0 = arith.constant 0 : i32
    %c0_i32_1 = arith.constant 0 : i32
    return %c0_i32, %c0_i32_0 : i32, i32
  }
  func.func @transform_6(%arg0: i32) -> (i32, i32, i32, i32) {
    %c0_i32 = arith.constant 0 : i32
    %c0_i32_0 = arith.constant 0 : i32
    %c0_i32_1 = arith.constant 0 : i32
    %c0_i32_2 = arith.constant 0 : i32
    %c0_i32_3 = arith.constant 0 : i32
    return %c0_i32, %c0_i32_0, %c0_i32_1, %c0_i32_2 : i32, i32, i32, i32
  }
  func.func @transform_7(%arg0: i32) -> (i32, i32, i32) {
    %c0_i32 = arith.constant 0 : i32
    %c0_i32_0 = arith.constant 0 : i32
    %c0_i32_1 = arith.constant 0 : i32
    %c0_i32_2 = arith.constant 0 : i32
    return %c0_i32, %c0_i32_0, %c0_i32_1 : i32, i32, i32
  }
  func.func @transform_8(%arg0: i32) -> (i32, i32, i32) {
    %c0_i32 = arith.constant 0 : i32
    %c0_i32_0 = arith.constant 0 : i32
    %c0_i32_1 = arith.constant 0 : i32
    %c0_i32_2 = arith.constant 0 : i32
    return %c0_i32, %c0_i32_0, %c0_i32_1 : i32, i32, i32
  }
  func.func @transform_9(%arg0: i32) -> (i32, i32, i32) {
    %c0_i32 = arith.constant 0 : i32
    %c0_i32_0 = arith.constant 0 : i32
    %c0_i32_1 = arith.constant 0 : i32
    %c0_i32_2 = arith.constant 0 : i32
    return %c0_i32, %c0_i32_0, %c0_i32_1 : i32, i32, i32
  }
  func.func @transform_10(%arg0: i32) -> (i32, i32) {
    %c0_i32 = arith.constant 0 : i32
    %c0_i32_0 = arith.constant 0 : i32
    %c0_i32_1 = arith.constant 0 : i32
    return %c0_i32, %c0_i32_0 : i32, i32
  }
  func.func @transform_11(%arg0: i32) -> (i32, i32) {
    %c0_i32 = arith.constant 0 : i32
    %c0_i32_0 = arith.constant 0 : i32
    %c0_i32_1 = arith.constant 0 : i32
    return %c0_i32, %c0_i32_0 : i32, i32
  }
  func.func @transform_12(%arg0: i32) -> (i32, i32, i32) {
    %c0_i32 = arith.constant 0 : i32
    %c0_i32_0 = arith.constant 0 : i32
    %c0_i32_1 = arith.constant 0 : i32
    return %arg0, %c0_i32, %c0_i32_0 : i32, i32, i32
  }
  func.func @transform_13(%arg0: i32) -> (i32, i32, i32) {
    %c0_i32 = arith.constant 0 : i32
    %c0_i32_0 = arith.constant 0 : i32
    %c0_i32_1 = arith.constant 0 : i32
    return %arg0, %c0_i32, %c0_i32_0 : i32, i32, i32
  }
}

</mosaic_0001>

<bundles_post_ra>
// kernel: mul.17
= control target key start
LH: loop header
LB: loop body
LE: loop exit
PB: predicated region body
PF: predicated region fallthrough
CT: control target
= control target key end

     0   :  { %s7_s6 = smov 3  ;;  %s21_s9 = smov 3  ;;  %vm4_vm0 = vcmask 15360   ;;  %vm11_vm1 = vcmask 130160   ;;  %vm18_vm2 = vcmask 113760   ;;  %vm25_vm3 = vcmask 97360   ;;  %s119_s0 = inlined_call_operand.vmem [shape: f32[2,8,1,2], index: 0, kind: input, shape index: {}]   ;;  %s120_s1 = inlined_call_operand.vmem [shape: f32[2,16], index: 1, kind: output, shape index: {}]  }
   0x1   :  { %v61_v0 = vld [vmem:[%s119_s0 + $0x7] ss:$8 sm:%s7_s6]   ;;  %s75_s10 = smov 14   ;;  %v63_v1 = vld [vmem:[%s119_s0 + $0x5] ss:$8 sm:%s21_s9]   ;;  %s14_s13 = smov 3 }
   0x2   :  { %9 = vrot.lane.b32.xlu0 %v61_v0, %s75_s10  ;;  %s76_s14 = smov 10   ;;  %v62_v2 = vld [vmem:[%s119_s0 + $0x6] ss:$8 sm:%s14_s13]   ;;  %s28_s17 = smov 3  ;;  %vm32_vm4 = vcmask 80960   ;;  %vm39_vm5 = vcmask 64560  }
   0x3   :  { %23 = vrot.lane.b32.xlu1 %v63_v1, %s76_s14  ;;  %v64_v3 = vld [vmem:[%s119_s0 + $0x4] ss:$8 sm:%s28_s17]   ;;  %s35_s20 = smov 3  ;;  %s42_s21 = smov 3  ;;  %vm46_vm6 = vcmask 48160   ;;  %vm53_vm7 = vcmask 31760  }
   0x4   :  { %s77_s22 = smov 12   ;;  %s78_s23 = smov 8   ;;  %v65_v4 = vld [vmem:[%s119_s0 + $0x3] ss:$8 sm:%s35_s20]   ;;  %v66_v5 = vld [vmem:[%s119_s0 + $0x2] ss:$8 sm:%s42_s21]  }
   0x5   :  { %s2_s26 = smov 3  ;;  %s49_s29 = smov 3 }
   0x6   :  { %16 = vrot.lane.b32.xlu0 %v62_v2, %s77_s22  ;;  %v3_v6 = vld [vmem:[%s119_s0] ss:$8 sm:%s2_s26]   ;;  %s79_s3 = smov 6   ;;  %s80_s4 = smov 4  }
   0x7   :  { %30 = vrot.lane.b32.xlu1 %v64_v3, %s78_s23  ;;  %5 = vst.msk [vmem:[#allocation0] sm:$0x3] %vm4_vm0, %v3_v6   ;;  %v67_v7 = vld [vmem:[%s119_s0 + $0x1] ss:$8 sm:%s49_s29]   ;;  %s81_s0 = smov 2  }
   0xa   :  { %37 = vrot.lane.b32.xlu0 %v65_v4, %s79_s3 }
   0xb   :  { %44 = vrot.lane.b32.xlu1 %v66_v5, %s80_s4 }
   0xe   :  { %51 = vrot.lane.b32.xlu0 %v67_v7, %s81_s0 }
  0x74   :  { %v10_v8 = vpop.permute.xlu0 %9  }
  0x75   :  { %12 = vst.msk [vmem:[#allocation0] sm:$0x3] %vm11_vm1, %v10_v8   ;;  %v24_v9 = vpop.permute.xlu1 %23  }
  0x78   :  { %v17_v10 = vpop.permute.xlu0 %16  }
  0x79   :  { %19 = vst.msk [vmem:[#allocation0] sm:$0x3] %vm18_vm2, %v17_v10   ;;  %v31_v11 = vpop.permute.xlu1 %30  }
  0x7a   :  { %26 = vst.msk [vmem:[#allocation0] sm:$0x3] %vm25_vm3, %v24_v9  }
  0x7b   :  { %33 = vst.msk [vmem:[#allocation0] sm:$0x3] %vm32_vm4, %v31_v11  }
  0x7c   :  { %v38_v12 = vpop.permute.xlu0 %37  }
  0x7d   :  { %40 = vst.msk [vmem:[#allocation0] sm:$0x3] %vm39_vm5, %v38_v12   ;;  %v45_v13 = vpop.permute.xlu1 %44  }
  0x7e   :  { %47 = vst.msk [vmem:[#allocation0] sm:$0x3] %vm46_vm6, %v45_v13  }
  0x80   :  { %v52_v14 = vpop.permute.xlu0 %51  }
  0x81   :  { %54 = vst.msk [vmem:[#allocation0] sm:$0x3] %vm53_vm7, %v52_v14  }
  0x88   :  { %v58_v15 = vld [vmem:[#allocation0] sm:$0x3] }
  0x89   :  { %60 = vst [vmem:[%s120_s1] sm:$0x3] %v58_v15 }

// kernel: flow_decoder_forward.2
= control target key start
LH: loop header
LB: loop body
LE: loop exit
PB: predicated region body
PF: predicated region fallthrough
CT: control target
= control target key end

     0   :  { %s4511_s0 = inlined_call_operand.vmem [shape: f32[2,8,128], index: 0, kind: input, shape index: {}]   ;;  %s4512_s1 = inlined_call_operand.vmem [shape: f32[2,1,128], index: 1, kind: input, shape index: {}]   ;;  %s4513_s2 = inlined_call_operand.hbm [shape: bf16[8,8], index: 2, kind: input, shape index: {}]   ;;  %s4514_s3 = inlined_call_operand.hbm [shape: f32[8,1], index: 3, kind: input, shape index: {}]   ;;  %s4515_s4 = inlined_call_operand.vmem [shape: bf16[32,4], index: 4, kind: input, shape index: {}]   ;;  %s4516_s5 = inlined_call_operand.hbm [shape: f32[32,1], index: 5, kind: input, shape index: {}]   ;;  %s4517_s6 = inlined_call_operand.vmem [shape: bf16[3,3,64,32], index: 6, kind: input, shape index: {}]   ;;  %s4518_s7 = inlined_call_operand.hbm [shape: f32[3,64,1], index: 7, kind: input, shape index: {}]   ;;  %s4519_s8 = inlined_call_operand.hbm [shape: bf16[3,64,32], index: 8, kind: input, shape index: {}]   ;;  %s4520_s9 = inlined_call_operand.hbm [shape: f32[3,64,1], index: 9, kind: input, shape index: {}]   ;;  %s4521_s10 = inlined_call_operand.hbm [shape: bf16[8,32], index: 10, kind: input, shape index: {}]   ;;  %s4522_s11 = inlined_call_operand.vmem [shape: f32[8,1], index: 11, kind: input, shape index: {}]   ;;  %s4523_s12 = inlined_call_operand.vmem [shape: f32[2,8,128], index: 12, kind: output, shape index: {0}]   ;;  %s4524_s13 = inlined_call_operand.vmem [shape: f32[2,1,128], index: 13, kind: output, shape index: {1}]  }
   0x1   :  { %4529 = sst [smem:[#allocation18_spill]] %s4514_s3 }
   0x2   :  { %19 = vsyncpa [#allocation3], 0 }
   0x3   :  { %20 = vsyncpa [#allocation5], 0 }
   0x4   :  { %21 = vsyncpa [#allocation8], 0 }
   0x5   :  { %22 = vsyncpa [#allocation11], 0  ;;  %s3957_s25 = smov 0  }
   0x6 LB: > { %4530 = sst [smem:[#allocation17_spill]] %s3869_s25  ;;  %s3871_s26 = smov [#allocation4]   ;;  %s3869_s25 = sphi %s3957_s25, %s28_s25  }
   0x7   : > { %s371_s27 = sshll.u32 %s3871_s26, 4  ;;  %s3963_s28 = sadd.s32 4294967295, %s3869_s25   ;;  %s3968_s27 = int_to_ptr.vmem [resolvable:$true] %s371_s27 }
   0x8   : > { %p2801_p0 = scmp.ge.s32.totalorder %s3869_s25, 1  ;;  %p347_p1 = scmp.lt.s32.totalorder %s3869_s25, 3 }
   0x9   : > { %p4526_p2 = scmp.eq.s32.totalorder %s3963_s28, 0  ;;  %s3872_s30 = smov [#allocation7]  }
   0xa   : > { %p3970_p3 = pnand %p2801_p0, %p347_p1  ;;  %s400_s14 = sshll.u32 %s3872_s30, 4  ;;  %s3976_s14 = int_to_ptr.vmem [resolvable:$true] %s400_s14 }
   0xb   : > { %s3873_s16 = smov [#allocation10]   ;;  %s3874_s18 = smov [#allocation2]  }
   0xc   : > { %s4531_s29 = scalar_select %p3970_p3, 1, 0 }
   0xd   : > { %p3404_p4 = pneg %p3970_p3  ;;  %s426_s17 = sshll.u32 %s3873_s16, 4  ;;  %s3984_s17 = int_to_ptr.vmem [resolvable:$true] %s426_s17 }
   0xe   : > { %s3986_s19 = sshll.u32 %s3874_s18, 4  ;;  %s4533_s3 = sld [smem:[#allocation18_spill]]  ;;  %s361_s19 = int_to_ptr.vmem [resolvable:$true] %s3986_s19 }
   0xf   : > { %p3980_p5 = pnand %p4526_p2, %p3404_p4 }
  0x11   : > { %p3996_p7 = pneg %p3980_p5 }
  0x14   : > { %s3651_s22 = scalar_lea.hbm %s4533_s3, 128 }
  0x15   : > { %p3652_p6 = scmp.ne.s32.totalorder %s4533_s3, %s3651_s22  ;;  %p3658_p10 = scmp.lt.u32.totalorder %s3651_s22, %s4533_s3 }
  0x17   : > { %p3654_p8 = pnand %p3996_p7, %p3652_p6 }
  0x19   : > { %p3655_p9 = pneg %p3654_p8 }
  0x1b   : > { %p3660_p11 = pnand %p3658_p10, %p3655_p9 }
  0x1d   : > { %3663 = shalt.err (!%p3660_p11)
}
  0x1e   : > { %s3664_s18 = scalar_lea.vmem %s3968_s27, 128  ;;  %p3672_p1 = scmp.lt.s32.totalorder %s3968_s27, %s3968_s27 }
  0x1f   : > { %p3665_p12 = scmp.ne.s32.totalorder %s3968_s27, %s3664_s18  ;;  %p3673_p4 = scmp.lt.s32.totalorder %s3664_s18, %s3664_s18 }
  0x21   : > { %p3667_p13 = pnand %p3665_p12, %p3996_p7  ;;  %p3674_p6 = por %p3673_p4, %p3672_p1 }
  0x23   : > { %p3668_p0 = pneg %p3667_p13 }
  0x25   : > { %p3675_p8 = pnand %p3674_p6, %p3668_p0 }
  0x27   : > { %3678 = shalt.err (!%p3675_p8)
}
  0x28   : > { %3410 = dma.hbm_to_vmem [thread:$0]  (!%p3980_p5), %s4533_s3, 128, %s3968_s27, [#allocation5]  }
  0x29   : > { %s3679_s24 = scalar_lea.hbm %s4518_s7, 3072 }
  0x2a   : > { %p3680_p9 = scmp.ne.s32.totalorder %s4518_s7, %s3679_s24  ;;  %p3686_p12 = scmp.lt.u32.totalorder %s3679_s24, %s4518_s7 }
  0x2c   : > { %p3682_p10 = pnand %p3680_p9, %p3996_p7 }
  0x2e   : > { %p3683_p11 = pneg %p3682_p10 }
  0x30   : > { %p3688_p13 = pnand %p3686_p12, %p3683_p11 }
  0x32   : > { %3691 = shalt.err (!%p3688_p13)
}
  0x33   : > { %s3692_s27 = scalar_lea.vmem %s3976_s14, 3072  ;;  %p3700_p6 = scmp.lt.s32.totalorder %s3976_s14, %s3976_s14 }
  0x34   : > { %p3693_p0 = scmp.ne.s32.totalorder %s3976_s14, %s3692_s27  ;;  %p3701_p8 = scmp.lt.s32.totalorder %s3692_s27, %s3692_s27 }
  0x36   : > { %p3695_p1 = pnand %p3693_p0, %p3996_p7  ;;  %p3702_p9 = por %p3701_p8, %p3700_p6 }
  0x38   : > { %p3696_p4 = pneg %p3695_p1 }
  0x3a   : > { %p3703_p10 = pnand %p3702_p9, %p3696_p4 }
  0x3c   : > { %3706 = shalt.err (!%p3703_p10)
}
  0x3d   : > { %s4528_s20 = smov 128   ;;  %s3876_s25 = smov 8  }
  0x3e   : > { %3416 = dma.hbm_to_vmem [thread:$0]  (!%p3980_p5), %s4518_s7, 3072, %s3976_s14, [#allocation8], %s4528_s20, %s4528_s20, %s3876_s25  }
  0x3f   : > { %s3707_s30 = scalar_lea.hbm %s4520_s9, 3072 }
  0x40   : > { %p3708_p11 = scmp.ne.s32.totalorder %s4520_s9, %s3707_s30  ;;  %p3714_p0 = scmp.lt.u32.totalorder %s3707_s30, %s4520_s9 }
  0x42   : > { %p3710_p12 = pnand %p3708_p11, %p3996_p7 }
  0x44   : > { %p3711_p13 = pneg %p3710_p12 }
  0x46   : > { %p3716_p1 = pnand %p3714_p0, %p3711_p13 }
  0x48   : > { %3719 = shalt.err (!%p3716_p1)
}
  0x49   : > { %s3720_s14 = scalar_lea.vmem %s3984_s17, 3072  ;;  %p3728_p9 = scmp.lt.s32.totalorder %s3984_s17, %s3984_s17 }
  0x4a   : > { %p3721_p4 = scmp.ne.s32.totalorder %s3984_s17, %s3720_s14  ;;  %p3729_p10 = scmp.lt.s32.totalorder %s3720_s14, %s3720_s14 }
  0x4c   : > { %p3723_p6 = pnand %p3721_p4, %p3996_p7  ;;  %p3730_p11 = por %p3729_p10, %p3728_p9 }
  0x4e   : > { %p3724_p8 = pneg %p3723_p6 }
  0x50   : > { %p3731_p12 = pnand %p3730_p11, %p3724_p8 }
  0x52   : > { %3734 = shalt.err (!%p3731_p12)
}
  0x53   : > { %3422 = dma.hbm_to_vmem [thread:$0]  (!%p3980_p5), %s4520_s9, 3072, %s3984_s17, [#allocation11], %s4528_s20, %s4528_s20, %s3876_s25  }
  0x54   : > { %s3735_s24 = scalar_lea.hbm %s4513_s2, 64 }
  0x55   : > { %p3736_p13 = scmp.ne.s32.totalorder %s4513_s2, %s3735_s24  ;;  %p3742_p4 = scmp.lt.u32.totalorder %s3735_s24, %s4513_s2 }
  0x57   : > { %p3738_p0 = pnand %p3736_p13, %p3996_p7 }
  0x59   : > { %p3739_p1 = pneg %p3738_p0 }
  0x5b   : > { %p3744_p6 = pnand %p3742_p4, %p3739_p1 }
  0x5d   : > { %3747 = shalt.err (!%p3744_p6)
}
  0x5e   : > { %s3748_s14 = scalar_lea.vmem %s361_s19, 64  ;;  %p3756_p11 = scmp.lt.s32.totalorder %s361_s19, %s361_s19 }
  0x5f   : > { %p3749_p8 = scmp.ne.s32.totalorder %s361_s19, %s3748_s14  ;;  %p3757_p12 = scmp.lt.s32.totalorder %s3748_s14, %s3748_s14 }
  0x61   : > { %p3751_p9 = pnand %p3749_p8, %p3996_p7  ;;  %p3758_p2 = por %p3757_p12, %p3756_p11 }
  0x63   : > { %p3752_p10 = pneg %p3751_p9 }
  0x65   : > { %p3759_p3 = pnand %p3758_p2, %p3752_p10 }
  0x67   : > { %3762 = shalt.err (!%p3759_p3)
}
  0x68   : > { %3407 = dma.hbm_to_vmem [thread:$0]  (!%p3980_p5), %s4513_s2, 64, %s361_s19, [#allocation3]  }
  0x69   : > { %s3877_s21 = smov [#allocation6]   ;;  %s3878_s23 = smov [#allocation9]  }
  0x6a   : > { %s384_s22 = sshll.u32 %s3877_s21, 4  ;;  %s413_s24 = sshll.u32 %s3878_s23, 4  ;;  %s385_s22 = int_to_ptr.vmem [resolvable:$true] %s384_s22  ;;  %s414_s24 = int_to_ptr.vmem [resolvable:$true] %s413_s24 }
  0x6b   : > { %s3763_s18 = scalar_lea.hbm %s4516_s5, 512 }
  0x6c   : > { %p3764_p2 = scmp.ne.s32.totalorder %s4516_s5, %s3763_s18  ;;  %p3770_p0 = scmp.lt.u32.totalorder %s3763_s18, %s4516_s5 }
  0x6e   : > { %p3766_p3 = pnand %p3764_p2, %p3996_p7 }
  0x70   : > { %p3767_p13 = pneg %p3766_p3 }
  0x72   : > { %p3772_p1 = pnand %p3770_p0, %p3767_p13 }
  0x74   : > { %3775 = shalt.err (!%p3772_p1)
}
  0x75   : > { %s3776_s19 = scalar_lea.vmem %s385_s22, 512  ;;  %p3784_p9 = scmp.lt.s32.totalorder %s385_s22, %s385_s22 }
  0x76   : > { %p3777_p4 = scmp.ne.s32.totalorder %s385_s22, %s3776_s19  ;;  %p3785_p10 = scmp.lt.s32.totalorder %s3776_s19, %s3776_s19 }
  0x78   : > { %p3779_p6 = pnand %p3777_p4, %p3996_p7  ;;  %p3786_p11 = por %p3785_p10, %p3784_p9 }
  0x7a   : > { %p3780_p8 = pneg %p3779_p6 }
  0x7c   : > { %p3787_p12 = pnand %p3786_p11, %p3780_p8 }
  0x7e   : > { %3790 = shalt.err (!%p3787_p12)
}
  0x7f   : > { %s4535_s3 = smov 128   ;;  %s3791_s16 = scalar_lea.hbm %s4519_s8, 1536 }
  0x80   : > { %3413 = dma.hbm_to_vmem [thread:$0]  (!%p3980_p5), %s4516_s5, 512, %s385_s22, [#allocation5], %s4535_s3, %s4535_s3, %s3876_s25  }
  0x81   : > { %p3792_p2 = scmp.ne.s32.totalorder %s4519_s8, %s3791_s16  ;;  %p3798_p0 = scmp.lt.u32.totalorder %s3791_s16, %s4519_s8 }
  0x83   : > { %p3794_p3 = pnand %p3792_p2, %p3996_p7 }
  0x85   : > { %p3795_p13 = pneg %p3794_p3 }
  0x87   : > { %p3800_p1 = pnand %p3798_p0, %p3795_p13 }
  0x89   : > { %3803 = shalt.err (!%p3800_p1)
}
  0x8a   : > { %s3804_s19 = scalar_lea.vmem %s414_s24, 1536  ;;  %p3812_p9 = scmp.lt.s32.totalorder %s414_s24, %s414_s24 }
  0x8b   : > { %p3805_p4 = scmp.ne.s32.totalorder %s414_s24, %s3804_s19  ;;  %p3813_p10 = scmp.lt.s32.totalorder %s3804_s19, %s3804_s19 }
  0x8d   : > { %p3807_p6 = pnand %p3805_p4, %p3996_p7  ;;  %p3814_p11 = por %p3813_p10, %p3812_p9 }
  0x8f   : > { %p3808_p8 = pneg %p3807_p6 }
  0x91   : > { %p3815_p12 = pnand %p3814_p11, %p3808_p8 }
  0x93   : > { %3818 = shalt.err (!%p3815_p12)
}
  0x94   : > { %s3879_s25 = smov 64   ;;  %s3880_s22 = smov 4  }
  0x95   : > { %3419 = dma.hbm_to_vmem [thread:$0]  (!%p3980_p5), %s4519_s8, 1536, %s414_s24, [#allocation8], %s3879_s25, %s3879_s25, %s3880_s22  }
  0x96   : > { %s3881_s21 = smov [#allocation12]   ;;  %s3819_s18 = scalar_lea.hbm %s4521_s10, 64 }
  0x97   : > { %s440_s23 = sshll.u32 %s3881_s21, 4  ;;  %p3820_p2 = scmp.ne.s32.totalorder %s4521_s10, %s3819_s18  ;;  %s441_s23 = int_to_ptr.vmem [resolvable:$true] %s440_s23 }
  0x98   : > { %p3826_p0 = scmp.lt.u32.totalorder %s3819_s18, %s4521_s10 }
  0x99   : > { %p3822_p3 = pnand %p3820_p2, %p3996_p7 }
  0x9b   : > { %p3823_p13 = pneg %p3822_p3 }
  0x9d   : > { %p3828_p1 = pnand %p3826_p0, %p3823_p13 }
  0x9f   : > { %3831 = shalt.err (!%p3828_p1)
}
  0xa0   : > { %s3832_s24 = scalar_lea.vmem %s441_s23, 64  ;;  %p3840_p9 = scmp.lt.s32.totalorder %s441_s23, %s441_s23 }
  0xa1   : > { %p3833_p4 = scmp.ne.s32.totalorder %s441_s23, %s3832_s24  ;;  %p3841_p10 = scmp.lt.s32.totalorder %s3832_s24, %s3832_s24 }
  0xa3   : > { %p3835_p6 = pnand %p3833_p4, %p3996_p7  ;;  %p3842_p11 = por %p3841_p10, %p3840_p9 }
  0xa5   : > { %p3836_p8 = pneg %p3835_p6 }
  0xa7   : > { %p3843_p12 = pnand %p3842_p11, %p3836_p8 }
  0xa9   : > { %3846 = shalt.err (!%p3843_p12)
}
  0xaa   : > { %3425 = dma.hbm_to_vmem [thread:$0]  (!%p3980_p5), %s4521_s10, 64, %s441_s23, [#allocation11]  }
  0xab   : > { %p4536_p2 = scmp.ne.s32.totalorder %s4531_s29, 0 }
  0xac   : > { %p4537_p3 = scmp.eq.s32.totalorder (!%p4536_p2), %s3963_s28, 0 }
  0xad   : > { %469 = sbr.rel (%p4536_p2) target bundleno = 3019 (0xbcb), region = 68 }
  0xb4   : > { %3852 = dma.done.wait (%p4537_p3), [#allocation3], 64   ;;  %p4538_p7 = pmov %p4537_p3 }
  0xb5   : > { %p4539_p13 = pmov %p4537_p3 }
  0xb6   : > { %3854 = vsyncadd (%p4538_p7), [#allocation3], 4294967232 }
  0xb7   : > { %3856 = dma.done.wait (%p4539_p13), [#allocation5], 640   ;;  %p4540_p0 = pmov %p4537_p3 }
  0xb9   : > { %3858 = vsyncadd (%p4540_p0), [#allocation5], 4294966656  ;;  %p4541_p1 = pmov %p4540_p0 }
  0xba   : > { %p4542_p5 = pmov %p4540_p0 }
  0xbb   : > { %3860 = dma.done.wait (%p4541_p1), [#allocation8], 4608  }
  0xbc   : > { %3862 = vsyncadd (%p4542_p5), [#allocation8], 4294962688  ;;  %p4543_p4 = pmov %p4540_p0 }
  0xbd   : > { %p4544_p6 = pmov %p4540_p0 }
  0xbe   : > { %3864 = dma.done.wait (%p4543_p4), [#allocation11], 3136  }
  0xbf   : > { %3866 = vsyncadd (%p4544_p6), [#allocation11], 4294964160  ;;  %p541_p8 = scmp.lt.s32.totalorder %s3963_s28, 1  ;;  %v3882_v0 = vmov 0.0   ;;  %vm3883_vm0 = vmmov 0   ;;  %v3884_v1 = vmov 0   ;;  %v724_v54 = vlaneseq }
  0xc0   : > { %3117 = vmatprep.subr.bf16.mxu0 %v3882_v0  ;;  %3119 = vmatprep.mubr.msk.bf16.mxu0 %vm3883_vm0, %v3882_v0  ;;  %vm570_vm1 = vcmask 1043456   ;;  %vm566_vm2 = vcmask 64512   ;;  %v560_v4 = vld [vmem:[#allocation4] sm:$0xff]  ;;  %v558_v5 = vld [vmem:[#allocation2] sm:$0xf]  ;;  %v626_v7 = vld [vmem:[#allocation6] sm:$0xff] }
  0xc1   : > { %s4551_s28 = smov (!%p541_p8, %s3963_s28), 1  ;;  %3464 = vset.pattern.permute.xlu0 %v3884_v1  ;;  %3465 = vset.pattern.permute.xlu1 %v3884_v1  ;;  %v629_v8 = vld [vmem:[#allocation6 + $0x18] sm:$0xff]  ;;  %vm660_vm3 = vcmask 31744   ;;  %v627_v10 = vld [vmem:[#allocation6 + $0x8] sm:$0xff]  ;;  %v628_v11 = vld [vmem:[#allocation6 + $0x10] sm:$0xff]  ;;  %vm667_vm4 = vcmask 1041408  }
  0xc2   : > { %s2818_s29 = sshll.u32 %s4551_s28, 3  ;;  %563 = vperm.xlu0 %3464, %v560_v4   ;;  %v3526_v9 = vld [vmem:[%s4515_s4] sm:$0xff]   ;;  %637 = vperm.xlu1 %3465, %v627_v10   ;;  %s4185_s16 = scalar_lea.vmem %s4512_s1, %s4551_s28  ;;  %v3527_v22 = vld [vmem:[%s4515_s4 + $0x8] sm:$0xff]   ;;  %vm822_vm5 = vcmask 261120   ;;  %v759_v42 = vld [vmem:[#allocation7 + $0x28] sm:$0xff]  ;;  %v725_v55 = vand.u32 127, %v724_v54 }
  0xc3   : > { %s544_s3 = scalar_lea.vmem %s4511_s0, %s2818_s29  ;;  %3125 = vmatprep.mubr.msk.bf16.mxu1 %vm660_vm3, %v3526_v9  ;;  %v4188_v12 = vld [vmem:[%s4185_s16] ss:$0 sm:$0xff]  ;;  %s4195_s14 = scalar_lea.vmem %s4523_s12, %s2818_s29  ;;  %v758_v43 = vld [vmem:[#allocation7 + $0x20] sm:$0xff]  ;;  %v761_v44 = vld [vmem:[#allocation7 + $0x38] sm:$0xff] }
  0xc4   : > { %v557_v2 = vld [vmem:[%s544_s3] sm:$0xff]  ;;  %s3885_s22 = smov 1   ;;  %s3886_s29 = smov 127   ;;  %v755_v46 = vld [vmem:[#allocation7 + $0x8] sm:$0xff]  ;;  %v754_v47 = vld [vmem:[#allocation7] sm:$0xff]  ;;  %v734_v56 = vadd.s32 4294967295, %v725_v55 }
  0xc5   : > { %v559_v3 = vpack.c.bf16 %v557_v2, %v557_v2  ;;  %v3528_v39 = vld [vmem:[%s4517_s6] sm:$0xff]   ;;  %v1193_v50 = vld [vmem:[#allocation10 + $0x8] sm:$0xff]  ;;  %v1192_v51 = vld [vmem:[#allocation10] sm:$0xff]  ;;  %s554_s21 = scalar_lea.vmem %s4524_s13, %s4551_s28 }
  0xc6   : > { %632 = vperm.xlu0 %3464, %v626_v7   ;;  %642 = vperm.xlu1 %3465, %v628_v11   ;;  %v760_v45 = vld [vmem:[#allocation7 + $0x30] sm:$0xff]  ;;  %v757_v48 = vld [vmem:[#allocation7 + $0x18] sm:$0xff]  ;;  %vm735_vm6 = vcmp.ge.s32.totalorder %v734_v56, 0  ;;  %v3530_v7 = vld [vmem:[%s4517_s6 + $0x10] sm:$0xff]  }
  0xc7   : > { %v572_v6 = vsel %vm570_vm1, %v559_v3, 0  ;;  %v756_v49 = vld [vmem:[#allocation7 + $0x10] sm:$0xff]  ;;  %v1195_v52 = vld [vmem:[#allocation10 + $0x18] sm:$0xff]  ;;  %vm4232_vm7 = vmpackc.low %vm735_vm6, %vm735_vm6 }
  0xc8   : > { %3118 = vmatpush3.bf16.msra.mxu0 %v572_v6  ;;  %v1194_v53 = vld [vmem:[#allocation10 + $0x10] sm:$0xff]  ;;  %v3529_v4 = vld [vmem:[%s4517_s6 + $0x8] sm:$0xff]  }
  0xc9   : > { %v3561_v63 = vld [vmem:[%s4517_s6 + $0xd8] sm:$0xff]  }
  0xca   : > { %647 = vperm.xlu0 %3464, %v629_v8   ;;  %v3569_v11 = vld [vmem:[%s4517_s6 + $0x118] sm:$0xff]  }
  0xcb   : > { %3120 = vmatmul.mubr.msk.bf16.vlgmr.msra.gmra.mrb[0].mxu0 %vm566_vm2, %v558_v5  ;;  %v1024_v5 = vadd.s32 1, %v725_v55 }
  0xcc   : > { %3133 = vmatprep.mubr.msk.bf16.mxu0 %vm822_vm5, %v3528_v39 }
  0xcd   : > { %vm1026_vm8 = vcmp.lt.s32.totalorder %v1024_v5, 128 }
  0xce   : > { %vm4256_vm9 = vmpackc.low %vm1026_vm8, %vm1026_vm8 }
 0x141   : > { %v564_v13 = vpop.permute.xlu0 %563  ;;  %v638_v23 = vpop.permute.xlu1 %637 }
 0x145   : > { %v633_v24 = vpop.permute.xlu0 %632  ;;  %v643_v25 = vpop.permute.xlu1 %642 }
 0x149   : > { %v648_v29 = vpop.permute.xlu0 %647 }
 0x19e   : > { %v608_v14 = vpop.f32.mrb[0].mxu0 }
 0x19f   : > { %v609_v15 = vadd.f32 %v608_v14, %v564_v13  ;;  %v3121_v16 = vpop.f32.mrb[1].mxu0  ;;  %v3531_v14 = vld [vmem:[%s4517_s6 + $0x18] sm:$0xff]  }
 0x1a0   : > { %v611_v17 = vpop.f32.mrb[2].mxu0 }
 0x1a1   : > { %v4198_v18 = vmul.f32 %v4188_v12, %v609_v15  ;;  %v3122_v19 = vpop.f32.mrb[3].mxu0  ;;  %v3532_v15 = vld [vmem:[%s4517_s6 + $0x20] sm:$0xff]  }
 0x1a3   : > { %2625 = vst [vmem:[%s4195_s14] sm:$0xf] %v4198_v18  ;;  %v625_v20 = vpack.c.bf16 %v4198_v18, %v4198_v18 }
 0x1a5   : > { %3373 = vmatprep.subr.msk.bf16.mxu1 %vm667_vm4, %v625_v20  ;;  %v669_v21 = vsel %vm667_vm4, %v625_v20, 0  ;;  %v3533_v20 = vld [vmem:[%s4517_s6 + $0x28] sm:$0xff]  }
 0x1a6   : > { %3124 = vmatpush3.bf16.msra.mxu1 %v669_v21  ;;  %v3534_v21 = vld [vmem:[%s4517_s6 + $0x30] sm:$0xff]  }
 0x1a9   : > { %3126 = vmatmul.mubr.msk.bf16.vlgmr.msra.gmra.mrb[0].mxu1 %vm660_vm3, %v3527_v22 }
 0x27c   : > { %v3127_v26 = vpop.f32.mrb[0].mxu1 }
 0x27d   : > { %v714_v27 = vadd.f32 %v3127_v26, %v643_v25  ;;  %v705_v28 = vpop.f32.mrb[1].mxu1  ;;  %v3537_v25 = vld [vmem:[%s4517_s6 + $0x48] sm:$0xff]   ;;  %v3538_v26 = vld [vmem:[%s4517_s6 + $0x50] sm:$0xff]  }
 0x27e   : > { %v706_v30 = vadd.f32 %v705_v28, %v633_v24  ;;  %v3128_v31 = vpop.f32.mrb[2].mxu1  ;;  %v3536_v24 = vld [vmem:[%s4517_s6 + $0x40] sm:$0xff]   ;;  %v3540_v28 = vld [vmem:[#allocation9] sm:$0xff]  }
 0x27f   : > { %v717_v32 = vadd.f32 %v3128_v31, %v648_v29  ;;  %v708_v33 = vpop.f32.mrb[3].mxu1  ;;  %v4209_v35 = vmul.f32 %v4188_v12, %v714_v27  ;;  %v3539_v27 = vld [vmem:[%s4517_s6 + $0x58] sm:$0xff]   ;;  %3169 = vmatprep.mubr.msk.bf16.mxu1 %vm822_vm5, %v3540_v28 }
 0x280   : > { %v709_v34 = vadd.f32 %v708_v33, %v638_v23  ;;  %v4215_v37 = vmul.f32 %v4188_v12, %v706_v30  ;;  %v3535_v23 = vld [vmem:[%s4517_s6 + $0x38] sm:$0xff]  }
 0x281   : > { %v4212_v36 = vmul.f32 %v4188_v12, %v717_v32 }
 0x282   : > { %v4218_v38 = vmul.f32 %v4188_v12, %v709_v34 }
 0x283   : > { %v3471_v40 = vpack.i.bf16 %v4212_v36, %v4209_v35  ;;  %v910_v10 = vpack.c.bf16 %v4212_v36, %v4209_v35 }
 0x284   : > { %v3466_v41 = vpack.i.bf16 %v4218_v38, %v4215_v37  ;;  %v909_v3 = vpack.c.bf16 %v4218_v38, %v4215_v37 }
 0x285   : > { %3472 = vrot.lane.b32.xlu0 %v3471_v40, %s3885_s22 }
 0x286   : > { %3467 = vrot.lane.b32.xlu1 %v3466_v41, %s3885_s22 }
 0x289   : > { %3482 = vrot.lane.b32.xlu0 %v3471_v40, %s3886_s29 }
 0x28a   : > { %3477 = vrot.lane.b32.xlu1 %v3466_v41, %s3886_s29 }
 0x28d   : > { %789 = vperm.xlu0 %3464, %v759_v42  }
 0x28e   : > { %784 = vperm.xlu1 %3465, %v758_v43  }
 0x291   : > { %799 = vperm.xlu0 %3464, %v761_v44  }
 0x292   : > { %794 = vperm.xlu1 %3465, %v760_v45  }
 0x295   : > { %769 = vperm.xlu0 %3464, %v755_v46  }
 0x296   : > { %764 = vperm.xlu1 %3465, %v754_v47  }
 0x299   : > { %779 = vperm.xlu0 %3464, %v757_v48  }
 0x29a   : > { %774 = vperm.xlu1 %3465, %v756_v49  }
 0x29d   : > { %1207 = vperm.xlu0 %3464, %v1193_v50  }
 0x29e   : > { %1202 = vperm.xlu1 %3465, %v1192_v51  }
 0x2a1   : > { %1217 = vperm.xlu0 %3464, %v1195_v52  }
 0x2a2   : > { %1212 = vperm.xlu1 %3465, %v1194_v53  }
 0x2f7   : > { %v3473_v57 = vpop.permute.xlu0 %3472 }
 0x2f8   : > { %v3468_v58 = vpop.permute.xlu1 %3467  ;;  %v3475_v59 = vunpack.i.h.bf16 %v3473_v57  ;;  %v3474_v60 = vunpack.i.l.bf16 %v3473_v57 }
 0x2f9   : > { %v3470_v61 = vunpack.i.h.bf16 %v3468_v58  ;;  %v3469_v62 = vunpack.i.l.bf16 %v3468_v58 }
 0x2fa   : > { %v2834_v2 = vpack.c.bf16 %v3475_v59, %v3474_v60 }
 0x2fb   : > { %v2831_v1 = vpack.c.bf16 %v3470_v61, %v3469_v62  ;;  %v3483_v16 = vpop.permute.xlu0 %3482 }
 0x2fc   : > { %v3478_v6 = vpop.permute.xlu1 %3477  ;;  %v3485_v17 = vunpack.i.h.bf16 %v3483_v16  ;;  %v3484_v19 = vunpack.i.l.bf16 %v3483_v16 }
 0x2fd   : > { %3129 = vmatprep.subr.msk.bf16.mxu0 %vm4232_vm7, %v2831_v1  ;;  %v3480_v8 = vunpack.i.h.bf16 %v3478_v6  ;;  %v3479_v9 = vunpack.i.l.bf16 %v3478_v6 }
 0x2fe   : > { %3130 = vmatpush3.bf16.msk.msra.mxu0 %vm4232_vm7, %v2831_v1  ;;  %v2872_v22 = vpack.c.bf16 %v3485_v17, %v3484_v19 }
 0x2ff   : > { %3131 = vmatprep.subr.msk.bf16.mxu0 %vm4232_vm7, %v2834_v2  ;;  %v2869_v13 = vpack.c.bf16 %v3480_v8, %v3479_v9 }
 0x302   : > { %3132 = vmatpush3.bf16.msk.msra.mxu0 %vm4232_vm7, %v2834_v2 }
 0x303   : > { %3141 = vmatprep.subr.bf16.mxu0 %v909_v3 }
 0x305   : > { %3134 = vmatmul.mubr.msk.bf16.vlgmr.msra.gmra.mrb[4].mxu0 %vm822_vm5, %v3529_v4 }
 0x306   : > { %3142 = vmatpush3.bf16.msra.mxu0 %v909_v3  ;;  %3137 = vmatprep.mubr.msk.bf16.mxu0 %vm822_vm5, %v3530_v7 }
 0x307   : > { %3143 = vmatprep.subr.bf16.mxu0 %v910_v10 }
 0x30a   : > { %3144 = vmatpush3.bf16.msra.mxu0 %v910_v10 }
 0x30b   : > { %3153 = vmatprep.subr.msk.bf16.mxu0 %vm4256_vm9, %v2869_v13 }
 0x30c   : > { %v790_v31 = vpop.permute.xlu0 %789 }
 0x30d   : > { %3138 = vmatmul.mubr.msk.bf16.gmra.mrb[8].mxu0 %vm822_vm5, %v3531_v14  ;;  %v785_v29 = vpop.permute.xlu1 %784 }
 0x30e   : > { %3145 = vmatprep.mubr.msk.bf16.mxu0 %vm822_vm5, %v3532_v15 }
 0x310   : > { %v800_v40 = vpop.permute.xlu0 %799 }
 0x311   : > { %v795_v39 = vpop.permute.xlu1 %794 }
 0x314   : > { %v770_v52 = vpop.permute.xlu0 %769 }
 0x315   : > { %3146 = vmatmul.mubr.msk.bf16.vlgmr.msra.gmra.mrb[4].mxu0 %vm822_vm5, %v3533_v20  ;;  %v765_v46 = vpop.permute.xlu1 %764 }
 0x316   : > { %3154 = vmatpush3.bf16.msk.msra.mxu0 %vm4256_vm9, %v2869_v13  ;;  %3149 = vmatprep.mubr.msk.bf16.mxu0 %vm822_vm5, %v3534_v21 }
 0x317   : > { %3155 = vmatprep.subr.msk.bf16.mxu0 %vm4256_vm9, %v2872_v22 }
 0x318   : > { %v780_v57 = vpop.permute.xlu0 %779 }
 0x319   : > { %v775_v55 = vpop.permute.xlu1 %774 }
 0x31a   : > { %3156 = vmatpush3.bf16.msk.msra.mxu0 %vm4256_vm9, %v2872_v22 }
 0x31d   : > { %3150 = vmatmul.mubr.msk.bf16.gmra.mrb[8].mxu0 %vm822_vm5, %v3535_v23 }
 0x31e   : > { %3157 = vmatprep.mubr.msk.bf16.mxu0 %vm822_vm5, %v3536_v24  ;;  %v3541_v24 = vld [vmem:[#allocation9 + $0x8] sm:$0xff]  }
 0x325   : > { %3158 = vmatmul.mubr.msk.bf16.vlgmr.msra.gmra.mrb[4].mxu0 %vm822_vm5, %v3537_v25  ;;  %v1203_v25 = vpop.permute.xlu1 %1202 }
 0x326   : > { %3161 = vmatprep.mubr.msk.bf16.mxu0 %vm822_vm5, %v3538_v26  ;;  %v1208_v26 = vpop.permute.xlu0 %1207 }
 0x32d   : > { %3162 = vmatmul.mubr.msk.bf16.gmra.mrb[8].mxu0 %vm822_vm5, %v3539_v27  ;;  %v1213_v27 = vpop.permute.xlu1 %1212 }
 0x3f8   : > { %v3159_v30 = vpop.f32.mrb[4].mxu0 }
 0x3f9   : > { %v1111_v32 = vpop.f32.mrb[5].mxu0  ;;  %v3281_v56 = vadd.f32 %v3159_v30, %v775_v55  ;;  %v1373_v55 = vld [vmem:[#allocation7 + $0x40] sm:$0xff] }
 0x3fa   : > { %v3160_v33 = vpop.f32.mrb[6].mxu0  ;;  %v3282_v58 = vadd.f32 %v1111_v32, %v765_v46  ;;  %v1218_v32 = vpop.permute.xlu0 %1217 }
 0x3fb   : > { %v1114_v34 = vpop.f32.mrb[7].mxu0  ;;  %v3283_v59 = vadd.f32 %v3160_v33, %v780_v57  ;;  %v1375_v57 = vld [vmem:[#allocation7 + $0x50] sm:$0xff] }
 0x3fc   : > { %v3284_v60 = vadd.f32 %v1114_v34, %v770_v52  ;;  %v1380_v52 = vld [vmem:[#allocation7 + $0x78] sm:$0xff] }
 0x400   : > { %v3163_v41 = vpop.f32.mrb[8].mxu0 }
 0x401   : > { %v3285_v42 = vadd.f32 %v3163_v41, %v795_v39  ;;  %v1127_v43 = vpop.f32.mrb[9].mxu0  ;;  %v3543_v39 = vld [vmem:[#allocation9 + $0x18] sm:$0xff]  }
 0x402   : > { %v3286_v44 = vadd.f32 %v1127_v43, %v785_v29  ;;  %v3164_v45 = vpop.f32.mrb[10].mxu0 }
 0x403   : > { %v2880_v47 = vmul.f32 -1.442695, %v3285_v42  ;;  %v3287_v48 = vadd.f32 %v3164_v45, %v800_v40  ;;  %v1130_v49 = vpop.f32.mrb[11].mxu0 }
 0x404   : > { %v2878_v50 = vmul.f32 -1.442695, %v3286_v44  ;;  %v3288_v51 = vadd.f32 %v1130_v49, %v790_v31  ;;  %v3542_v31 = vld [vmem:[#allocation9 + $0x10] sm:$0xff]  }
 0x405   : > { %3576 = vpow2.f32 %v2880_v47  ;;  %v2881_v53 = vmul.f32 -1.442695, %v3287_v48 }
 0x406   : > { %3578 = vpow2.f32 %v2878_v50  ;;  %v2879_v54 = vmul.f32 -1.442695, %v3288_v51  ;;  %v1378_v50 = vld [vmem:[#allocation7 + $0x68] sm:$0xff]  ;;  %v1377_v51 = vld [vmem:[#allocation7 + $0x60] sm:$0xff] }
 0x407   : > { %3580 = vpow2.f32 %v2881_v53  ;;  %v1379_v53 = vld [vmem:[#allocation7 + $0x70] sm:$0xff] }
 0x408   : > { %3582 = vpow2.f32 %v2879_v54  ;;  %v1374_v54 = vld [vmem:[#allocation7 + $0x48] sm:$0xff] }
 0x409   : > { %3584 = vtanh.f32 %v3281_v56  ;;  %v1376_v56 = vld [vmem:[#allocation7 + $0x58] sm:$0xff] }
 0x40a   : > { %3586 = vtanh.f32 %v3282_v58  ;;  %v1807_v58 = vld [vmem:[#allocation10 + $0x48] sm:$0xff] }
 0x40b   : > { %3588 = vtanh.f32 %v3283_v59  ;;  %v1806_v59 = vld [vmem:[#allocation10 + $0x40] sm:$0xff] }
 0x40c   : > { %3590 = vtanh.f32 %v3284_v60  ;;  %v1809_v60 = vld [vmem:[#allocation10 + $0x58] sm:$0xff] }
 0x40f   : > { %v3577_v61 = vpop.eup %3576 }
 0x410   : > { %v3579_v62 = vpop.eup %3578  ;;  %v1168_v1 = vadd.f32 1.0, %v3577_v61  ;;  %v1808_v61 = vld [vmem:[#allocation10 + $0x50] sm:$0xff] }
 0x411   : > { %v3581_v2 = vpop.eup %3580  ;;  %v1166_v3 = vadd.f32 1.0, %v3579_v62 }
 0x412   : > { %v3583_v4 = vpop.eup %3582  ;;  %3592 = vrcp.f32 %v1168_v1  ;;  %v1169_v5 = vadd.f32 1.0, %v3581_v2 }
 0x413   : > { %3594 = vrcp.f32 %v1166_v3  ;;  %v1167_v6 = vadd.f32 1.0, %v3583_v4  ;;  %v3585_v7 = vpop.eup %3584 }
 0x414   : > { %3596 = vrcp.f32 %v1169_v5  ;;  %v3587_v8 = vpop.eup %3586 }
 0x415   : > { %3598 = vrcp.f32 %v1167_v6  ;;  %v3589_v9 = vpop.eup %3588 }
 0x416   : > { %v3591_v10 = vpop.eup %3590 }
 0x41c   : > { %v3593_v13 = vpop.eup %3592 }
 0x41d   : > { %v3595_v14 = vpop.eup %3594  ;;  %v1180_v15 = vmul.f32 %v3593_v13, %v3585_v7  ;;  %v3546_v13 = vld [vmem:[%s4517_s6 + $0x70] sm:$0xff]  }
 0x41e   : > { %v3597_v16 = vpop.eup %3596  ;;  %v1178_v17 = vmul.f32 %v3595_v14, %v3587_v8 }
 0x41f   : > { %v3599_v19 = vpop.eup %3598  ;;  %v1181_v20 = vmul.f32 %v3597_v16, %v3589_v9  ;;  %v3545_v9 = vld [vmem:[%s4517_s6 + $0x68] sm:$0xff]  }
 0x420   : > { %v1179_v21 = vmul.f32 %v3599_v19, %v3591_v10  ;;  %v3547_v19 = vld [vmem:[%s4517_s6 + $0x78] sm:$0xff]  }
 0x421   : > { %v1191_v22 = vpack.c.bf16 %v1181_v20, %v1180_v15  ;;  %v3548_v20 = vld [vmem:[%s4517_s6 + $0x80] sm:$0xff]  }
 0x422   : > { %v1190_v23 = vpack.c.bf16 %v1179_v21, %v1178_v17 }
 0x424   : > { %3165 = vmatprep.subr.bf16.mxu1 %v1190_v23 }
 0x425   : > { %3166 = vmatpush3.bf16.msra.mxu1 %v1190_v23 }
 0x426   : > { %3167 = vmatprep.subr.bf16.mxu1 %v1191_v22 }
 0x429   : > { %3168 = vmatpush3.bf16.msra.mxu1 %v1191_v22 }
 0x42c   : > { %3170 = vmatmul.mubr.msk.bf16.vlgmr.msra.gmra.mrb[4].mxu1 %vm822_vm5, %v3541_v24  ;;  %v3549_v24 = vld [vmem:[%s4517_s6 + $0x88] sm:$0xff]  }
 0x42d   : > { %3173 = vmatprep.mubr.msk.bf16.mxu1 %vm822_vm5, %v3542_v31  ;;  %v3555_v31 = vld [vmem:[%s4517_s6 + $0xb8] sm:$0xff]  }
 0x434   : > { %3174 = vmatmul.mubr.msk.bf16.gmra.mrb[8].mxu1 %vm822_vm5, %v3543_v39 }
 0x4ff   : > { %v3171_v28 = vpop.f32.mrb[4].mxu1 }
 0x500   : > { %v1315_v29 = vadd.f32 %v3171_v28, %v1213_v27  ;;  %v1306_v30 = vpop.f32.mrb[5].mxu1  ;;  %v3551_v27 = vld [vmem:[%s4517_s6 + $0x98] sm:$0xff]   ;;  %v3552_v28 = vld [vmem:[%s4517_s6 + $0xa0] sm:$0xff]  }
 0x501   : > { %v1307_v33 = vadd.f32 %v1306_v30, %v1203_v25  ;;  %v3172_v34 = vpop.f32.mrb[6].mxu1  ;;  %v3550_v25 = vld [vmem:[%s4517_s6 + $0x90] sm:$0xff]  }
 0x502   : > { %v1339_v40 = vadd.f32 %v1315_v29, %v4209_v35  ;;  %v1318_v41 = vadd.f32 %v3172_v34, %v1218_v32  ;;  %v1309_v42 = vpop.f32.mrb[7].mxu1  ;;  %v3553_v29 = vld [vmem:[%s4517_s6 + $0xa8] sm:$0xff]   ;;  %v3554_v30 = vld [vmem:[%s4517_s6 + $0xb0] sm:$0xff]  }
 0x503   : > { %v1337_v43 = vadd.f32 %v1307_v33, %v4215_v37  ;;  %v1310_v44 = vadd.f32 %v1309_v42, %v1208_v26  ;;  %v3556_v32 = vld [vmem:[#allocation9 + $0x20] sm:$0xff]  }
 0x504   : > { %v1340_v45 = vadd.f32 %v1318_v41, %v4212_v36  ;;  %v4313_v47 = vmul.f32 %v4188_v12, %v1339_v40  ;;  %v3544_v36 = vld [vmem:[%s4517_s6 + $0x60] sm:$0xff]  }
 0x505   : > { %v1338_v46 = vadd.f32 %v1310_v44, %v4218_v38  ;;  %v4319_v35 = vmul.f32 %v4188_v12, %v1337_v43  ;;  %3181 = vmatprep.mubr.msk.bf16.mxu1 %vm822_vm5, %v3544_v36 }
 0x506   : > { %v4316_v48 = vmul.f32 %v4188_v12, %v1340_v45 }
 0x507   : > { %v4322_v49 = vmul.f32 %v4188_v12, %v1338_v46 }
 0x508   : > { %v3491_v37 = vpack.i.bf16 %v4316_v48, %v4313_v47  ;;  %v1528_v16 = vpack.c.bf16 %v4316_v48, %v4313_v47 }
 0x509   : > { %v3486_v38 = vpack.i.bf16 %v4322_v49, %v4319_v35  ;;  %v1527_v8 = vpack.c.bf16 %v4322_v49, %v4319_v35 }
 0x50a   : > { %3492 = vrot.lane.b32.xlu0 %v3491_v37, %s3885_s22 }
 0x50b   : > { %3487 = vrot.lane.b32.xlu1 %v3486_v38, %s3885_s22 }
 0x50e   : > { %3502 = vrot.lane.b32.xlu0 %v3491_v37, %s3886_s29 }
 0x50f   : > { %3497 = vrot.lane.b32.xlu1 %v3486_v38, %s3886_s29 }
 0x512   : > { %1408 = vperm.xlu0 %3464, %v1378_v50  }
 0x513   : > { %1403 = vperm.xlu1 %3465, %v1377_v51  }
 0x516   : > { %1418 = vperm.xlu0 %3464, %v1380_v52  }
 0x517   : > { %1413 = vperm.xlu1 %3465, %v1379_v53  }
 0x51a   : > { %1388 = vperm.xlu0 %3464, %v1374_v54  }
 0x51b   : > { %1383 = vperm.xlu1 %3465, %v1373_v55  }
 0x51e   : > { %1398 = vperm.xlu0 %3464, %v1376_v56  }
 0x51f   : > { %1393 = vperm.xlu1 %3465, %v1375_v57  }
 0x522   : > { %1821 = vperm.xlu0 %3464, %v1807_v58  }
 0x523   : > { %1816 = vperm.xlu1 %3465, %v1806_v59  }
 0x526   : > { %1831 = vperm.xlu0 %3464, %v1809_v60  }
 0x527   : > { %1826 = vperm.xlu1 %3465, %v1808_v61  }
 0x57c   : > { %v3493_v62 = vpop.permute.xlu0 %3492 }
 0x57d   : > { %v3488_v1 = vpop.permute.xlu1 %3487  ;;  %v3495_v2 = vunpack.i.h.bf16 %v3493_v62  ;;  %v3494_v3 = vunpack.i.l.bf16 %v3493_v62 }
 0x57e   : > { %v3490_v4 = vunpack.i.h.bf16 %v3488_v1  ;;  %v3489_v5 = vunpack.i.l.bf16 %v3488_v1 }
 0x57f   : > { %v2906_v7 = vpack.c.bf16 %v3495_v2, %v3494_v3 }
 0x580   : > { %v2903_v6 = vpack.c.bf16 %v3490_v4, %v3489_v5  ;;  %v3503_v21 = vpop.permute.xlu0 %3502 }
 0x581   : > { %v3498_v10 = vpop.permute.xlu1 %3497  ;;  %v3505_v22 = vunpack.i.h.bf16 %v3503_v21  ;;  %v3504_v23 = vunpack.i.l.bf16 %v3503_v21 }
 0x582   : > { %3177 = vmatprep.subr.msk.bf16.mxu1 %vm4232_vm7, %v2903_v6  ;;  %v3500_v14 = vunpack.i.h.bf16 %v3498_v10  ;;  %v3499_v15 = vunpack.i.l.bf16 %v3498_v10 }
 0x583   : > { %3178 = vmatpush3.bf16.msk.msra.mxu1 %vm4232_vm7, %v2903_v6  ;;  %v2944_v26 = vpack.c.bf16 %v3505_v22, %v3504_v23 }
 0x584   : > { %3179 = vmatprep.subr.msk.bf16.mxu1 %vm4232_vm7, %v2906_v7  ;;  %v2941_v17 = vpack.c.bf16 %v3500_v14, %v3499_v15 }
 0x587   : > { %3180 = vmatpush3.bf16.msk.msra.mxu1 %vm4232_vm7, %v2906_v7 }
 0x588   : > { %3189 = vmatprep.subr.bf16.mxu1 %v1527_v8 }
 0x58a   : > { %3182 = vmatmul.mubr.msk.bf16.vlgmr.msra.gmra.mrb[12].mxu1 %vm822_vm5, %v3545_v9 }
 0x58b   : > { %3190 = vmatpush3.bf16.msra.mxu1 %v1527_v8  ;;  %3185 = vmatprep.mubr.msk.bf16.mxu1 %vm822_vm5, %v3546_v13 }
 0x58c   : > { %3191 = vmatprep.subr.bf16.mxu1 %v1528_v16 }
 0x58f   : > { %3192 = vmatpush3.bf16.msra.mxu1 %v1528_v16 }
 0x590   : > { %3201 = vmatprep.subr.msk.bf16.mxu1 %vm4256_vm9, %v2941_v17 }
 0x591   : > { %v1409_v39 = vpop.permute.xlu0 %1408 }
 0x592   : > { %3186 = vmatmul.mubr.msk.bf16.gmra.mrb[16].mxu1 %vm822_vm5, %v3547_v19  ;;  %v1404_v33 = vpop.permute.xlu1 %1403 }
 0x593   : > { %3193 = vmatprep.mubr.msk.bf16.mxu1 %vm822_vm5, %v3548_v20 }
 0x595   : > { %v1419_v44 = vpop.permute.xlu0 %1418 }
 0x596   : > { %v1414_v43 = vpop.permute.xlu1 %1413 }
 0x599   : > { %v1389_v56 = vpop.permute.xlu0 %1388 }
 0x59a   : > { %3194 = vmatmul.mubr.msk.bf16.vlgmr.msra.gmra.mrb[12].mxu1 %vm822_vm5, %v3549_v24  ;;  %v1384_v50 = vpop.permute.xlu1 %1383 }
 0x59b   : > { %3202 = vmatpush3.bf16.msk.msra.mxu1 %vm4256_vm9, %v2941_v17  ;;  %3197 = vmatprep.mubr.msk.bf16.mxu1 %vm822_vm5, %v3550_v25 }
 0x59c   : > { %3203 = vmatprep.subr.msk.bf16.mxu1 %vm4256_vm9, %v2944_v26 }
 0x59d   : > { %v1399_v61 = vpop.permute.xlu0 %1398 }
 0x59e   : > { %v1394_v59 = vpop.permute.xlu1 %1393 }
 0x59f   : > { %3204 = vmatpush3.bf16.msk.msra.mxu1 %vm4256_vm9, %v2944_v26 }
 0x5a2   : > { %3198 = vmatmul.mubr.msk.bf16.gmra.mrb[16].mxu1 %vm822_vm5, %v3551_v27 }
 0x5a3   : > { %3205 = vmatprep.mubr.msk.bf16.mxu1 %vm822_vm5, %v3552_v28  ;;  %v3557_v28 = vld [vmem:[#allocation9 + $0x28] sm:$0xff]  }
 0x5aa   : > { %3206 = vmatmul.mubr.msk.bf16.vlgmr.msra.gmra.mrb[12].mxu1 %vm822_vm5, %v3553_v29  ;;  %v1817_v29 = vpop.permute.xlu1 %1816 }
 0x5ab   : > { %3209 = vmatprep.mubr.msk.bf16.mxu1 %vm822_vm5, %v3554_v30  ;;  %v1822_v30 = vpop.permute.xlu0 %1821 }
 0x5b2   : > { %3210 = vmatmul.mubr.msk.bf16.gmra.mrb[16].mxu1 %vm822_vm5, %v3555_v31  ;;  %v1827_v31 = vpop.permute.xlu1 %1826 }
 0x5b3   : > { %3217 = vmatprep.mubr.msk.bf16.mxu1 %vm822_vm5, %v3556_v32 }
 0x67d   : > { %v3207_v34 = vpop.f32.mrb[12].mxu1 }
 0x67e   : > { %v1723_v40 = vpop.f32.mrb[13].mxu1  ;;  %v3301_v60 = vadd.f32 %v3207_v34, %v1394_v59  ;;  %v1990_v59 = vld [vmem:[#allocation7 + $0x98] sm:$0xff] }
 0x67f   : > { %v3208_v41 = vpop.f32.mrb[14].mxu1  ;;  %v3302_v62 = vadd.f32 %v1723_v40, %v1384_v50 }
 0x680   : > { %v1726_v42 = vpop.f32.mrb[15].mxu1  ;;  %v3303_v1 = vadd.f32 %v3208_v41, %v1399_v61  ;;  %v1197_v61 = vld [vmem:[#allocation10 + $0x28] sm:$0xff] }
 0x681   : > { %v3304_v2 = vadd.f32 %v1726_v42, %v1389_v56  ;;  %v1993_v56 = vld [vmem:[#allocation7 + $0xb0] sm:$0xff] }
 0x685   : > { %v3211_v45 = vpop.f32.mrb[16].mxu1 }
 0x686   : > { %v3305_v46 = vadd.f32 %v3211_v45, %v1414_v43  ;;  %v1739_v37 = vpop.f32.mrb[17].mxu1 }
 0x687   : > { %v3306_v36 = vadd.f32 %v1739_v37, %v1404_v33  ;;  %v3212_v38 = vpop.f32.mrb[18].mxu1 }
 0x688   : > { %v2952_v51 = vmul.f32 -1.442695, %v3305_v46  ;;  %v3307_v52 = vadd.f32 %v3212_v38, %v1419_v44  ;;  %v1742_v53 = vpop.f32.mrb[19].mxu1 }
 0x689   : > { %v2950_v54 = vmul.f32 -1.442695, %v3306_v36  ;;  %v3308_v55 = vadd.f32 %v1742_v53, %v1409_v39  ;;  %v1832_v39 = vpop.permute.xlu0 %1831 }
 0x68a   : > { %3600 = vpow2.f32 %v2952_v51  ;;  %v2953_v57 = vmul.f32 -1.442695, %v3307_v52 }
 0x68b   : > { %3602 = vpow2.f32 %v2950_v54  ;;  %v2951_v58 = vmul.f32 -1.442695, %v3308_v55 }
 0x68c   : > { %3604 = vpow2.f32 %v2953_v57  ;;  %v1988_v57 = vld [vmem:[#allocation7 + $0x88] sm:$0xff] }
 0x68d   : > { %3606 = vpow2.f32 %v2951_v58  ;;  %v1987_v58 = vld [vmem:[#allocation7 + $0x80] sm:$0xff] }
 0x68e   : > { %3608 = vtanh.f32 %v3301_v60  ;;  %v1989_v60 = vld [vmem:[#allocation7 + $0x90] sm:$0xff] }
 0x68f   : > { %3610 = vtanh.f32 %v3302_v62  ;;  %v1196_v62 = vld [vmem:[#allocation10 + $0x20] sm:$0xff] }
 0x690   : > { %3612 = vtanh.f32 %v3303_v1  ;;  %v1811_v1 = vld [vmem:[#allocation10 + $0x68] sm:$0xff] }
 0x691   : > { %3614 = vtanh.f32 %v3304_v2  ;;  %v1810_v2 = vld [vmem:[#allocation10 + $0x60] sm:$0xff] }
 0x694   : > { %v3601_v3 = vpop.eup %3600 }
 0x695   : > { %v3603_v4 = vpop.eup %3602  ;;  %v1780_v5 = vadd.f32 1.0, %v3601_v3  ;;  %v2425_v3 = vld [vmem:[#allocation10 + $0xa8] sm:$0xff] }
 0x696   : > { %v3605_v6 = vpop.eup %3604  ;;  %v1778_v7 = vadd.f32 1.0, %v3603_v4  ;;  %v2424_v4 = vld [vmem:[#allocation10 + $0xa0] sm:$0xff] }
 0x697   : > { %v3607_v8 = vpop.eup %3606  ;;  %3616 = vrcp.f32 %v1780_v5  ;;  %v1781_v9 = vadd.f32 1.0, %v3605_v6  ;;  %v1199_v5 = vld [vmem:[#allocation10 + $0x38] sm:$0xff]  ;;  %v1198_v6 = vld [vmem:[#allocation10 + $0x30] sm:$0xff] }
 0x698   : > { %3618 = vrcp.f32 %v1778_v7  ;;  %v1779_v10 = vadd.f32 1.0, %v3607_v8  ;;  %v3609_v13 = vpop.eup %3608  ;;  %v1813_v7 = vld [vmem:[#allocation10 + $0x78] sm:$0xff]  ;;  %v1812_v8 = vld [vmem:[#allocation10 + $0x70] sm:$0xff] }
 0x699   : > { %3620 = vrcp.f32 %v1781_v9  ;;  %v3611_v14 = vpop.eup %3610  ;;  %v2427_v9 = vld [vmem:[#allocation10 + $0xb8] sm:$0xff] }
 0x69a   : > { %3622 = vrcp.f32 %v1779_v10  ;;  %v3613_v15 = vpop.eup %3612  ;;  %v2426_v10 = vld [vmem:[#allocation10 + $0xb0] sm:$0xff] }
 0x69b   : > { %v3615_v16 = vpop.eup %3614 }
 0x6a1   : > { %v3617_v17 = vpop.eup %3616 }
 0x6a2   : > { %v3619_v19 = vpop.eup %3618  ;;  %v1792_v20 = vmul.f32 %v3617_v17, %v3609_v13  ;;  %v2568_v13 = vld [vmem:[%s4522_s11] sm:$0xff] }
 0x6a3   : > { %v3621_v21 = vpop.eup %3620  ;;  %v1790_v22 = vmul.f32 %v3619_v19, %v3611_v14 }
 0x6a4   : > { %v3623_v23 = vpop.eup %3622  ;;  %v1793_v24 = vmul.f32 %v3621_v21, %v3613_v15 }
 0x6a5   : > { %v1791_v25 = vmul.f32 %v3623_v23, %v3615_v16  ;;  %v3559_v23 = vld [vmem:[%s4517_s6 + $0xc8] sm:$0xff]  }
 0x6a6   : > { %v1804_v26 = vpack.c.bf16 %v1793_v24, %v1792_v20 }
 0x6a7   : > { %v1803_v27 = vpack.c.bf16 %v1791_v25, %v1790_v22  ;;  %v3560_v25 = vld [vmem:[%s4517_s6 + $0xd0] sm:$0xff]  }
 0x6a9   : > { %3213 = vmatprep.subr.bf16.mxu1 %v1803_v27 }
 0x6aa   : > { %3214 = vmatpush3.bf16.msra.mxu1 %v1803_v27 }
 0x6ab   : > { %3215 = vmatprep.subr.bf16.mxu1 %v1804_v26 }
 0x6ae   : > { %3216 = vmatpush3.bf16.msra.mxu1 %v1804_v26 }
 0x6b1   : > { %3218 = vmatmul.mubr.msk.bf16.vlgmr.msra.gmra.mrb[20].mxu1 %vm822_vm5, %v3557_v28 }
 0x784   : > { %v3219_v32 = vpop.f32.mrb[20].mxu1 }
 0x785   : > { %v1929_v33 = vadd.f32 %v3219_v32, %v1827_v31  ;;  %v1920_v34 = vpop.f32.mrb[21].mxu1 }
 0x786   : > { %v1921_v40 = vadd.f32 %v1920_v34, %v1817_v29  ;;  %v3220_v41 = vpop.f32.mrb[22].mxu1  ;;  %v3562_v29 = vld [vmem:[%s4517_s6 + $0xe0] sm:$0xff]   ;;  %v3564_v34 = vld [vmem:[%s4517_s6 + $0xf0] sm:$0xff]  }
 0x787   : > { %v1953_v42 = vadd.f32 %v1929_v33, %v4313_v47  ;;  %v1932_v43 = vadd.f32 %v3220_v41, %v1832_v39  ;;  %v1923_v44 = vpop.f32.mrb[23].mxu1  ;;  %v3558_v47 = vld [vmem:[%s4517_s6 + $0xc0] sm:$0xff]   ;;  %v3563_v33 = vld [vmem:[%s4517_s6 + $0xe8] sm:$0xff]  }
 0x788   : > { %v1951_v45 = vadd.f32 %v1921_v40, %v4319_v35  ;;  %v1924_v46 = vadd.f32 %v1923_v44, %v1822_v30  ;;  %3229 = vmatprep.mubr.msk.bf16.mxu0 %vm822_vm5, %v3558_v47  ;;  %v3565_v40 = vld [vmem:[%s4517_s6 + $0xf8] sm:$0xff]   ;;  %v3566_v41 = vld [vmem:[%s4517_s6 + $0x100] sm:$0xff]  }
 0x789   : > { %v1954_v37 = vadd.f32 %v1932_v43, %v4316_v48  ;;  %v1957_v38 = vmul.f32 %v4188_v12, %v1953_v42  ;;  %v1991_v48 = vld [vmem:[#allocation7 + $0xa0] sm:$0xff]  ;;  %v3570_v44 = vld [vmem:[#allocation9 + $0x30] sm:$0xff]  }
 0x78a   : > { %v1952_v36 = vadd.f32 %v1924_v46, %v4322_v49  ;;  %v1955_v51 = vmul.f32 %v4188_v12, %v1951_v45  ;;  %v1994_v49 = vld [vmem:[#allocation7 + $0xb8] sm:$0xff]  ;;  %v3568_v43 = vld [vmem:[%s4517_s6 + $0x110] sm:$0xff]   ;;  %3221 = vmatprep.mubr.msk.bf16.mxu1 %vm822_vm5, %v3570_v44 }
 0x78b   : > { %v1958_v50 = vmul.f32 %v4188_v12, %v1954_v37  ;;  %v3567_v42 = vld [vmem:[%s4517_s6 + $0x108] sm:$0xff]  }
 0x78c   : > { %v1956_v52 = vmul.f32 %v4188_v12, %v1952_v36  ;;  %v1992_v12 = vld [vmem:[#allocation7 + $0xa8] sm:$0xff]  ;;  %v3571_v45 = vld [vmem:[#allocation9 + $0x38] sm:$0xff]   ;;  %v3572_v46 = vld [vmem:[#allocation9 + $0x40] sm:$0xff]  }
 0x78d   : > { %v3511_v53 = vpack.i.bf16 %v1958_v50, %v1957_v38  ;;  %v4413_v54 = vpack.c.bf16 %v1958_v50, %v1957_v38  ;;  %3222 = vmatmul.mubr.msk.bf16.gmra.mrb[8].mxu1 %vm822_vm5, %v3571_v45 }
 0x78e   : > { %v3506_v35 = vpack.i.bf16 %v1956_v52, %v1955_v51  ;;  %v4415_v55 = vpack.c.bf16 %v1956_v52, %v1955_v51  ;;  %3265 = vmatprep.mubr.msk.bf16.mxu1 %vm822_vm5, %v3572_v46 }
 0x78f   : > { %3512 = vrot.lane.b32.xlu0 %v3511_v53, %s3885_s22 }
 0x790   : > { %3507 = vrot.lane.b32.xlu1 %v3506_v35, %s3885_s22 }
 0x793   : > { %3522 = vrot.lane.b32.xlu0 %v3511_v53, %s3886_s29 }
 0x794   : > { %3517 = vrot.lane.b32.xlu1 %v3506_v35, %s3886_s29 }
 0x797   : > { %2022 = vperm.xlu0 %3464, %v1992_v12  }
 0x798   : > { %2017 = vperm.xlu1 %3465, %v1991_v48  }
 0x79b   : > { %2032 = vperm.xlu0 %3464, %v1994_v49  }
 0x79c   : > { %2027 = vperm.xlu1 %3465, %v1993_v56  }
 0x79f   : > { %2002 = vperm.xlu0 %3464, %v1988_v57  }
 0x7a0   : > { %1997 = vperm.xlu1 %3465, %v1987_v58  }
 0x7a3   : > { %2012 = vperm.xlu0 %3464, %v1990_v59  }
 0x7a4   : > { %2007 = vperm.xlu1 %3465, %v1989_v60  }
 0x7a7   : > { %1227 = vperm.xlu0 %3464, %v1197_v61  }
 0x7a8   : > { %1222 = vperm.xlu1 %3465, %v1196_v62  }
 0x7ab   : > { %1841 = vperm.xlu0 %3464, %v1811_v1  }
 0x7ac   : > { %1836 = vperm.xlu1 %3465, %v1810_v2  }
 0x7af   : > { %2451 = vperm.xlu0 %3464, %v2425_v3  }
 0x7b0   : > { %2446 = vperm.xlu1 %3465, %v2424_v4  }
 0x7b3   : > { %1237 = vperm.xlu0 %3464, %v1199_v5  }
 0x7b4   : > { %1232 = vperm.xlu1 %3465, %v1198_v6  }
 0x7b7   : > { %1851 = vperm.xlu0 %3464, %v1813_v7  }
 0x7b8   : > { %1846 = vperm.xlu1 %3465, %v1812_v8  }
 0x7bb   : > { %2461 = vperm.xlu0 %3464, %v2427_v9  }
 0x7bc   : > { %2456 = vperm.xlu1 %3465, %v2426_v10  }
 0x7c0   : > { %2571 = vperm.xlu1 %3465, %v2568_v13  }
 0x801   : > { %v3513_v14 = vpop.permute.xlu0 %3512 }
 0x802   : > { %v3508_v15 = vpop.permute.xlu1 %3507  ;;  %v3515_v16 = vunpack.i.h.bf16 %v3513_v14  ;;  %v3514_v17 = vunpack.i.l.bf16 %v3513_v14 }
 0x803   : > { %v3510_v19 = vunpack.i.h.bf16 %v3508_v15  ;;  %v3509_v20 = vunpack.i.l.bf16 %v3508_v15 }
 0x804   : > { %v2978_v22 = vpack.c.bf16 %v3515_v16, %v3514_v17 }
 0x805   : > { %v2975_v21 = vpack.c.bf16 %v3510_v19, %v3509_v20  ;;  %v3523_v30 = vpop.permute.xlu0 %3522 }
 0x806   : > { %v3518_v24 = vpop.permute.xlu1 %3517  ;;  %v3525_v31 = vunpack.i.h.bf16 %v3523_v30  ;;  %v3524_v32 = vunpack.i.l.bf16 %v3523_v30 }
 0x807   : > { %3225 = vmatprep.subr.msk.bf16.mxu0 %vm4232_vm7, %v2975_v21  ;;  %v3520_v26 = vunpack.i.h.bf16 %v3518_v24  ;;  %v3519_v27 = vunpack.i.l.bf16 %v3518_v24 }
 0x808   : > { %3226 = vmatpush3.bf16.msk.msra.mxu0 %vm4232_vm7, %v2975_v21  ;;  %v3016_v39 = vpack.c.bf16 %v3525_v31, %v3524_v32  ;;  %v3573_v32 = vld [vmem:[#allocation9 + $0x48] sm:$0xff]  }
 0x809   : > { %3227 = vmatprep.subr.msk.bf16.mxu0 %vm4232_vm7, %v2978_v22  ;;  %v3013_v28 = vpack.c.bf16 %v3520_v26, %v3519_v27 }
 0x80c   : > { %3228 = vmatpush3.bf16.msk.msra.mxu0 %vm4232_vm7, %v2978_v22 }
 0x80d   : > { %3237 = vmatprep.subr.bf16.mxu0 %v4415_v55 }
 0x80f   : > { %3230 = vmatmul.mubr.msk.bf16.vlgmr.msra.gmra.mrb[12].mxu0 %vm822_vm5, %v3559_v23 }
 0x810   : > { %3238 = vmatpush3.bf16.msra.mxu0 %v4415_v55  ;;  %3233 = vmatprep.mubr.msk.bf16.mxu0 %vm822_vm5, %v3560_v25 }
 0x811   : > { %3239 = vmatprep.subr.bf16.mxu0 %v4413_v54 }
 0x814   : > { %3240 = vmatpush3.bf16.msra.mxu0 %v4413_v54 }
 0x815   : > { %3249 = vmatprep.subr.msk.bf16.mxu0 %vm4256_vm9, %v3013_v28 }
 0x816   : > { %v2023_v38 = vpop.permute.xlu0 %2022 }
 0x817   : > { %3234 = vmatmul.mubr.msk.bf16.gmra.mrb[16].mxu0 %vm822_vm5, %v3561_v63  ;;  %v2018_v37 = vpop.permute.xlu1 %2017 }
 0x818   : > { %3241 = vmatprep.mubr.msk.bf16.mxu0 %vm822_vm5, %v3562_v29 }
 0x81a   : > { %v2033_v47 = vpop.permute.xlu0 %2032 }
 0x81b   : > { %v2028_v53 = vpop.permute.xlu1 %2027 }
 0x81e   : > { %v2003_v61 = vpop.permute.xlu0 %2002 }
 0x81f   : > { %3242 = vmatmul.mubr.msk.bf16.vlgmr.msra.gmra.mrb[12].mxu0 %vm822_vm5, %v3563_v33  ;;  %v1998_v49 = vpop.permute.xlu1 %1997  ;;  %v3574_v33 = vld [vmem:[#allocation9 + $0x50] sm:$0xff]  }
 0x820   : > { %3250 = vmatpush3.bf16.msk.msra.mxu0 %vm4256_vm9, %v3013_v28  ;;  %3245 = vmatprep.mubr.msk.bf16.mxu0 %vm822_vm5, %v3564_v34  ;;  %v3575_v34 = vld [vmem:[#allocation9 + $0x58] sm:$0xff]  }
 0x821   : > { %3251 = vmatprep.subr.msk.bf16.mxu0 %vm4256_vm9, %v3016_v39 }
 0x822   : > { %v2013_v4 = vpop.permute.xlu0 %2012 }
 0x823   : > { %v2008_v2 = vpop.permute.xlu1 %2007 }
 0x824   : > { %3252 = vmatpush3.bf16.msk.msra.mxu0 %vm4256_vm9, %v3016_v39 }
 0x825   : > { %3273 = vmatprep.subr.bf16.mxu0 %v3882_v0 }
 0x827   : > { %3246 = vmatmul.mubr.msk.bf16.gmra.mrb[16].mxu0 %vm822_vm5, %v3565_v40  ;;  %v1223_v39 = vpop.permute.xlu1 %1222  ;;  %v1228_v40 = vpop.permute.xlu0 %1227 }
 0x828   : > { %3253 = vmatprep.mubr.msk.bf16.mxu0 %vm822_vm5, %v3566_v41 }
 0x82b   : > { %v1837_v41 = vpop.permute.xlu1 %1836 }
 0x82f   : > { %3254 = vmatmul.mubr.msk.bf16.vlgmr.msra.gmra.mrb[12].mxu0 %vm822_vm5, %v3567_v42  ;;  %v1842_v42 = vpop.permute.xlu0 %1841 }
 0x830   : > { %3257 = vmatprep.mubr.msk.bf16.mxu0 %vm822_vm5, %v3568_v43  ;;  %v2447_v43 = vpop.permute.xlu1 %2446 }
 0x834   : > { %v1233_v44 = vpop.permute.xlu1 %1232 }
 0x837   : > { %3258 = vmatmul.mubr.msk.bf16.gmra.mrb[16].mxu0 %vm822_vm5, %v3569_v11  ;;  %v2452_v11 = vpop.permute.xlu0 %2451 }
 0x838   : > { %3277 = vmatprep.mubr.msk.bf16.mxu0 %vm3883_vm0, %v3882_v0  ;;  %v1847_v46 = vpop.permute.xlu1 %1846 }
 0x83b   : > { %v1238_v45 = vpop.permute.xlu0 %1237 }
 0x902   : > { %v3255_v36 = vpop.f32.mrb[12].mxu0 }
 0x903   : > { %v2337_v50 = vpop.f32.mrb[13].mxu0  ;;  %v3309_v3 = vadd.f32 %v3255_v36, %v2008_v2 }
 0x904   : > { %v3256_v51 = vpop.f32.mrb[14].mxu0  ;;  %v3310_v5 = vadd.f32 %v2337_v50, %v1998_v49 }
 0x905   : > { %v2340_v52 = vpop.f32.mrb[15].mxu0  ;;  %v3311_v6 = vadd.f32 %v3256_v51, %v2013_v4 }
 0x906   : > { %v3312_v7 = vadd.f32 %v2340_v52, %v2003_v61  ;;  %v2457_v52 = vpop.permute.xlu1 %2456 }
 0x90a   : > { %v3259_v54 = vpop.f32.mrb[16].mxu0 }
 0x90b   : > { %v3313_v35 = vadd.f32 %v3259_v54, %v2028_v53  ;;  %v2353_v55 = vpop.f32.mrb[17].mxu0  ;;  %v3289_v53 = vadd.f32 %v1847_v46, %v1233_v44 }
 0x90c   : > { %v3314_v12 = vadd.f32 %v2353_v55, %v2018_v37  ;;  %v3260_v48 = vpop.f32.mrb[18].mxu0  ;;  %v1852_v37 = vpop.permute.xlu0 %1851 }
 0x90d   : > { %v3024_v56 = vmul.f32 -1.442695, %v3313_v35  ;;  %v3315_v57 = vadd.f32 %v3260_v48, %v2033_v47  ;;  %v2356_v58 = vpop.f32.mrb[19].mxu0  ;;  %v3292_v47 = vadd.f32 %v1837_v41, %v1223_v39  ;;  %v3295_v35 = vadd.f32 %v1852_v37, %v1238_v45 }
 0x90e   : > { %v3022_v59 = vmul.f32 -1.442695, %v3314_v12  ;;  %v3316_v60 = vadd.f32 %v2356_v58, %v2023_v38  ;;  %v3290_v55 = vadd.f32 %v3289_v53, %v2457_v52  ;;  %v3298_v12 = vadd.f32 %v1842_v42, %v1228_v40 }
 0x90f   : > { %3624 = vpow2.f32 %v3024_v56  ;;  %v3025_v62 = vmul.f32 -1.442695, %v3315_v57  ;;  %v3293_v48 = vadd.f32 %v3292_v47, %v2447_v43 }
 0x910   : > { %3626 = vpow2.f32 %v3022_v59  ;;  %v3023_v1 = vmul.f32 -1.442695, %v3316_v60  ;;  %v2462_v54 = vpop.permute.xlu0 %2461  ;;  %v3299_v59 = vadd.f32 %v3298_v12, %v2452_v11 }
 0x911   : > { %3628 = vpow2.f32 %v3025_v62  ;;  %v3296_v56 = vadd.f32 %v3295_v35, %v2462_v54 }
 0x912   : > { %3630 = vpow2.f32 %v3023_v1 }
 0x913   : > { %3632 = vtanh.f32 %v3309_v3  ;;  %v3650_v3 = vld [vmem:[%s4185_s16] ss:$0 sm:$0xff] }
 0x914   : > { %3634 = vtanh.f32 %v3310_v5 }
 0x915   : > { %3636 = vtanh.f32 %v3311_v6 }
 0x916   : > { %3638 = vtanh.f32 %v3312_v7 }
 0x919   : > { %v3625_v8 = vpop.eup %3624 }
 0x91a   : > { %v3627_v9 = vpop.eup %3626  ;;  %v2394_v10 = vadd.f32 1.0, %v3625_v8 }
 0x91b   : > { %v3629_v13 = vpop.eup %3628  ;;  %v2392_v14 = vadd.f32 1.0, %v3627_v9 }
 0x91c   : > { %v3631_v15 = vpop.eup %3630  ;;  %3640 = vrcp.f32 %v2394_v10  ;;  %v2395_v16 = vadd.f32 1.0, %v3629_v13  ;;  %v2565_v10 = vld [vmem:[#allocation12] sm:$0xf]  ;;  %v2572_v13 = vpop.permute.xlu1 %2571 }
 0x91d   : > { %3642 = vrcp.f32 %v2392_v14  ;;  %v2393_v17 = vadd.f32 1.0, %v3631_v15  ;;  %v3633_v19 = vpop.eup %3632 }
 0x91e   : > { %3644 = vrcp.f32 %v2395_v16  ;;  %v3635_v20 = vpop.eup %3634 }
 0x91f   : > { %3646 = vrcp.f32 %v2393_v17  ;;  %v3637_v21 = vpop.eup %3636 }
 0x920   : > { %v3639_v22 = vpop.eup %3638 }
 0x926   : > { %v3641_v23 = vpop.eup %3640 }
 0x927   : > { %v3643_v24 = vpop.eup %3642  ;;  %v2406_v25 = vmul.f32 %v3641_v23, %v3633_v19 }
 0x928   : > { %v3645_v26 = vpop.eup %3644  ;;  %v2404_v27 = vmul.f32 %v3643_v24, %v3635_v20 }
 0x929   : > { %v3647_v28 = vpop.eup %3646  ;;  %v2407_v63 = vmul.f32 %v3645_v26, %v3637_v21 }
 0x92a   : > { %v2405_v29 = vmul.f32 %v3647_v28, %v3639_v22 }
 0x92b   : > { %v2418_v30 = vpack.c.bf16 %v2407_v63, %v2406_v25 }
 0x92c   : > { %v2417_v31 = vpack.c.bf16 %v2405_v29, %v2404_v27 }
 0x92e   : > { %3261 = vmatprep.subr.bf16.mxu1 %v2417_v31 }
 0x92f   : > { %3262 = vmatpush3.bf16.msra.mxu1 %v2417_v31 }
 0x930   : > { %3263 = vmatprep.subr.bf16.mxu1 %v2418_v30 }
 0x933   : > { %3264 = vmatpush3.bf16.msra.mxu1 %v2418_v30 }
 0x936   : > { %3266 = vmatmul.mubr.msk.bf16.vlgmr.msra.gmra.mrb[24].mxu1 %vm822_vm5, %v3573_v32 }
 0x937   : > { %3269 = vmatprep.mubr.msk.bf16.mxu1 %vm822_vm5, %v3574_v33 }
 0x93e   : > { %3270 = vmatmul.mubr.msk.bf16.gmra.mrb[8].mxu1 %vm822_vm5, %v3575_v34 }
 0xa09   : > { %v3267_v36 = vpop.f32.mrb[24].mxu1 }
 0xa0a   : > { %v2530_v38 = vpop.f32.mrb[25].mxu1 }
 0xa0b   : > { %v3268_v50 = vpop.f32.mrb[26].mxu1 }
 0xa0c   : > { %v2532_v51 = vpop.f32.mrb[27].mxu1 }
 0xa11   : > { %v3271_v49 = vpop.f32.mrb[8].mxu1 }
 0xa12   : > { %v3291_v57 = vadd.f32 %v3290_v55, %v3271_v49  ;;  %v2542_v58 = vpop.f32.mrb[9].mxu1 }
 0xa13   : > { %v3294_v60 = vadd.f32 %v3293_v48, %v2542_v58  ;;  %v3272_v61 = vpop.f32.mrb[10].mxu1 }
 0xa14   : > { %v3297_v62 = vadd.f32 %v3296_v56, %v3272_v61  ;;  %v2545_v1 = vpop.f32.mrb[11].mxu1  ;;  %v2563_v4 = vmul.f32 %v3650_v3, %v3291_v57 }
 0xa15   : > { %v3300_v2 = vadd.f32 %v3299_v59, %v2545_v1  ;;  %v2561_v6 = vmul.f32 %v3650_v3, %v3294_v60 }
 0xa16   : > { %v2564_v5 = vmul.f32 %v3650_v3, %v3297_v62 }
 0xa17   : > { %v2562_v7 = vmul.f32 %v3650_v3, %v3300_v2 }
 0xa18   : > { %v2567_v8 = vpack.c.bf16 %v2564_v5, %v2563_v4 }
 0xa19   : > { %v2566_v9 = vpack.c.bf16 %v2562_v7, %v2561_v6 }
 0xa1b   : > { %3274 = vmatpush3.bf16.msra.mxu0 %v2566_v9 }
 0xa1c   : > { %3275 = vmatprep.subr.bf16.mxu0 %v3882_v0 }
 0xa1f   : > { %3276 = vmatpush3.bf16.msra.mxu0 %v2567_v8 }
 0xa22   : > { %3278 = vmatmul.mubr.msk.bf16.vlgmr.msra.gmra.mrb[20].mxu0 %vm822_vm5, %v2565_v10 }
 0xaf5   : > { %v2611_v14 = vpop.f32.mrb[20].mxu0 }
 0xaf6   : > { %v2612_v15 = vadd.f32 %v2611_v14, %v2572_v13  ;;  %v3279_v16 = vpop.f32.mrb[21].mxu0 }
 0xaf7   : > { %v2614_v17 = vpop.f32.mrb[22].mxu0 }
 0xaf8   : > { %v2617_v19 = vmul.f32 1.442695, %v2612_v15  ;;  %v2627_v20 = vmul.f32 %v3650_v3, %v2612_v15  ;;  %v3280_v21 = vpop.f32.mrb[23].mxu0 }
 0xafa   : > { %3648 = vpow2.f32 %v2617_v19  ;;  %v2629_v22 = vrot.slane %v2627_v20, 4 }
 0xafc   : > { %v2631_v23 = vsel %vm570_vm1, %v2629_v22, 0.0 }
 0xafd   : > { %2632 = vadd.xlane.f32.xlu0 %v2631_v23 }
 0xb04   : > { %v3649_v0 = vpop.eup %3648 }
 0xb05   : > { %v2619_v24 = vmul.f32 %v3649_v0, %v4198_v18 }
 0xb07   : > { %v2621_v25 = vrot.slane %v2619_v24, 4 }
 0xb09   : > { %v2623_v26 = vadd.f32 %v2621_v25, %v2612_v15 }
 0xb0b   : > { %v2624_v27 = vmul.f32 %v3650_v3, %v2623_v26 }
 0xb0d   : > { %2626 = vst [vmem:[%s4195_s14 + $0x4] sm:$0xf] %v2624_v27 }
 0xb8a   : > { %v2633_v28 = vpop.xlane.xlu0 %2632 }
 0xb8b   : > { %v2634_v63 = vrot.slane %v2633_v28, 4 }
 0xb8d   : > { %v2635_v29 = vadd.f32 %v2634_v63, %v2633_v28 }
 0xb8f   : > { %v2636_v30 = vrot.slane %v2635_v29, 2 }
 0xb91   : > { %v2637_v31 = vadd.f32 %v2636_v30, %v2635_v29 }
 0xb93   : > { %v2638_v32 = vrot.slane %v2637_v31, 1 }
 0xb95   : > { %v2639_v33 = vadd.f32 %v2638_v32, %v2637_v31 }
 0xb97   : > { %3374 = vpush %v2639_v33 }
 0xbc8   : > { %s3375_s23 = spop %3374 }
 0xbc9   : > { %v2641_v34 = vstv %s3375_s23 }
 0xbca   : > { %2642 = vst [vmem:[%s554_s21] sm:$0x1] %v2641_v34 }
 0xbcb PF: > { %s4549_s30 = sld [smem:[#allocation17_spill]] }
 0xbd1   : > { %s28_s25 = sadd.s32 1, %s4549_s30  }
 0xbd2   : > { %p25_p9 = scmp.ge.s32.totalorder %s28_s25, 4  }
 0xbd4   :  { %27 = sbr.rel (!%p25_p9) target bundleno = 6 (0x6), region = 156 }
 0xbdb   :  { %2674 = vsyncpa [#allocation3], 1 }
 0xbdc   :  { %2676 = vsyncpa [#allocation3 + $0x1], 1 }
 0xbdd   :  { %2677 = vsyncpa [#allocation5], 1 }
 0xbde   :  { %2678 = vsyncpa [#allocation8], 1 }
 0xbdf   :  { %2679 = vsyncpa [#allocation11], 1 }

// kernel: flow_decoder_forward.3
= control target key start
LH: loop header
LB: loop body
LE: loop exit
PB: predicated region body
PF: predicated region fallthrough
CT: control target
= control target key end

     0   :  { %s3528_s25 = smov 0   ;;  %s4067_s0 = inlined_call_operand.vmem [shape: f32[2,8,128], index: 0, kind: input, shape index: {}]   ;;  %s4068_s1 = inlined_call_operand.vmem [shape: f32[2,1,128], index: 1, kind: input, shape index: {}]   ;;  %s4069_s2 = inlined_call_operand.vmem [shape: bf16[8,8], index: 2, kind: input, shape index: {}]   ;;  %s4070_s3 = inlined_call_operand.vmem [shape: f32[8,1], index: 3, kind: input, shape index: {}]   ;;  %s4071_s4 = inlined_call_operand.vmem [shape: bf16[32,4], index: 4, kind: input, shape index: {}]   ;;  %s4072_s5 = inlined_call_operand.vmem [shape: f32[32,1], index: 5, kind: input, shape index: {}]   ;;  %s4073_s6 = inlined_call_operand.vmem [shape: bf16[3,3,64,32], index: 6, kind: input, shape index: {}]   ;;  %s4074_s7 = inlined_call_operand.vmem [shape: f32[3,64,1], index: 7, kind: input, shape index: {}]   ;;  %s4075_s8 = inlined_call_operand.vmem [shape: bf16[3,64,32], index: 8, kind: input, shape index: {}]   ;;  %s4076_s9 = inlined_call_operand.vmem [shape: f32[3,64,1], index: 9, kind: input, shape index: {}]   ;;  %s4077_s10 = inlined_call_operand.vmem [shape: bf16[8,32], index: 10, kind: input, shape index: {}]   ;;  %s4078_s11 = inlined_call_operand.vmem [shape: f32[8,1], index: 11, kind: input, shape index: {}]   ;;  %s4079_s12 = inlined_call_operand.vmem [shape: f32[2,8,128], index: 12, kind: output, shape index: {0}]   ;;  %s4080_s13 = inlined_call_operand.vmem [shape: f32[2,1,128], index: 13, kind: output, shape index: {1}]  }
   0x1 LB: > { %s2634_s26 = sadd.s32 4294967295, %s3451_s25   ;;  %p2638_p0 = scmp.ge.s32.totalorder %s3451_s25, 1  ;;  %s3451_s25 = sphi %s3528_s25, %s24_s25  }
   0x2   : > { %p397_p1 = scmp.lt.s32.totalorder %s3451_s25, 3 }
   0x4   : > { %p398_p2 = pnand %p2638_p0, %p397_p1 }
   0x5   : > { %p445_p3 = scmp.lt.s32.totalorder (!%p398_p2), %s2634_s26, 1  ;;  %v3453_v0 = vmov (!%p398_p2), 0.0   ;;  %vm3454_vm0 = vmmov (!%p398_p2), 0   ;;  %v464_v1 = vld [vmem:[%s4070_s3] sm:$0xff] (!%p398_p2)  ;;  %v3455_v2 = vmov (!%p398_p2), 0   ;;  %vm474_vm1 = vcmask (!%p398_p2), 1043456  }
   0x6   : > { %401 = sbr.rel (%p398_p2) target bundleno = 2839 (0xb17), region = 68  ;;  %2986 = vmatprep.subr.bf16.mxu0 (!%p398_p2), %v3453_v0  ;;  %2988 = vmatprep.mubr.msk.bf16.mxu0 (!%p398_p2), %vm3454_vm0, %v3453_v0  ;;  %v530_v3 = vld [vmem:[%s4072_s5] sm:$0xff] (!%p398_p2)  ;;  %v533_v5 = vld [vmem:[%s4072_s5 + $0x18] sm:$0xff] (!%p398_p2)  ;;  %vm470_vm2 = vcmask (!%p398_p2), 64512   ;;  %vm564_vm3 = vcmask (!%p398_p2), 31744   ;;  %v531_v10 = vld [vmem:[%s4072_s5 + $0x8] sm:$0xff] (!%p398_p2)  ;;  %v628_v54 = vlaneseq (!%p398_p2) }
   0x7   : > { %3258 = vset.pattern.permute.xlu0 (!%p398_p2), %v3455_v2  ;;  %3259 = vset.pattern.permute.xlu1 (!%p398_p2), %v3455_v2  ;;  %v462_v7 = vld [vmem:[%s4069_s2] sm:$0xf] (!%p398_p2)  ;;  %v532_v11 = vld [vmem:[%s4072_s5 + $0x10] sm:$0xff] (!%p398_p2)  ;;  %vm571_vm4 = vcmask (!%p398_p2), 1041408   ;;  %v3321_v22 = vld [vmem:[%s4071_s4 + $0x8] sm:$0xff] (!%p398_p2)   ;;  %vm726_vm5 = vcmask (!%p398_p2), 261120  }
   0x8   : > { %467 = vperm.xlu0 (!%p398_p2), %3258, %v464_v1   ;;  %v3320_v9 = vld [vmem:[%s4071_s4] sm:$0xff] (!%p398_p2)   ;;  %541 = vperm.xlu1 (!%p398_p2), %3259, %v531_v10   ;;  %s3456_s23 = smov (!%p398_p2), 1   ;;  %s3457_s24 = smov (!%p398_p2), 127   ;;  %v663_v42 = vld [vmem:[%s4074_s7 + $0x28] sm:$0xff] (!%p398_p2)  ;;  %v665_v44 = vld [vmem:[%s4074_s7 + $0x38] sm:$0xff] (!%p398_p2)  ;;  %v629_v55 = vand.u32 (!%p398_p2), 127, %v628_v54 }
   0x9   : > { %2994 = vmatprep.mubr.msk.bf16.mxu1 (!%p398_p2), %vm564_vm3, %v3320_v9  ;;  %v3322_v39 = vld [vmem:[%s4073_s6] sm:$0xff] (!%p398_p2)   ;;  %v664_v45 = vld [vmem:[%s4074_s7 + $0x30] sm:$0xff] (!%p398_p2)  ;;  %v659_v46 = vld [vmem:[%s4074_s7 + $0x8] sm:$0xff] (!%p398_p2) }
   0xa   : > { %v662_v43 = vld [vmem:[%s4074_s7 + $0x20] sm:$0xff] (!%p398_p2)  ;;  %v661_v48 = vld [vmem:[%s4074_s7 + $0x18] sm:$0xff] (!%p398_p2)  ;;  %v660_v49 = vld [vmem:[%s4074_s7 + $0x10] sm:$0xff] (!%p398_p2)  ;;  %v638_v56 = vadd.s32 (!%p398_p2), 4294967295, %v629_v55 }
   0xb   : > { %v658_v47 = vld [vmem:[%s4074_s7] sm:$0xff] (!%p398_p2)  ;;  %v1097_v50 = vld [vmem:[%s4076_s9 + $0x8] sm:$0xff] (!%p398_p2)  ;;  %v1099_v52 = vld [vmem:[%s4076_s9 + $0x18] sm:$0xff] (!%p398_p2) }
   0xc   : > { %536 = vperm.xlu0 (!%p398_p2), %3258, %v530_v3   ;;  %546 = vperm.xlu1 (!%p398_p2), %3259, %v532_v11   ;;  %v1096_v51 = vld [vmem:[%s4076_s9] sm:$0xff] (!%p398_p2)  ;;  %v1098_v53 = vld [vmem:[%s4076_s9 + $0x10] sm:$0xff] (!%p398_p2)  ;;  %vm639_vm6 = vcmp.ge.s32.totalorder (!%p398_p2), %v638_v56, 0  ;;  %v3355_v63 = vld [vmem:[%s4073_s6 + $0xd8] sm:$0xff] (!%p398_p2)  }
   0xd   : > { %s4086_s26 = smov (!%p445_p3, %s2634_s26), 1  ;;  %vm3653_vm7 = vmpackc.low %vm639_vm6, %vm639_vm6  ;;  %v3363_v11 = vld [vmem:[%s4073_s6 + $0x118] sm:$0xff]  }
   0xe   : > { %s2639_s29 = sshll.u32 %s4086_s26, 3  ;;  %s3572_s16 = scalar_lea.vmem %s4068_s1, %s4086_s26 }
   0xf   : > { %s448_s17 = scalar_lea.vmem %s4067_s0, %s2639_s29  ;;  %v3575_v12 = vld [vmem:[%s3572_s16] ss:$0 sm:$0xff]  ;;  %s3580_s19 = scalar_lea.vmem %s4079_s12, %s2639_s29 }
  0x10   : > { %v461_v4 = vld [vmem:[%s448_s17] sm:$0xff]  ;;  %551 = vperm.xlu0 %3258, %v533_v5   ;;  %v928_v5 = vadd.s32 1, %v629_v55  ;;  %s458_s22 = scalar_lea.vmem %s4080_s13, %s4086_s26 }
  0x11   : > { %v463_v6 = vpack.c.bf16 %v461_v4, %v461_v4  ;;  %v3323_v4 = vld [vmem:[%s4073_s6 + $0x8] sm:$0xff]  }
  0x12   : > { %vm930_vm8 = vcmp.lt.s32.totalorder %v928_v5, 128 }
  0x13   : > { %v476_v8 = vsel %vm474_vm1, %v463_v6, 0  ;;  %vm3677_vm9 = vmpackc.low %vm930_vm8, %vm930_vm8 }
  0x14   : > { %2987 = vmatpush3.bf16.msra.mxu0 %v476_v8 }
  0x17   : > { %2989 = vmatmul.mubr.msk.bf16.vlgmr.msra.gmra.mrb[0].mxu0 %vm470_vm2, %v462_v7  ;;  %v3324_v7 = vld [vmem:[%s4073_s6 + $0x10] sm:$0xff]  }
  0x18   : > { %3002 = vmatprep.mubr.msk.bf16.mxu0 %vm726_vm5, %v3322_v39 }
  0x87   : > { %v468_v13 = vpop.permute.xlu0 %467  ;;  %v542_v23 = vpop.permute.xlu1 %541 }
  0x8b   : > { %v537_v24 = vpop.permute.xlu0 %536  ;;  %v547_v25 = vpop.permute.xlu1 %546 }
  0x8f   : > { %v552_v29 = vpop.permute.xlu0 %551 }
  0xea   : > { %v512_v14 = vpop.f32.mrb[0].mxu0 }
  0xeb   : > { %v513_v15 = vadd.f32 %v512_v14, %v468_v13  ;;  %v2990_v16 = vpop.f32.mrb[1].mxu0  ;;  %v3325_v14 = vld [vmem:[%s4073_s6 + $0x18] sm:$0xff]  }
  0xec   : > { %v515_v17 = vpop.f32.mrb[2].mxu0 }
  0xed   : > { %v3583_v18 = vmul.f32 %v3575_v12, %v513_v15  ;;  %v2991_v19 = vpop.f32.mrb[3].mxu0  ;;  %v3326_v15 = vld [vmem:[%s4073_s6 + $0x20] sm:$0xff]  }
  0xef   : > { %2529 = vst [vmem:[%s3580_s19] sm:$0xf] %v3583_v18  ;;  %v529_v20 = vpack.c.bf16 %v3583_v18, %v3583_v18 }
  0xf1   : > { %3242 = vmatprep.subr.msk.bf16.mxu1 %vm571_vm4, %v529_v20  ;;  %v573_v21 = vsel %vm571_vm4, %v529_v20, 0  ;;  %v3327_v20 = vld [vmem:[%s4073_s6 + $0x28] sm:$0xff]  }
  0xf2   : > { %2993 = vmatpush3.bf16.msra.mxu1 %v573_v21  ;;  %v3328_v21 = vld [vmem:[%s4073_s6 + $0x30] sm:$0xff]  }
  0xf5   : > { %2995 = vmatmul.mubr.msk.bf16.vlgmr.msra.gmra.mrb[0].mxu1 %vm564_vm3, %v3321_v22 }
 0x1c8   : > { %v2996_v26 = vpop.f32.mrb[0].mxu1 }
 0x1c9   : > { %v618_v27 = vadd.f32 %v2996_v26, %v547_v25  ;;  %v609_v28 = vpop.f32.mrb[1].mxu1  ;;  %v3331_v25 = vld [vmem:[%s4073_s6 + $0x48] sm:$0xff]   ;;  %v3332_v26 = vld [vmem:[%s4073_s6 + $0x50] sm:$0xff]  }
 0x1ca   : > { %v610_v30 = vadd.f32 %v609_v28, %v537_v24  ;;  %v2997_v31 = vpop.f32.mrb[2].mxu1  ;;  %v3330_v24 = vld [vmem:[%s4073_s6 + $0x40] sm:$0xff]  }
 0x1cb   : > { %v621_v32 = vadd.f32 %v2997_v31, %v552_v29  ;;  %v612_v33 = vpop.f32.mrb[3].mxu1  ;;  %v3594_v35 = vmul.f32 %v3575_v12, %v618_v27  ;;  %v3333_v27 = vld [vmem:[%s4073_s6 + $0x58] sm:$0xff]   ;;  %v3334_v28 = vld [vmem:[%s4075_s8] sm:$0xff]  }
 0x1cc   : > { %v613_v34 = vadd.f32 %v612_v33, %v542_v23  ;;  %v3600_v37 = vmul.f32 %v3575_v12, %v610_v30  ;;  %v3329_v23 = vld [vmem:[%s4073_s6 + $0x38] sm:$0xff]   ;;  %3038 = vmatprep.mubr.msk.bf16.mxu1 %vm726_vm5, %v3334_v28 }
 0x1cd   : > { %v3597_v36 = vmul.f32 %v3575_v12, %v621_v32 }
 0x1ce   : > { %v3603_v38 = vmul.f32 %v3575_v12, %v613_v34 }
 0x1cf   : > { %v3265_v40 = vpack.i.bf16 %v3597_v36, %v3594_v35  ;;  %v814_v10 = vpack.c.bf16 %v3597_v36, %v3594_v35 }
 0x1d0   : > { %v3260_v41 = vpack.i.bf16 %v3603_v38, %v3600_v37  ;;  %v813_v3 = vpack.c.bf16 %v3603_v38, %v3600_v37 }
 0x1d1   : > { %3266 = vrot.lane.b32.xlu0 %v3265_v40, %s3456_s23 }
 0x1d2   : > { %3261 = vrot.lane.b32.xlu1 %v3260_v41, %s3456_s23 }
 0x1d5   : > { %3276 = vrot.lane.b32.xlu0 %v3265_v40, %s3457_s24 }
 0x1d6   : > { %3271 = vrot.lane.b32.xlu1 %v3260_v41, %s3457_s24 }
 0x1d9   : > { %693 = vperm.xlu0 %3258, %v663_v42  }
 0x1da   : > { %688 = vperm.xlu1 %3259, %v662_v43  }
 0x1dd   : > { %703 = vperm.xlu0 %3258, %v665_v44  }
 0x1de   : > { %698 = vperm.xlu1 %3259, %v664_v45  }
 0x1e1   : > { %673 = vperm.xlu0 %3258, %v659_v46  }
 0x1e2   : > { %668 = vperm.xlu1 %3259, %v658_v47  }
 0x1e5   : > { %683 = vperm.xlu0 %3258, %v661_v48  }
 0x1e6   : > { %678 = vperm.xlu1 %3259, %v660_v49  }
 0x1e9   : > { %1111 = vperm.xlu0 %3258, %v1097_v50  }
 0x1ea   : > { %1106 = vperm.xlu1 %3259, %v1096_v51  }
 0x1ed   : > { %1121 = vperm.xlu0 %3258, %v1099_v52  }
 0x1ee   : > { %1116 = vperm.xlu1 %3259, %v1098_v53  }
 0x243   : > { %v3267_v57 = vpop.permute.xlu0 %3266 }
 0x244   : > { %v3262_v58 = vpop.permute.xlu1 %3261  ;;  %v3269_v59 = vunpack.i.h.bf16 %v3267_v57  ;;  %v3268_v60 = vunpack.i.l.bf16 %v3267_v57 }
 0x245   : > { %v3264_v61 = vunpack.i.h.bf16 %v3262_v58  ;;  %v3263_v62 = vunpack.i.l.bf16 %v3262_v58 }
 0x246   : > { %v2655_v2 = vpack.c.bf16 %v3269_v59, %v3268_v60 }
 0x247   : > { %v2652_v1 = vpack.c.bf16 %v3264_v61, %v3263_v62  ;;  %v3277_v16 = vpop.permute.xlu0 %3276 }
 0x248   : > { %v3272_v6 = vpop.permute.xlu1 %3271  ;;  %v3279_v17 = vunpack.i.h.bf16 %v3277_v16  ;;  %v3278_v19 = vunpack.i.l.bf16 %v3277_v16 }
 0x249   : > { %2998 = vmatprep.subr.msk.bf16.mxu0 %vm3653_vm7, %v2652_v1  ;;  %v3274_v8 = vunpack.i.h.bf16 %v3272_v6  ;;  %v3273_v9 = vunpack.i.l.bf16 %v3272_v6 }
 0x24a   : > { %2999 = vmatpush3.bf16.msk.msra.mxu0 %vm3653_vm7, %v2652_v1  ;;  %v2693_v22 = vpack.c.bf16 %v3279_v17, %v3278_v19 }
 0x24b   : > { %3000 = vmatprep.subr.msk.bf16.mxu0 %vm3653_vm7, %v2655_v2  ;;  %v2690_v13 = vpack.c.bf16 %v3274_v8, %v3273_v9 }
 0x24e   : > { %3001 = vmatpush3.bf16.msk.msra.mxu0 %vm3653_vm7, %v2655_v2 }
 0x24f   : > { %3010 = vmatprep.subr.bf16.mxu0 %v813_v3 }
 0x251   : > { %3003 = vmatmul.mubr.msk.bf16.vlgmr.msra.gmra.mrb[4].mxu0 %vm726_vm5, %v3323_v4 }
 0x252   : > { %3011 = vmatpush3.bf16.msra.mxu0 %v813_v3  ;;  %3006 = vmatprep.mubr.msk.bf16.mxu0 %vm726_vm5, %v3324_v7 }
 0x253   : > { %3012 = vmatprep.subr.bf16.mxu0 %v814_v10 }
 0x256   : > { %3013 = vmatpush3.bf16.msra.mxu0 %v814_v10 }
 0x257   : > { %3022 = vmatprep.subr.msk.bf16.mxu0 %vm3677_vm9, %v2690_v13 }
 0x258   : > { %v694_v31 = vpop.permute.xlu0 %693 }
 0x259   : > { %3007 = vmatmul.mubr.msk.bf16.gmra.mrb[8].mxu0 %vm726_vm5, %v3325_v14  ;;  %v689_v29 = vpop.permute.xlu1 %688 }
 0x25a   : > { %3014 = vmatprep.mubr.msk.bf16.mxu0 %vm726_vm5, %v3326_v15 }
 0x25c   : > { %v704_v40 = vpop.permute.xlu0 %703 }
 0x25d   : > { %v699_v39 = vpop.permute.xlu1 %698 }
 0x260   : > { %v674_v52 = vpop.permute.xlu0 %673 }
 0x261   : > { %3015 = vmatmul.mubr.msk.bf16.vlgmr.msra.gmra.mrb[4].mxu0 %vm726_vm5, %v3327_v20  ;;  %v669_v46 = vpop.permute.xlu1 %668 }
 0x262   : > { %3023 = vmatpush3.bf16.msk.msra.mxu0 %vm3677_vm9, %v2690_v13  ;;  %3018 = vmatprep.mubr.msk.bf16.mxu0 %vm726_vm5, %v3328_v21 }
 0x263   : > { %3024 = vmatprep.subr.msk.bf16.mxu0 %vm3677_vm9, %v2693_v22 }
 0x264   : > { %v684_v57 = vpop.permute.xlu0 %683 }
 0x265   : > { %v679_v55 = vpop.permute.xlu1 %678 }
 0x266   : > { %3025 = vmatpush3.bf16.msk.msra.mxu0 %vm3677_vm9, %v2693_v22 }
 0x269   : > { %3019 = vmatmul.mubr.msk.bf16.gmra.mrb[8].mxu0 %vm726_vm5, %v3329_v23 }
 0x26a   : > { %3026 = vmatprep.mubr.msk.bf16.mxu0 %vm726_vm5, %v3330_v24  ;;  %v3335_v24 = vld [vmem:[%s4075_s8 + $0x8] sm:$0xff]  }
 0x271   : > { %3027 = vmatmul.mubr.msk.bf16.vlgmr.msra.gmra.mrb[4].mxu0 %vm726_vm5, %v3331_v25  ;;  %v1107_v25 = vpop.permute.xlu1 %1106 }
 0x272   : > { %3030 = vmatprep.mubr.msk.bf16.mxu0 %vm726_vm5, %v3332_v26  ;;  %v1112_v26 = vpop.permute.xlu0 %1111 }
 0x279   : > { %3031 = vmatmul.mubr.msk.bf16.gmra.mrb[8].mxu0 %vm726_vm5, %v3333_v27  ;;  %v1117_v27 = vpop.permute.xlu1 %1116 }
 0x344   : > { %v3028_v30 = vpop.f32.mrb[4].mxu0 }
 0x345   : > { %v1015_v32 = vpop.f32.mrb[5].mxu0  ;;  %v3150_v56 = vadd.f32 %v3028_v30, %v679_v55  ;;  %v2719_v55 = vld [vmem:[%s4074_s7 + $0x40] sm:$0xff] }
 0x346   : > { %v3029_v33 = vpop.f32.mrb[6].mxu0  ;;  %v3151_v58 = vadd.f32 %v1015_v32, %v669_v46  ;;  %v1122_v32 = vpop.permute.xlu0 %1121 }
 0x347   : > { %v1018_v34 = vpop.f32.mrb[7].mxu0  ;;  %v3152_v59 = vadd.f32 %v3029_v33, %v684_v57  ;;  %v2721_v57 = vld [vmem:[%s4074_s7 + $0x50] sm:$0xff] }
 0x348   : > { %v3153_v60 = vadd.f32 %v1018_v34, %v674_v52  ;;  %v2726_v52 = vld [vmem:[%s4074_s7 + $0x78] sm:$0xff] }
 0x34c   : > { %v3032_v41 = vpop.f32.mrb[8].mxu0 }
 0x34d   : > { %v3154_v42 = vadd.f32 %v3032_v41, %v699_v39  ;;  %v1031_v43 = vpop.f32.mrb[9].mxu0  ;;  %v3337_v39 = vld [vmem:[%s4075_s8 + $0x18] sm:$0xff]  }
 0x34e   : > { %v3155_v44 = vadd.f32 %v1031_v43, %v689_v29  ;;  %v3033_v45 = vpop.f32.mrb[10].mxu0 }
 0x34f   : > { %v2701_v47 = vmul.f32 -1.442695, %v3154_v42  ;;  %v3156_v48 = vadd.f32 %v3033_v45, %v704_v40  ;;  %v1034_v49 = vpop.f32.mrb[11].mxu0 }
 0x350   : > { %v2699_v50 = vmul.f32 -1.442695, %v3155_v44  ;;  %v3157_v51 = vadd.f32 %v1034_v49, %v694_v31  ;;  %v3336_v31 = vld [vmem:[%s4075_s8 + $0x10] sm:$0xff]  }
 0x351   : > { %3370 = vpow2.f32 %v2701_v47  ;;  %v2702_v53 = vmul.f32 -1.442695, %v3156_v48 }
 0x352   : > { %3372 = vpow2.f32 %v2699_v50  ;;  %v2700_v54 = vmul.f32 -1.442695, %v3157_v51  ;;  %v2724_v50 = vld [vmem:[%s4074_s7 + $0x68] sm:$0xff]  ;;  %v2723_v51 = vld [vmem:[%s4074_s7 + $0x60] sm:$0xff] }
 0x353   : > { %3374 = vpow2.f32 %v2702_v53  ;;  %v2725_v53 = vld [vmem:[%s4074_s7 + $0x70] sm:$0xff] }
 0x354   : > { %3376 = vpow2.f32 %v2700_v54  ;;  %v2720_v54 = vld [vmem:[%s4074_s7 + $0x48] sm:$0xff] }
 0x355   : > { %3378 = vtanh.f32 %v3150_v56  ;;  %v2722_v56 = vld [vmem:[%s4074_s7 + $0x58] sm:$0xff] }
 0x356   : > { %3380 = vtanh.f32 %v3151_v58  ;;  %v2792_v58 = vld [vmem:[%s4076_s9 + $0x48] sm:$0xff] }
 0x357   : > { %3382 = vtanh.f32 %v3152_v59  ;;  %v2791_v59 = vld [vmem:[%s4076_s9 + $0x40] sm:$0xff] }
 0x358   : > { %3384 = vtanh.f32 %v3153_v60  ;;  %v2794_v60 = vld [vmem:[%s4076_s9 + $0x58] sm:$0xff] }
 0x35b   : > { %v3371_v61 = vpop.eup %3370 }
 0x35c   : > { %v3373_v62 = vpop.eup %3372  ;;  %v1072_v1 = vadd.f32 1.0, %v3371_v61  ;;  %v2793_v61 = vld [vmem:[%s4076_s9 + $0x50] sm:$0xff] }
 0x35d   : > { %v3375_v2 = vpop.eup %3374  ;;  %v1070_v3 = vadd.f32 1.0, %v3373_v62 }
 0x35e   : > { %v3377_v4 = vpop.eup %3376  ;;  %3386 = vrcp.f32 %v1072_v1  ;;  %v1073_v5 = vadd.f32 1.0, %v3375_v2 }
 0x35f   : > { %3388 = vrcp.f32 %v1070_v3  ;;  %v1071_v6 = vadd.f32 1.0, %v3377_v4  ;;  %v3379_v7 = vpop.eup %3378 }
 0x360   : > { %3390 = vrcp.f32 %v1073_v5  ;;  %v3381_v8 = vpop.eup %3380 }
 0x361   : > { %3392 = vrcp.f32 %v1071_v6  ;;  %v3383_v9 = vpop.eup %3382 }
 0x362   : > { %v3385_v10 = vpop.eup %3384 }
 0x368   : > { %v3387_v13 = vpop.eup %3386 }
 0x369   : > { %v3389_v14 = vpop.eup %3388  ;;  %v1084_v15 = vmul.f32 %v3387_v13, %v3379_v7  ;;  %v3340_v13 = vld [vmem:[%s4073_s6 + $0x70] sm:$0xff]  }
 0x36a   : > { %v3391_v16 = vpop.eup %3390  ;;  %v1082_v17 = vmul.f32 %v3389_v14, %v3381_v8 }
 0x36b   : > { %v3393_v19 = vpop.eup %3392  ;;  %v1085_v20 = vmul.f32 %v3391_v16, %v3383_v9  ;;  %v3339_v9 = vld [vmem:[%s4073_s6 + $0x68] sm:$0xff]  }
 0x36c   : > { %v1083_v21 = vmul.f32 %v3393_v19, %v3385_v10  ;;  %v3341_v19 = vld [vmem:[%s4073_s6 + $0x78] sm:$0xff]  }
 0x36d   : > { %v1095_v22 = vpack.c.bf16 %v1085_v20, %v1084_v15  ;;  %v3342_v20 = vld [vmem:[%s4073_s6 + $0x80] sm:$0xff]  }
 0x36e   : > { %v1094_v23 = vpack.c.bf16 %v1083_v21, %v1082_v17 }
 0x370   : > { %3034 = vmatprep.subr.bf16.mxu1 %v1094_v23 }
 0x371   : > { %3035 = vmatpush3.bf16.msra.mxu1 %v1094_v23 }
 0x372   : > { %3036 = vmatprep.subr.bf16.mxu1 %v1095_v22 }
 0x375   : > { %3037 = vmatpush3.bf16.msra.mxu1 %v1095_v22 }
 0x378   : > { %3039 = vmatmul.mubr.msk.bf16.vlgmr.msra.gmra.mrb[4].mxu1 %vm726_vm5, %v3335_v24  ;;  %v3343_v24 = vld [vmem:[%s4073_s6 + $0x88] sm:$0xff]  }
 0x379   : > { %3042 = vmatprep.mubr.msk.bf16.mxu1 %vm726_vm5, %v3336_v31  ;;  %v3349_v31 = vld [vmem:[%s4073_s6 + $0xb8] sm:$0xff]  }
 0x380   : > { %3043 = vmatmul.mubr.msk.bf16.gmra.mrb[8].mxu1 %vm726_vm5, %v3337_v39 }
 0x44b   : > { %v3040_v28 = vpop.f32.mrb[4].mxu1 }
 0x44c   : > { %v1219_v29 = vadd.f32 %v3040_v28, %v1117_v27  ;;  %v1210_v30 = vpop.f32.mrb[5].mxu1  ;;  %v3345_v27 = vld [vmem:[%s4073_s6 + $0x98] sm:$0xff]   ;;  %v3346_v28 = vld [vmem:[%s4073_s6 + $0xa0] sm:$0xff]  }
 0x44d   : > { %v1211_v33 = vadd.f32 %v1210_v30, %v1107_v25  ;;  %v3041_v34 = vpop.f32.mrb[6].mxu1  ;;  %v3344_v25 = vld [vmem:[%s4073_s6 + $0x90] sm:$0xff]  }
 0x44e   : > { %v1243_v40 = vadd.f32 %v1219_v29, %v3594_v35  ;;  %v1222_v41 = vadd.f32 %v3041_v34, %v1122_v32  ;;  %v1213_v42 = vpop.f32.mrb[7].mxu1  ;;  %v3347_v29 = vld [vmem:[%s4073_s6 + $0xa8] sm:$0xff]   ;;  %v3348_v30 = vld [vmem:[%s4073_s6 + $0xb0] sm:$0xff]   ;;  %v3350_v32 = vld [vmem:[%s4075_s8 + $0x20] sm:$0xff]  }
 0x44f   : > { %v1241_v43 = vadd.f32 %v1211_v33, %v3600_v37  ;;  %v1214_v44 = vadd.f32 %v1213_v42, %v1112_v26 }
 0x450   : > { %v1244_v45 = vadd.f32 %v1222_v41, %v3597_v36  ;;  %v3746_v47 = vmul.f32 %v3575_v12, %v1243_v40  ;;  %v3338_v36 = vld [vmem:[%s4073_s6 + $0x60] sm:$0xff]  }
 0x451   : > { %v1242_v46 = vadd.f32 %v1214_v44, %v3603_v38  ;;  %v3752_v35 = vmul.f32 %v3575_v12, %v1241_v43  ;;  %3050 = vmatprep.mubr.msk.bf16.mxu1 %vm726_vm5, %v3338_v36 }
 0x452   : > { %v3749_v48 = vmul.f32 %v3575_v12, %v1244_v45 }
 0x453   : > { %v3755_v49 = vmul.f32 %v3575_v12, %v1242_v46 }
 0x454   : > { %v3285_v37 = vpack.i.bf16 %v3749_v48, %v3746_v47  ;;  %v1432_v16 = vpack.c.bf16 %v3749_v48, %v3746_v47 }
 0x455   : > { %v3280_v38 = vpack.i.bf16 %v3755_v49, %v3752_v35  ;;  %v1431_v8 = vpack.c.bf16 %v3755_v49, %v3752_v35 }
 0x456   : > { %3286 = vrot.lane.b32.xlu0 %v3285_v37, %s3456_s23 }
 0x457   : > { %3281 = vrot.lane.b32.xlu1 %v3280_v38, %s3456_s23 }
 0x45a   : > { %3296 = vrot.lane.b32.xlu0 %v3285_v37, %s3457_s24 }
 0x45b   : > { %3291 = vrot.lane.b32.xlu1 %v3280_v38, %s3457_s24 }
 0x45e   : > { %1312 = vperm.xlu0 %3258, %v2724_v50  }
 0x45f   : > { %1307 = vperm.xlu1 %3259, %v2723_v51  }
 0x462   : > { %1322 = vperm.xlu0 %3258, %v2726_v52  }
 0x463   : > { %1317 = vperm.xlu1 %3259, %v2725_v53  }
 0x466   : > { %1292 = vperm.xlu0 %3258, %v2720_v54  }
 0x467   : > { %1287 = vperm.xlu1 %3259, %v2719_v55  }
 0x46a   : > { %1302 = vperm.xlu0 %3258, %v2722_v56  }
 0x46b   : > { %1297 = vperm.xlu1 %3259, %v2721_v57  }
 0x46e   : > { %1725 = vperm.xlu0 %3258, %v2792_v58  }
 0x46f   : > { %1720 = vperm.xlu1 %3259, %v2791_v59  }
 0x472   : > { %1735 = vperm.xlu0 %3258, %v2794_v60  }
 0x473   : > { %1730 = vperm.xlu1 %3259, %v2793_v61  }
 0x4c8   : > { %v3287_v62 = vpop.permute.xlu0 %3286 }
 0x4c9   : > { %v3282_v1 = vpop.permute.xlu1 %3281  ;;  %v3289_v2 = vunpack.i.h.bf16 %v3287_v62  ;;  %v3288_v3 = vunpack.i.l.bf16 %v3287_v62 }
 0x4ca   : > { %v3284_v4 = vunpack.i.h.bf16 %v3282_v1  ;;  %v3283_v5 = vunpack.i.l.bf16 %v3282_v1 }
 0x4cb   : > { %v2735_v7 = vpack.c.bf16 %v3289_v2, %v3288_v3 }
 0x4cc   : > { %v2732_v6 = vpack.c.bf16 %v3284_v4, %v3283_v5  ;;  %v3297_v21 = vpop.permute.xlu0 %3296 }
 0x4cd   : > { %v3292_v10 = vpop.permute.xlu1 %3291  ;;  %v3299_v22 = vunpack.i.h.bf16 %v3297_v21  ;;  %v3298_v23 = vunpack.i.l.bf16 %v3297_v21 }
 0x4ce   : > { %3046 = vmatprep.subr.msk.bf16.mxu1 %vm3653_vm7, %v2732_v6  ;;  %v3294_v14 = vunpack.i.h.bf16 %v3292_v10  ;;  %v3293_v15 = vunpack.i.l.bf16 %v3292_v10 }
 0x4cf   : > { %3047 = vmatpush3.bf16.msk.msra.mxu1 %vm3653_vm7, %v2732_v6  ;;  %v2773_v26 = vpack.c.bf16 %v3299_v22, %v3298_v23 }
 0x4d0   : > { %3048 = vmatprep.subr.msk.bf16.mxu1 %vm3653_vm7, %v2735_v7  ;;  %v2770_v17 = vpack.c.bf16 %v3294_v14, %v3293_v15 }
 0x4d3   : > { %3049 = vmatpush3.bf16.msk.msra.mxu1 %vm3653_vm7, %v2735_v7 }
 0x4d4   : > { %3058 = vmatprep.subr.bf16.mxu1 %v1431_v8 }
 0x4d6   : > { %3051 = vmatmul.mubr.msk.bf16.vlgmr.msra.gmra.mrb[12].mxu1 %vm726_vm5, %v3339_v9 }
 0x4d7   : > { %3059 = vmatpush3.bf16.msra.mxu1 %v1431_v8  ;;  %3054 = vmatprep.mubr.msk.bf16.mxu1 %vm726_vm5, %v3340_v13 }
 0x4d8   : > { %3060 = vmatprep.subr.bf16.mxu1 %v1432_v16 }
 0x4db   : > { %3061 = vmatpush3.bf16.msra.mxu1 %v1432_v16 }
 0x4dc   : > { %3070 = vmatprep.subr.msk.bf16.mxu1 %vm3677_vm9, %v2770_v17 }
 0x4dd   : > { %v1313_v39 = vpop.permute.xlu0 %1312 }
 0x4de   : > { %3055 = vmatmul.mubr.msk.bf16.gmra.mrb[16].mxu1 %vm726_vm5, %v3341_v19  ;;  %v1308_v33 = vpop.permute.xlu1 %1307 }
 0x4df   : > { %3062 = vmatprep.mubr.msk.bf16.mxu1 %vm726_vm5, %v3342_v20 }
 0x4e1   : > { %v1323_v44 = vpop.permute.xlu0 %1322 }
 0x4e2   : > { %v1318_v43 = vpop.permute.xlu1 %1317 }
 0x4e5   : > { %v1293_v56 = vpop.permute.xlu0 %1292 }
 0x4e6   : > { %3063 = vmatmul.mubr.msk.bf16.vlgmr.msra.gmra.mrb[12].mxu1 %vm726_vm5, %v3343_v24  ;;  %v1288_v50 = vpop.permute.xlu1 %1287 }
 0x4e7   : > { %3071 = vmatpush3.bf16.msk.msra.mxu1 %vm3677_vm9, %v2770_v17  ;;  %3066 = vmatprep.mubr.msk.bf16.mxu1 %vm726_vm5, %v3344_v25 }
 0x4e8   : > { %3072 = vmatprep.subr.msk.bf16.mxu1 %vm3677_vm9, %v2773_v26 }
 0x4e9   : > { %v1303_v61 = vpop.permute.xlu0 %1302 }
 0x4ea   : > { %v1298_v59 = vpop.permute.xlu1 %1297 }
 0x4eb   : > { %3073 = vmatpush3.bf16.msk.msra.mxu1 %vm3677_vm9, %v2773_v26 }
 0x4ee   : > { %3067 = vmatmul.mubr.msk.bf16.gmra.mrb[16].mxu1 %vm726_vm5, %v3345_v27 }
 0x4ef   : > { %3074 = vmatprep.mubr.msk.bf16.mxu1 %vm726_vm5, %v3346_v28  ;;  %v3351_v28 = vld [vmem:[%s4075_s8 + $0x28] sm:$0xff]  }
 0x4f6   : > { %3075 = vmatmul.mubr.msk.bf16.vlgmr.msra.gmra.mrb[12].mxu1 %vm726_vm5, %v3347_v29  ;;  %v1721_v29 = vpop.permute.xlu1 %1720 }
 0x4f7   : > { %3078 = vmatprep.mubr.msk.bf16.mxu1 %vm726_vm5, %v3348_v30  ;;  %v1726_v30 = vpop.permute.xlu0 %1725 }
 0x4fe   : > { %3079 = vmatmul.mubr.msk.bf16.gmra.mrb[16].mxu1 %vm726_vm5, %v3349_v31  ;;  %v1731_v31 = vpop.permute.xlu1 %1730 }
 0x4ff   : > { %3086 = vmatprep.mubr.msk.bf16.mxu1 %vm726_vm5, %v3350_v32 }
 0x5c9   : > { %v3076_v34 = vpop.f32.mrb[12].mxu1 }
 0x5ca   : > { %v1627_v40 = vpop.f32.mrb[13].mxu1  ;;  %v3170_v60 = vadd.f32 %v3076_v34, %v1298_v59  ;;  %v2818_v59 = vld [vmem:[%s4074_s7 + $0x98] sm:$0xff] }
 0x5cb   : > { %v3077_v41 = vpop.f32.mrb[14].mxu1  ;;  %v3171_v62 = vadd.f32 %v1627_v40, %v1288_v50 }
 0x5cc   : > { %v1630_v42 = vpop.f32.mrb[15].mxu1  ;;  %v3172_v1 = vadd.f32 %v3077_v41, %v1303_v61  ;;  %v1101_v61 = vld [vmem:[%s4076_s9 + $0x28] sm:$0xff] }
 0x5cd   : > { %v3173_v2 = vadd.f32 %v1630_v42, %v1293_v56  ;;  %v2821_v56 = vld [vmem:[%s4074_s7 + $0xb0] sm:$0xff] }
 0x5d1   : > { %v3080_v45 = vpop.f32.mrb[16].mxu1 }
 0x5d2   : > { %v3174_v46 = vadd.f32 %v3080_v45, %v1318_v43  ;;  %v1643_v37 = vpop.f32.mrb[17].mxu1 }
 0x5d3   : > { %v3175_v36 = vadd.f32 %v1643_v37, %v1308_v33  ;;  %v3081_v38 = vpop.f32.mrb[18].mxu1 }
 0x5d4   : > { %v2781_v51 = vmul.f32 -1.442695, %v3174_v46  ;;  %v3176_v52 = vadd.f32 %v3081_v38, %v1323_v44  ;;  %v1646_v53 = vpop.f32.mrb[19].mxu1 }
 0x5d5   : > { %v2779_v54 = vmul.f32 -1.442695, %v3175_v36  ;;  %v3177_v55 = vadd.f32 %v1646_v53, %v1313_v39  ;;  %v1736_v39 = vpop.permute.xlu0 %1735 }
 0x5d6   : > { %3394 = vpow2.f32 %v2781_v51  ;;  %v2782_v57 = vmul.f32 -1.442695, %v3176_v52 }
 0x5d7   : > { %3396 = vpow2.f32 %v2779_v54  ;;  %v2780_v58 = vmul.f32 -1.442695, %v3177_v55 }
 0x5d8   : > { %3398 = vpow2.f32 %v2782_v57  ;;  %v2816_v57 = vld [vmem:[%s4074_s7 + $0x88] sm:$0xff] }
 0x5d9   : > { %3400 = vpow2.f32 %v2780_v58  ;;  %v2815_v58 = vld [vmem:[%s4074_s7 + $0x80] sm:$0xff] }
 0x5da   : > { %3402 = vtanh.f32 %v3170_v60  ;;  %v2817_v60 = vld [vmem:[%s4074_s7 + $0x90] sm:$0xff] }
 0x5db   : > { %3404 = vtanh.f32 %v3171_v62  ;;  %v1100_v62 = vld [vmem:[%s4076_s9 + $0x20] sm:$0xff] }
 0x5dc   : > { %3406 = vtanh.f32 %v3172_v1  ;;  %v2796_v1 = vld [vmem:[%s4076_s9 + $0x68] sm:$0xff] }
 0x5dd   : > { %3408 = vtanh.f32 %v3173_v2  ;;  %v2795_v2 = vld [vmem:[%s4076_s9 + $0x60] sm:$0xff] }
 0x5e0   : > { %v3395_v3 = vpop.eup %3394 }
 0x5e1   : > { %v3397_v4 = vpop.eup %3396  ;;  %v1684_v5 = vadd.f32 1.0, %v3395_v3  ;;  %v2892_v3 = vld [vmem:[%s4076_s9 + $0xa8] sm:$0xff] }
 0x5e2   : > { %v3399_v6 = vpop.eup %3398  ;;  %v1682_v7 = vadd.f32 1.0, %v3397_v4  ;;  %v2891_v4 = vld [vmem:[%s4076_s9 + $0xa0] sm:$0xff] }
 0x5e3   : > { %v3401_v8 = vpop.eup %3400  ;;  %3410 = vrcp.f32 %v1684_v5  ;;  %v1685_v9 = vadd.f32 1.0, %v3399_v6  ;;  %v1103_v5 = vld [vmem:[%s4076_s9 + $0x38] sm:$0xff]  ;;  %v1102_v6 = vld [vmem:[%s4076_s9 + $0x30] sm:$0xff] }
 0x5e4   : > { %3412 = vrcp.f32 %v1682_v7  ;;  %v1683_v10 = vadd.f32 1.0, %v3401_v8  ;;  %v3403_v13 = vpop.eup %3402  ;;  %v2798_v7 = vld [vmem:[%s4076_s9 + $0x78] sm:$0xff]  ;;  %v2797_v8 = vld [vmem:[%s4076_s9 + $0x70] sm:$0xff] }
 0x5e5   : > { %3414 = vrcp.f32 %v1685_v9  ;;  %v3405_v14 = vpop.eup %3404  ;;  %v2894_v9 = vld [vmem:[%s4076_s9 + $0xb8] sm:$0xff] }
 0x5e6   : > { %3416 = vrcp.f32 %v1683_v10  ;;  %v3407_v15 = vpop.eup %3406  ;;  %v2893_v10 = vld [vmem:[%s4076_s9 + $0xb0] sm:$0xff] }
 0x5e7   : > { %v3409_v16 = vpop.eup %3408 }
 0x5ed   : > { %v3411_v17 = vpop.eup %3410 }
 0x5ee   : > { %v3413_v19 = vpop.eup %3412  ;;  %v1696_v20 = vmul.f32 %v3411_v17, %v3403_v13  ;;  %v2472_v13 = vld [vmem:[%s4078_s11] sm:$0xff] }
 0x5ef   : > { %v3415_v21 = vpop.eup %3414  ;;  %v1694_v22 = vmul.f32 %v3413_v19, %v3405_v14 }
 0x5f0   : > { %v3417_v23 = vpop.eup %3416  ;;  %v1697_v24 = vmul.f32 %v3415_v21, %v3407_v15 }
 0x5f1   : > { %v1695_v25 = vmul.f32 %v3417_v23, %v3409_v16  ;;  %v3353_v23 = vld [vmem:[%s4073_s6 + $0xc8] sm:$0xff]  }
 0x5f2   : > { %v1708_v26 = vpack.c.bf16 %v1697_v24, %v1696_v20 }
 0x5f3   : > { %v1707_v27 = vpack.c.bf16 %v1695_v25, %v1694_v22  ;;  %v3354_v25 = vld [vmem:[%s4073_s6 + $0xd0] sm:$0xff]  }
 0x5f5   : > { %3082 = vmatprep.subr.bf16.mxu1 %v1707_v27 }
 0x5f6   : > { %3083 = vmatpush3.bf16.msra.mxu1 %v1707_v27 }
 0x5f7   : > { %3084 = vmatprep.subr.bf16.mxu1 %v1708_v26 }
 0x5fa   : > { %3085 = vmatpush3.bf16.msra.mxu1 %v1708_v26 }
 0x5fd   : > { %3087 = vmatmul.mubr.msk.bf16.vlgmr.msra.gmra.mrb[20].mxu1 %vm726_vm5, %v3351_v28 }
 0x6d0   : > { %v3088_v32 = vpop.f32.mrb[20].mxu1 }
 0x6d1   : > { %v1833_v33 = vadd.f32 %v3088_v32, %v1731_v31  ;;  %v1824_v34 = vpop.f32.mrb[21].mxu1 }
 0x6d2   : > { %v1825_v40 = vadd.f32 %v1824_v34, %v1721_v29  ;;  %v3089_v41 = vpop.f32.mrb[22].mxu1  ;;  %v3356_v29 = vld [vmem:[%s4073_s6 + $0xe0] sm:$0xff]   ;;  %v3358_v34 = vld [vmem:[%s4073_s6 + $0xf0] sm:$0xff]  }
 0x6d3   : > { %v1857_v42 = vadd.f32 %v1833_v33, %v3746_v47  ;;  %v1836_v43 = vadd.f32 %v3089_v41, %v1736_v39  ;;  %v1827_v44 = vpop.f32.mrb[23].mxu1  ;;  %v3352_v47 = vld [vmem:[%s4073_s6 + $0xc0] sm:$0xff]   ;;  %v3357_v33 = vld [vmem:[%s4073_s6 + $0xe8] sm:$0xff]  }
 0x6d4   : > { %v1855_v45 = vadd.f32 %v1825_v40, %v3752_v35  ;;  %v1828_v46 = vadd.f32 %v1827_v44, %v1726_v30  ;;  %3098 = vmatprep.mubr.msk.bf16.mxu0 %vm726_vm5, %v3352_v47  ;;  %v3359_v40 = vld [vmem:[%s4073_s6 + $0xf8] sm:$0xff]   ;;  %v3360_v41 = vld [vmem:[%s4073_s6 + $0x100] sm:$0xff]   ;;  %v3364_v44 = vld [vmem:[%s4075_s8 + $0x30] sm:$0xff]  }
 0x6d5   : > { %v1858_v37 = vadd.f32 %v1836_v43, %v3749_v48  ;;  %v1861_v38 = vmul.f32 %v3575_v12, %v1857_v42  ;;  %v2819_v48 = vld [vmem:[%s4074_s7 + $0xa0] sm:$0xff]  ;;  %v3361_v42 = vld [vmem:[%s4073_s6 + $0x108] sm:$0xff]   ;;  %v3362_v43 = vld [vmem:[%s4073_s6 + $0x110] sm:$0xff]   ;;  %3090 = vmatprep.mubr.msk.bf16.mxu1 %vm726_vm5, %v3364_v44 }
 0x6d6   : > { %v1856_v36 = vadd.f32 %v1828_v46, %v3755_v49  ;;  %v1859_v51 = vmul.f32 %v3575_v12, %v1855_v45  ;;  %v2822_v49 = vld [vmem:[%s4074_s7 + $0xb8] sm:$0xff]  ;;  %v3366_v46 = vld [vmem:[%s4075_s8 + $0x40] sm:$0xff]  }
 0x6d7   : > { %v1862_v50 = vmul.f32 %v3575_v12, %v1858_v37  ;;  %v3365_v45 = vld [vmem:[%s4075_s8 + $0x38] sm:$0xff]  }
 0x6d8   : > { %v1860_v52 = vmul.f32 %v3575_v12, %v1856_v36  ;;  %v2820_v12 = vld [vmem:[%s4074_s7 + $0xa8] sm:$0xff]  ;;  %3091 = vmatmul.mubr.msk.bf16.gmra.mrb[8].mxu1 %vm726_vm5, %v3365_v45 }
 0x6d9   : > { %v3305_v53 = vpack.i.bf16 %v1862_v50, %v1861_v38  ;;  %v3888_v54 = vpack.c.bf16 %v1862_v50, %v1861_v38  ;;  %3134 = vmatprep.mubr.msk.bf16.mxu1 %vm726_vm5, %v3366_v46 }
 0x6da   : > { %v3300_v35 = vpack.i.bf16 %v1860_v52, %v1859_v51  ;;  %v3890_v55 = vpack.c.bf16 %v1860_v52, %v1859_v51 }
 0x6db   : > { %3306 = vrot.lane.b32.xlu0 %v3305_v53, %s3456_s23 }
 0x6dc   : > { %3301 = vrot.lane.b32.xlu1 %v3300_v35, %s3456_s23 }
 0x6df   : > { %3316 = vrot.lane.b32.xlu0 %v3305_v53, %s3457_s24 }
 0x6e0   : > { %3311 = vrot.lane.b32.xlu1 %v3300_v35, %s3457_s24 }
 0x6e3   : > { %1926 = vperm.xlu0 %3258, %v2820_v12  }
 0x6e4   : > { %1921 = vperm.xlu1 %3259, %v2819_v48  }
 0x6e7   : > { %1936 = vperm.xlu0 %3258, %v2822_v49  }
 0x6e8   : > { %1931 = vperm.xlu1 %3259, %v2821_v56  }
 0x6eb   : > { %1906 = vperm.xlu0 %3258, %v2816_v57  }
 0x6ec   : > { %1901 = vperm.xlu1 %3259, %v2815_v58  }
 0x6ef   : > { %1916 = vperm.xlu0 %3258, %v2818_v59  }
 0x6f0   : > { %1911 = vperm.xlu1 %3259, %v2817_v60  }
 0x6f3   : > { %1131 = vperm.xlu0 %3258, %v1101_v61  }
 0x6f4   : > { %1126 = vperm.xlu1 %3259, %v1100_v62  }
 0x6f7   : > { %1745 = vperm.xlu0 %3258, %v2796_v1  }
 0x6f8   : > { %1740 = vperm.xlu1 %3259, %v2795_v2  }
 0x6fb   : > { %2355 = vperm.xlu0 %3258, %v2892_v3  }
 0x6fc   : > { %2350 = vperm.xlu1 %3259, %v2891_v4  }
 0x6ff   : > { %1141 = vperm.xlu0 %3258, %v1103_v5  }
 0x700   : > { %1136 = vperm.xlu1 %3259, %v1102_v6  }
 0x703   : > { %1755 = vperm.xlu0 %3258, %v2798_v7  }
 0x704   : > { %1750 = vperm.xlu1 %3259, %v2797_v8  }
 0x707   : > { %2365 = vperm.xlu0 %3258, %v2894_v9  }
 0x708   : > { %2360 = vperm.xlu1 %3259, %v2893_v10  }
 0x70c   : > { %2475 = vperm.xlu1 %3259, %v2472_v13  }
 0x74d   : > { %v3307_v14 = vpop.permute.xlu0 %3306 }
 0x74e   : > { %v3302_v15 = vpop.permute.xlu1 %3301  ;;  %v3309_v16 = vunpack.i.h.bf16 %v3307_v14  ;;  %v3308_v17 = vunpack.i.l.bf16 %v3307_v14 }
 0x74f   : > { %v3304_v19 = vunpack.i.h.bf16 %v3302_v15  ;;  %v3303_v20 = vunpack.i.l.bf16 %v3302_v15 }
 0x750   : > { %v2831_v22 = vpack.c.bf16 %v3309_v16, %v3308_v17 }
 0x751   : > { %v2828_v21 = vpack.c.bf16 %v3304_v19, %v3303_v20  ;;  %v3317_v30 = vpop.permute.xlu0 %3316 }
 0x752   : > { %v3312_v24 = vpop.permute.xlu1 %3311  ;;  %v3319_v31 = vunpack.i.h.bf16 %v3317_v30  ;;  %v3318_v32 = vunpack.i.l.bf16 %v3317_v30 }
 0x753   : > { %3094 = vmatprep.subr.msk.bf16.mxu0 %vm3653_vm7, %v2828_v21  ;;  %v3314_v26 = vunpack.i.h.bf16 %v3312_v24  ;;  %v3313_v27 = vunpack.i.l.bf16 %v3312_v24 }
 0x754   : > { %3095 = vmatpush3.bf16.msk.msra.mxu0 %vm3653_vm7, %v2828_v21  ;;  %v2869_v39 = vpack.c.bf16 %v3319_v31, %v3318_v32  ;;  %v3367_v32 = vld [vmem:[%s4075_s8 + $0x48] sm:$0xff]  }
 0x755   : > { %3096 = vmatprep.subr.msk.bf16.mxu0 %vm3653_vm7, %v2831_v22  ;;  %v2866_v28 = vpack.c.bf16 %v3314_v26, %v3313_v27 }
 0x758   : > { %3097 = vmatpush3.bf16.msk.msra.mxu0 %vm3653_vm7, %v2831_v22 }
 0x759   : > { %3106 = vmatprep.subr.bf16.mxu0 %v3890_v55 }
 0x75b   : > { %3099 = vmatmul.mubr.msk.bf16.vlgmr.msra.gmra.mrb[12].mxu0 %vm726_vm5, %v3353_v23 }
 0x75c   : > { %3107 = vmatpush3.bf16.msra.mxu0 %v3890_v55  ;;  %3102 = vmatprep.mubr.msk.bf16.mxu0 %vm726_vm5, %v3354_v25 }
 0x75d   : > { %3108 = vmatprep.subr.bf16.mxu0 %v3888_v54 }
 0x760   : > { %3109 = vmatpush3.bf16.msra.mxu0 %v3888_v54 }
 0x761   : > { %3118 = vmatprep.subr.msk.bf16.mxu0 %vm3677_vm9, %v2866_v28 }
 0x762   : > { %v1927_v38 = vpop.permute.xlu0 %1926 }
 0x763   : > { %3103 = vmatmul.mubr.msk.bf16.gmra.mrb[16].mxu0 %vm726_vm5, %v3355_v63  ;;  %v1922_v37 = vpop.permute.xlu1 %1921 }
 0x764   : > { %3110 = vmatprep.mubr.msk.bf16.mxu0 %vm726_vm5, %v3356_v29 }
 0x766   : > { %v1937_v47 = vpop.permute.xlu0 %1936 }
 0x767   : > { %v1932_v53 = vpop.permute.xlu1 %1931 }
 0x76a   : > { %v1907_v61 = vpop.permute.xlu0 %1906 }
 0x76b   : > { %3111 = vmatmul.mubr.msk.bf16.vlgmr.msra.gmra.mrb[12].mxu0 %vm726_vm5, %v3357_v33  ;;  %v1902_v49 = vpop.permute.xlu1 %1901  ;;  %v3368_v33 = vld [vmem:[%s4075_s8 + $0x50] sm:$0xff]  }
 0x76c   : > { %3119 = vmatpush3.bf16.msk.msra.mxu0 %vm3677_vm9, %v2866_v28  ;;  %3114 = vmatprep.mubr.msk.bf16.mxu0 %vm726_vm5, %v3358_v34  ;;  %v3369_v34 = vld [vmem:[%s4075_s8 + $0x58] sm:$0xff]  }
 0x76d   : > { %3120 = vmatprep.subr.msk.bf16.mxu0 %vm3677_vm9, %v2869_v39 }
 0x76e   : > { %v1917_v4 = vpop.permute.xlu0 %1916 }
 0x76f   : > { %v1912_v2 = vpop.permute.xlu1 %1911 }
 0x770   : > { %3121 = vmatpush3.bf16.msk.msra.mxu0 %vm3677_vm9, %v2869_v39 }
 0x771   : > { %3142 = vmatprep.subr.bf16.mxu0 %v3453_v0 }
 0x773   : > { %3115 = vmatmul.mubr.msk.bf16.gmra.mrb[16].mxu0 %vm726_vm5, %v3359_v40  ;;  %v1127_v39 = vpop.permute.xlu1 %1126  ;;  %v1132_v40 = vpop.permute.xlu0 %1131 }
 0x774   : > { %3122 = vmatprep.mubr.msk.bf16.mxu0 %vm726_vm5, %v3360_v41 }
 0x777   : > { %v1741_v41 = vpop.permute.xlu1 %1740 }
 0x77b   : > { %3123 = vmatmul.mubr.msk.bf16.vlgmr.msra.gmra.mrb[12].mxu0 %vm726_vm5, %v3361_v42  ;;  %v1746_v42 = vpop.permute.xlu0 %1745 }
 0x77c   : > { %3126 = vmatprep.mubr.msk.bf16.mxu0 %vm726_vm5, %v3362_v43  ;;  %v2351_v43 = vpop.permute.xlu1 %2350 }
 0x780   : > { %v1137_v44 = vpop.permute.xlu1 %1136 }
 0x783   : > { %3127 = vmatmul.mubr.msk.bf16.gmra.mrb[16].mxu0 %vm726_vm5, %v3363_v11  ;;  %v2356_v11 = vpop.permute.xlu0 %2355 }
 0x784   : > { %3146 = vmatprep.mubr.msk.bf16.mxu0 %vm3454_vm0, %v3453_v0  ;;  %v1751_v46 = vpop.permute.xlu1 %1750 }
 0x787   : > { %v1142_v45 = vpop.permute.xlu0 %1141 }
 0x84e   : > { %v3124_v36 = vpop.f32.mrb[12].mxu0 }
 0x84f   : > { %v2241_v50 = vpop.f32.mrb[13].mxu0  ;;  %v3178_v3 = vadd.f32 %v3124_v36, %v1912_v2 }
 0x850   : > { %v3125_v51 = vpop.f32.mrb[14].mxu0  ;;  %v3179_v5 = vadd.f32 %v2241_v50, %v1902_v49 }
 0x851   : > { %v2244_v52 = vpop.f32.mrb[15].mxu0  ;;  %v3180_v6 = vadd.f32 %v3125_v51, %v1917_v4 }
 0x852   : > { %v3181_v7 = vadd.f32 %v2244_v52, %v1907_v61  ;;  %v2361_v52 = vpop.permute.xlu1 %2360 }
 0x856   : > { %v3128_v54 = vpop.f32.mrb[16].mxu0 }
 0x857   : > { %v3182_v35 = vadd.f32 %v3128_v54, %v1932_v53  ;;  %v2257_v55 = vpop.f32.mrb[17].mxu0  ;;  %v3158_v53 = vadd.f32 %v1751_v46, %v1137_v44 }
 0x858   : > { %v3183_v12 = vadd.f32 %v2257_v55, %v1922_v37  ;;  %v3129_v48 = vpop.f32.mrb[18].mxu0  ;;  %v1756_v37 = vpop.permute.xlu0 %1755 }
 0x859   : > { %v2877_v56 = vmul.f32 -1.442695, %v3182_v35  ;;  %v3184_v57 = vadd.f32 %v3129_v48, %v1937_v47  ;;  %v2260_v58 = vpop.f32.mrb[19].mxu0  ;;  %v3161_v47 = vadd.f32 %v1741_v41, %v1127_v39  ;;  %v3164_v35 = vadd.f32 %v1756_v37, %v1142_v45 }
 0x85a   : > { %v2875_v59 = vmul.f32 -1.442695, %v3183_v12  ;;  %v3185_v60 = vadd.f32 %v2260_v58, %v1927_v38  ;;  %v3159_v55 = vadd.f32 %v3158_v53, %v2361_v52  ;;  %v3167_v12 = vadd.f32 %v1746_v42, %v1132_v40 }
 0x85b   : > { %3418 = vpow2.f32 %v2877_v56  ;;  %v2878_v62 = vmul.f32 -1.442695, %v3184_v57  ;;  %v3162_v48 = vadd.f32 %v3161_v47, %v2351_v43 }
 0x85c   : > { %3420 = vpow2.f32 %v2875_v59  ;;  %v2876_v1 = vmul.f32 -1.442695, %v3185_v60  ;;  %v2366_v54 = vpop.permute.xlu0 %2365  ;;  %v3168_v59 = vadd.f32 %v3167_v12, %v2356_v11 }
 0x85d   : > { %3422 = vpow2.f32 %v2878_v62  ;;  %v3165_v56 = vadd.f32 %v3164_v35, %v2366_v54 }
 0x85e   : > { %3424 = vpow2.f32 %v2876_v1 }
 0x85f   : > { %3426 = vtanh.f32 %v3178_v3  ;;  %v3444_v3 = vld [vmem:[%s3572_s16] ss:$0 sm:$0xff] }
 0x860   : > { %3428 = vtanh.f32 %v3179_v5 }
 0x861   : > { %3430 = vtanh.f32 %v3180_v6 }
 0x862   : > { %3432 = vtanh.f32 %v3181_v7 }
 0x865   : > { %v3419_v8 = vpop.eup %3418 }
 0x866   : > { %v3421_v9 = vpop.eup %3420  ;;  %v2298_v10 = vadd.f32 1.0, %v3419_v8 }
 0x867   : > { %v3423_v13 = vpop.eup %3422  ;;  %v2296_v14 = vadd.f32 1.0, %v3421_v9 }
 0x868   : > { %v3425_v15 = vpop.eup %3424  ;;  %3434 = vrcp.f32 %v2298_v10  ;;  %v2299_v16 = vadd.f32 1.0, %v3423_v13  ;;  %v2469_v10 = vld [vmem:[%s4077_s10] sm:$0xf]  ;;  %v2476_v13 = vpop.permute.xlu1 %2475 }
 0x869   : > { %3436 = vrcp.f32 %v2296_v14  ;;  %v2297_v17 = vadd.f32 1.0, %v3425_v15  ;;  %v3427_v19 = vpop.eup %3426 }
 0x86a   : > { %3438 = vrcp.f32 %v2299_v16  ;;  %v3429_v20 = vpop.eup %3428 }
 0x86b   : > { %3440 = vrcp.f32 %v2297_v17  ;;  %v3431_v21 = vpop.eup %3430 }
 0x86c   : > { %v3433_v22 = vpop.eup %3432 }
 0x872   : > { %v3435_v23 = vpop.eup %3434 }
 0x873   : > { %v3437_v24 = vpop.eup %3436  ;;  %v2310_v25 = vmul.f32 %v3435_v23, %v3427_v19 }
 0x874   : > { %v3439_v26 = vpop.eup %3438  ;;  %v2308_v27 = vmul.f32 %v3437_v24, %v3429_v20 }
 0x875   : > { %v3441_v28 = vpop.eup %3440  ;;  %v2311_v63 = vmul.f32 %v3439_v26, %v3431_v21 }
 0x876   : > { %v2309_v29 = vmul.f32 %v3441_v28, %v3433_v22 }
 0x877   : > { %v2322_v30 = vpack.c.bf16 %v2311_v63, %v2310_v25 }
 0x878   : > { %v2321_v31 = vpack.c.bf16 %v2309_v29, %v2308_v27 }
 0x87a   : > { %3130 = vmatprep.subr.bf16.mxu1 %v2321_v31 }
 0x87b   : > { %3131 = vmatpush3.bf16.msra.mxu1 %v2321_v31 }
 0x87c   : > { %3132 = vmatprep.subr.bf16.mxu1 %v2322_v30 }
 0x87f   : > { %3133 = vmatpush3.bf16.msra.mxu1 %v2322_v30 }
 0x882   : > { %3135 = vmatmul.mubr.msk.bf16.vlgmr.msra.gmra.mrb[24].mxu1 %vm726_vm5, %v3367_v32 }
 0x883   : > { %3138 = vmatprep.mubr.msk.bf16.mxu1 %vm726_vm5, %v3368_v33 }
 0x88a   : > { %3139 = vmatmul.mubr.msk.bf16.gmra.mrb[8].mxu1 %vm726_vm5, %v3369_v34 }
 0x955   : > { %v3136_v36 = vpop.f32.mrb[24].mxu1 }
 0x956   : > { %v2434_v38 = vpop.f32.mrb[25].mxu1 }
 0x957   : > { %v3137_v50 = vpop.f32.mrb[26].mxu1 }
 0x958   : > { %v2436_v51 = vpop.f32.mrb[27].mxu1 }
 0x95d   : > { %v3140_v49 = vpop.f32.mrb[8].mxu1 }
 0x95e   : > { %v3160_v57 = vadd.f32 %v3159_v55, %v3140_v49  ;;  %v2446_v58 = vpop.f32.mrb[9].mxu1 }
 0x95f   : > { %v3163_v60 = vadd.f32 %v3162_v48, %v2446_v58  ;;  %v3141_v61 = vpop.f32.mrb[10].mxu1 }
 0x960   : > { %v3166_v62 = vadd.f32 %v3165_v56, %v3141_v61  ;;  %v2449_v1 = vpop.f32.mrb[11].mxu1  ;;  %v2467_v4 = vmul.f32 %v3444_v3, %v3160_v57 }
 0x961   : > { %v3169_v2 = vadd.f32 %v3168_v59, %v2449_v1  ;;  %v2465_v6 = vmul.f32 %v3444_v3, %v3163_v60 }
 0x962   : > { %v2468_v5 = vmul.f32 %v3444_v3, %v3166_v62 }
 0x963   : > { %v2466_v7 = vmul.f32 %v3444_v3, %v3169_v2 }
 0x964   : > { %v2471_v8 = vpack.c.bf16 %v2468_v5, %v2467_v4 }
 0x965   : > { %v2470_v9 = vpack.c.bf16 %v2466_v7, %v2465_v6 }
 0x967   : > { %3143 = vmatpush3.bf16.msra.mxu0 %v2470_v9 }
 0x968   : > { %3144 = vmatprep.subr.bf16.mxu0 %v3453_v0 }
 0x96b   : > { %3145 = vmatpush3.bf16.msra.mxu0 %v2471_v8 }
 0x96e   : > { %3147 = vmatmul.mubr.msk.bf16.vlgmr.msra.gmra.mrb[20].mxu0 %vm726_vm5, %v2469_v10 }
 0xa41   : > { %v2515_v14 = vpop.f32.mrb[20].mxu0 }
 0xa42   : > { %v2516_v15 = vadd.f32 %v2515_v14, %v2476_v13  ;;  %v3148_v16 = vpop.f32.mrb[21].mxu0 }
 0xa43   : > { %v2518_v17 = vpop.f32.mrb[22].mxu0 }
 0xa44   : > { %v2521_v19 = vmul.f32 1.442695, %v2516_v15  ;;  %v2531_v20 = vmul.f32 %v3444_v3, %v2516_v15  ;;  %v3149_v21 = vpop.f32.mrb[23].mxu0 }
 0xa46   : > { %3442 = vpow2.f32 %v2521_v19  ;;  %v2533_v22 = vrot.slane %v2531_v20, 4 }
 0xa48   : > { %v2535_v0 = vsel %vm474_vm1, %v2533_v22, 0.0 }
 0xa49   : > { %2536 = vadd.xlane.f32.xlu0 %v2535_v0 }
 0xa50   : > { %v3443_v23 = vpop.eup %3442 }
 0xa51   : > { %v2523_v24 = vmul.f32 %v3443_v23, %v3583_v18 }
 0xa53   : > { %v2525_v25 = vrot.slane %v2523_v24, 4 }
 0xa55   : > { %v2527_v26 = vadd.f32 %v2525_v25, %v2516_v15 }
 0xa57   : > { %v2528_v27 = vmul.f32 %v3444_v3, %v2527_v26 }
 0xa59   : > { %2530 = vst [vmem:[%s3580_s19 + $0x4] sm:$0xf] %v2528_v27 }
 0xad6   : > { %v2537_v28 = vpop.xlane.xlu0 %2536 }
 0xad7   : > { %v2538_v63 = vrot.slane %v2537_v28, 4 }
 0xad9   : > { %v2539_v29 = vadd.f32 %v2538_v63, %v2537_v28 }
 0xadb   : > { %v2540_v30 = vrot.slane %v2539_v29, 2 }
 0xadd   : > { %v2541_v31 = vadd.f32 %v2540_v30, %v2539_v29 }
 0xadf   : > { %v2542_v32 = vrot.slane %v2541_v31, 1 }
 0xae1   : > { %v2543_v33 = vadd.f32 %v2542_v32, %v2541_v31 }
 0xae3   : > { %3243 = vpush %v2543_v33 }
 0xb14   : > { %s3244_s27 = spop %3243 }
 0xb15   : > { %v2545_v34 = vstv %s3244_s27 }
 0xb16   : > { %2546 = vst [vmem:[%s458_s22] sm:$0x1] %v2545_v34 }
 0xb17 PF: > { %s24_s25 = sadd.s32 1, %s3451_s25  }
 0xb18   : > { %p21_p4 = scmp.ge.s32.totalorder %s24_s25, 4  }
 0xb1a   :  { %23 = sbr.rel (!%p21_p4) target bundleno = 1 (0x1), region = 127 }

</bundles_post_ra>
